<compile_context>
chip_gen: v7x
topology: tpu7x:2x2x1
jax: 0.10.0
libtpu: 0.0.40
codegen_flags: <defaults>
</compile_context>

<pallas_src>
import jax
import jax.numpy as jnp
from jax.experimental import pallas as pl
from jax.experimental.pallas import tpu as pltpu

NUM_GROUPS = 32
EPS = 1e-6


def _swish(v):
    # x * sigmoid(x); the divide is routed to the EUP approximate-reciprocal slot.
    return v * pl.reciprocal(1.0 + jnp.exp(-v), approx=True)


def _group_norm(x2d, scat, bcast, gamma, beta):
    """GroupNorm(32) on (P, C) data; two-pass variance, f32 statistics.

    scat:  (C, G) one-hot channel->group matrix.
    bcast: (G, C) = scat.T, broadcasts per-group stats back to channels.
    """
    p, c = x2d.shape
    inv_denom = 1.0 / float(p * (c // NUM_GROUPS))                     # 1 / elems-per-group
    sums = jnp.sum(x2d, axis=0, keepdims=True)                          # (1, C)
    mu = jnp.dot(jnp.dot(sums, scat, preferred_element_type=jnp.float32),
                 bcast, preferred_element_type=jnp.float32) * inv_denom  # group mean -> (1, C)
    d = x2d - mu
    ssq = jnp.sum(d * d, axis=0, keepdims=True)                         # (1, C)
    var = jnp.dot(jnp.dot(ssq, scat, preferred_element_type=jnp.float32),
                  bcast, preferred_element_type=jnp.float32) * inv_denom # biased var (torch)
    scale = jax.lax.rsqrt(var + EPS) * gamma                             # fold gamma into scale
    return d * scale + beta


def _shift2d(a, dy, dx):
    """t[h, w, :] = a[h+dy, w+dx, :], zeros outside bounds (one 3x3 SAME tap)."""
    h, w, c = a.shape
    if dy == -1:
        a = jnp.concatenate([jnp.zeros((1, w, c), a.dtype), a[:h - 1]], axis=0)
    elif dy == 1:
        a = jnp.concatenate([a[1:], jnp.zeros((1, w, c), a.dtype)], axis=0)
    if dx == -1:
        a = jnp.concatenate([jnp.zeros((h, 1, c), a.dtype), a[:, :w - 1]], axis=1)
    elif dx == 1:
        a = jnp.concatenate([a[:, 1:], jnp.zeros((h, 1, c), a.dtype)], axis=1)
    return a


def _conv3x3_im2col(h3, w9):
    """3x3 / stride-1 / pad-1 conv as ONE GEMM: (P, 9C) @ (9C, Cout), bf16 in, f32 acc."""
    h, w, c = h3.shape
    taps = [_shift2d(h3, dy, dx) for dy in (-1, 0, 1) for dx in (-1, 0, 1)]
    patch = jnp.concatenate(taps, axis=2).reshape(h * w, 9 * c).astype(jnp.bfloat16)
    return jnp.dot(patch, w9, preferred_element_type=jnp.float32)       # (P, Cout) f32


def resnet_block_kernel(x_ref, temb_ref,
                        scat1_ref, bcast1_ref, g1_ref, beta1_ref, w1_ref, b1_ref,
                        wt_ref,
                        scat2_ref, bcast2_ref, g2_ref, beta2_ref, w2_ref, b2_ref,
                        ws_ref, bs_ref,
                        o_ref):
    _, H, W, Cin = x_ref.shape
    Cout = o_ref.shape[3]
    P = H * W

    x3 = x_ref[0].astype(jnp.float32)                 # (H, W, Cin)
    x2d = x3.reshape(P, Cin)

    # --- norm1 + swish ---
    h1 = _swish(_group_norm(x2d, scat1_ref[...], bcast1_ref[...],
                            g1_ref[...], beta1_ref[...]))

    # --- conv1: 3x3, stride 1, padding 1 (single im2col GEMM) ---
    # b1_ref already carries the temb_proj bias (folded in the wrapper).
    acc = _conv3x3_im2col(h1.reshape(H, W, Cin), w1_ref[...]) + b1_ref[...]

    # --- h = h + temb_proj(swish(temb))[:, :, None, None] ---
    t = _swish(temb_ref[0].astype(jnp.float32))                          # (1, Tc)
    acc = acc + jnp.dot(t.astype(jnp.bfloat16), wt_ref[...],
                        preferred_element_type=jnp.float32)

    # --- norm2 + swish (+ dropout) ---
    # TODO(synk): nn.Dropout is implemented as inference-mode identity (no stochastic mask).
    h2 = _swish(_group_norm(acc, scat2_ref[...], bcast2_ref[...],
                            g2_ref[...], beta2_ref[...]))

    # --- conv2: 3x3, stride 1, padding 1 ---
    acc2 = _conv3x3_im2col(h2.reshape(H, W, Cout), w2_ref[...]) + b2_ref[...]

    # --- nin_shortcut (1x1 conv; in_channels != out_channels, conv_shortcut=False) ---
    xs = jnp.dot(x2d.astype(jnp.bfloat16), ws_ref[...],
                 preferred_element_type=jnp.float32) + bs_ref[...]

    o_ref[...] = (xs + acc2).reshape(1, H, W, Cout).astype(o_ref.dtype)


def _group_scatter(c, groups):
    cg = c // groups
    scat = (jnp.arange(c)[:, None] // cg == jnp.arange(groups)[None, :]).astype(jnp.float32)
    return scat, scat.T                                # (C, G), (G, C)


def resnet_block(x, temb, p):
    """x: (N, H, W, Cin) f32 NHWC; temb: (N, Tc) f32; p: f32 params (HWIO convs)."""
    N, H, W, Cin = x.shape
    Cout = p["w1"].shape[-1]
    Tc = temb.shape[-1]

    temb3 = temb.reshape(N, 1, Tc)
    scat1, bcast1 = _group_scatter(Cin, NUM_GROUPS)
    scat2, bcast2 = _group_scatter(Cout, NUM_GROUPS)

    # MXU operands in bf16 (f32 accumulation in-kernel); conv weights pre-reshaped
    # to im2col layout: row index = (ky*3 + kx)*Cin + cin  -> (9*Cin, Cout).
    w1_9 = p["w1"].reshape(9 * Cin, Cout).astype(jnp.bfloat16)
    w2_9 = p["w2"].reshape(9 * Cout, Cout).astype(jnp.bfloat16)
    wt_b = p["wt"].astype(jnp.bfloat16)
    ws_b = p["ws"].astype(jnp.bfloat16)

    # Fold the (batch-invariant) temb_proj bias into the conv1 bias: exact semantics,
    # one fewer broadcast add and one fewer grid-invariant input inside the kernel.
    b1_eff = p["b1"] + p["bt"]

    rep2 = lambda b: (0, 0)   # broadcast (grid-invariant) rank-2 operands

    grid_spec = pltpu.PrefetchScalarGridSpec(
        num_scalar_prefetch=0,
        grid=(N,),
        in_specs=[
            pl.BlockSpec((1, H, W, Cin), lambda b: (b, 0, 0, 0)),   # x
            pl.BlockSpec((1, 1, Tc), lambda b: (b, 0, 0)),          # temb
            pl.BlockSpec((Cin, NUM_GROUPS), rep2),                  # scat1
            pl.BlockSpec((NUM_GROUPS, Cin), rep2),                  # bcast1
            pl.BlockSpec((1, Cin), rep2),                           # gamma1
            pl.BlockSpec((1, Cin), rep2),                           # beta1
            pl.BlockSpec((9 * Cin, Cout), rep2),                    # w1 (im2col, bf16)
            pl.BlockSpec((1, Cout), rep2),                          # b1 (+ temb bias)
            pl.BlockSpec((Tc, Cout), rep2),                         # temb_proj W (bf16)
            pl.BlockSpec((Cout, NUM_GROUPS), rep2),                 # scat2
            pl.BlockSpec((NUM_GROUPS, Cout), rep2),                 # bcast2
            pl.BlockSpec((1, Cout), rep2),                          # gamma2
            pl.BlockSpec((1, Cout), rep2),                          # beta2
            pl.BlockSpec((9 * Cout, Cout), rep2),                   # w2 (im2col, bf16)
            pl.BlockSpec((1, Cout), rep2),                          # b2
            pl.BlockSpec((Cin, Cout), rep2),                        # nin_shortcut W (bf16)
            pl.BlockSpec((1, Cout), rep2),                          # nin_shortcut b
        ],
        out_specs=pl.BlockSpec((1, H, W, Cout), lambda b: (b, 0, 0, 0)),
    )
    return pl.pallas_call(
        resnet_block_kernel,
        out_shape=jax.ShapeDtypeStruct((N, H, W, Cout), jnp.float32),
        grid_spec=grid_spec,
        compiler_params=pltpu.CompilerParams(
            dimension_semantics=("parallel",),
            vmem_limit_bytes=64 * 1024 * 1024),
    )(x, temb3, scat1, bcast1, p["g1"], p["beta1"], w1_9, b1_eff,
      wt_b, scat2, bcast2, p["g2"], p["beta2"], w2_9, p["b2"],
      ws_b, p["bs"])


def ref_forward(x, temb, p):
    """Pure-JAX f32 reference matching the PyTorch forward (NHWC).
    HIGHEST precision is used here ONLY to make the reference spec-faithful;
    the kernel itself runs native bf16-operand MXU GEMMs with f32 accumulation."""
    prec = jax.lax.Precision.HIGHEST

    def swish(v):
        return v * jax.nn.sigmoid(v)

    def gn(h, gamma, beta):
        n, hh, ww, c = h.shape
        hr = h.reshape(n, hh * ww, NUM_GROUPS, c // NUM_GROUPS)
        mean = hr.mean(axis=(1, 3), keepdims=True)
        var = ((hr - mean) ** 2).mean(axis=(1, 3), keepdims=True)
        hn = (hr - mean) / jnp.sqrt(var + EPS)
        return hn.reshape(n, hh, ww, c) * gamma.reshape(1, 1, 1, c) + beta.reshape(1, 1, 1, c)

    def conv3(h, w, b):
        return jax.lax.conv_general_dilated(
            h, w, window_strides=(1, 1), padding="SAME",
            dimension_numbers=("NHWC", "HWIO", "NHWC"),
            precision=prec) + b.reshape(1, 1, 1, -1)

    h = conv3(swish(gn(x, p["g1"], p["beta1"])), p["w1"], p["b1"])
    proj = jnp.dot(swish(temb), p["wt"], precision=prec) + p["bt"]
    h = h + proj[:, None, None, :]
    h = conv3(swish(gn(h, p["g2"], p["beta2"])), p["w2"], p["b2"])
    xs = jnp.einsum("nhwc,co->nhwo", x, p["ws"], precision=prec) + p["bs"].reshape(1, 1, 1, -1)
    return xs + h


if __name__ == "__main__":
    # Small shapes consistent with the module: GroupNorm(32) requires C % 32 == 0.
    N, H, W = 2, 8, 8
    Cin, Cout, Tc = 32, 64, 64   # in_channels=32, out_channels=64, temb_channels=64

    key = jax.random.PRNGKey(0)
    keys = jax.random.split(key, 16)
    x = jax.random.normal(keys[0], (N, H, W, Cin), jnp.float32)
    temb = jax.random.normal(keys[1], (N, Tc), jnp.float32)

    params = dict(
        g1=1.0 + 0.1 * jax.random.normal(keys[2], (1, Cin), jnp.float32),
        beta1=0.1 * jax.random.normal(keys[3], (1, Cin), jnp.float32),
        w1=0.05 * jax.random.normal(keys[4], (3, 3, Cin, Cout), jnp.float32),
        b1=0.05 * jax.random.normal(keys[5], (1, Cout), jnp.float32),
        wt=0.05 * jax.random.normal(keys[6], (Tc, Cout), jnp.float32),
        bt=0.05 * jax.random.normal(keys[7], (1, Cout), jnp.float32),
        g2=1.0 + 0.1 * jax.random.normal(keys[8], (1, Cout), jnp.float32),
        beta2=0.1 * jax.random.normal(keys[9], (1, Cout), jnp.float32),
        w2=0.05 * jax.random.normal(keys[10], (3, 3, Cout, Cout), jnp.float32),
        b2=0.05 * jax.random.normal(keys[11], (1, Cout), jnp.float32),
        ws=0.05 * jax.random.normal(keys[12], (Cin, Cout), jnp.float32),
        bs=0.05 * jax.random.normal(keys[13], (1, Cout), jnp.float32),
    )

    out = jax.block_until_ready(resnet_block(x, temb, params))
    ref = jax.block_until_ready(ref_forward(x, temb, params))

    assert out.shape == (N, H, W, Cout), out.shape
    # bf16 MXU operands + approximate-reciprocal swish vs an f32/HIGHEST reference:
    # tolerance loosened accordingly.
    err = float(jnp.max(jnp.abs(out - ref)))
    if not jnp.allclose(out, ref, rtol=4e-2, atol=4e-2):
        raise AssertionError(f"mismatch: max abs err = {err}")
    print("KERNEL_OK")
</pallas_src>

<mosaic_0001>
module attributes {stable_mosaic.version = 11 : i64} {
  func.func @resnet_block_kernel(%arg0: i32, %arg1: memref<1x8x8x32xf32, #tpu.memory_space<vmem>>, %arg2: memref<1x1x64xf32, #tpu.memory_space<vmem>>, %arg3: memref<32x32xf32, #tpu.memory_space<vmem>>, %arg4: memref<32x32xf32, #tpu.memory_space<vmem>>, %arg5: memref<1x32xf32, #tpu.memory_space<vmem>>, %arg6: memref<1x32xf32, #tpu.memory_space<vmem>>, %arg7: memref<288x64xbf16, #tpu.memory_space<vmem>>, %arg8: memref<1x64xf32, #tpu.memory_space<vmem>>, %arg9: memref<64x64xbf16, #tpu.memory_space<vmem>>, %arg10: memref<64x32xf32, #tpu.memory_space<vmem>>, %arg11: memref<32x64xf32, #tpu.memory_space<vmem>>, %arg12: memref<1x64xf32, #tpu.memory_space<vmem>>, %arg13: memref<1x64xf32, #tpu.memory_space<vmem>>, %arg14: memref<576x64xbf16, #tpu.memory_space<vmem>>, %arg15: memref<1x64xf32, #tpu.memory_space<vmem>>, %arg16: memref<32x64xbf16, #tpu.memory_space<vmem>>, %arg17: memref<1x64xf32, #tpu.memory_space<vmem>>, %arg18: memref<1x8x8x64xf32, #tpu.memory_space<vmem>>) attributes {dimension_semantics = [#tpu.dimension_semantics<parallel>], iteration_bounds = array<i64: 2>, scalar_prefetch = 0 : i64, scratch_operands = 0 : i64, tpu.core_type = #tpu.core_type<tc>, window_params = [{transform_indices = @transform_0, window_bounds = array<i64: 1, 8, 8, 32>}, {transform_indices = @transform_1, window_bounds = array<i64: 1, 1, 64>}, {pipeline_mode = #tpu.pipeline_mode<synchronous>, transform_indices = @transform_2, window_bounds = array<i64: 32, 32>}, {pipeline_mode = #tpu.pipeline_mode<synchronous>, transform_indices = @transform_3, window_bounds = array<i64: 32, 32>}, {pipeline_mode = #tpu.pipeline_mode<synchronous>, transform_indices = @transform_4, window_bounds = array<i64: 1, 32>}, {pipeline_mode = #tpu.pipeline_mode<synchronous>, transform_indices = @transform_5, window_bounds = array<i64: 1, 32>}, {pipeline_mode = #tpu.pipeline_mode<synchronous>, transform_indices = @transform_6, window_bounds = array<i64: 288, 64>}, {pipeline_mode = #tpu.pipeline_mode<synchronous>, transform_indices = @transform_7, window_bounds = array<i64: 1, 64>}, {pipeline_mode = #tpu.pipeline_mode<synchronous>, transform_indices = @transform_8, window_bounds = array<i64: 64, 64>}, {pipeline_mode = #tpu.pipeline_mode<synchronous>, transform_indices = @transform_9, window_bounds = array<i64: 64, 32>}, {pipeline_mode = #tpu.pipeline_mode<synchronous>, transform_indices = @transform_10, window_bounds = array<i64: 32, 64>}, {pipeline_mode = #tpu.pipeline_mode<synchronous>, transform_indices = @transform_11, window_bounds = array<i64: 1, 64>}, {pipeline_mode = #tpu.pipeline_mode<synchronous>, transform_indices = @transform_12, window_bounds = array<i64: 1, 64>}, {pipeline_mode = #tpu.pipeline_mode<synchronous>, transform_indices = @transform_13, window_bounds = array<i64: 576, 64>}, {pipeline_mode = #tpu.pipeline_mode<synchronous>, transform_indices = @transform_14, window_bounds = array<i64: 1, 64>}, {pipeline_mode = #tpu.pipeline_mode<synchronous>, transform_indices = @transform_15, window_bounds = array<i64: 32, 64>}, {pipeline_mode = #tpu.pipeline_mode<synchronous>, transform_indices = @transform_16, window_bounds = array<i64: 1, 64>}, {transform_indices = @transform_17, window_bounds = array<i64: 1, 8, 8, 64>}]} {
    %c0 = arith.constant 0 : index
    %c0_0 = arith.constant 0 : index
    %c0_1 = arith.constant 0 : index
    %c0_2 = arith.constant 0 : index
    %0 = vector.load %arg1[%c0, %c0_0, %c0_1, %c0_2] : memref<1x8x8x32xf32, #tpu.memory_space<vmem>>, vector<1x8x8x32xf32>
    %1 = vector.shape_cast %0 : vector<1x8x8x32xf32> to vector<8x8x32xf32>
    %2 = vector.shape_cast %1 : vector<8x8x32xf32> to vector<64x32xf32>
    %c0_3 = arith.constant 0 : index
    %c0_4 = arith.constant 0 : index
    %3 = vector.load %arg3[%c0_3, %c0_4] : memref<32x32xf32, #tpu.memory_space<vmem>>, vector<32x32xf32>
    %c0_5 = arith.constant 0 : index
    %c0_6 = arith.constant 0 : index
    %4 = vector.load %arg4[%c0_5, %c0_6] : memref<32x32xf32, #tpu.memory_space<vmem>>, vector<32x32xf32>
    %c0_7 = arith.constant 0 : index
    %c0_8 = arith.constant 0 : index
    %5 = vector.load %arg5[%c0_7, %c0_8] : memref<1x32xf32, #tpu.memory_space<vmem>>, vector<1x32xf32>
    %c0_9 = arith.constant 0 : index
    %c0_10 = arith.constant 0 : index
    %6 = vector.load %arg6[%c0_9, %c0_10] : memref<1x32xf32, #tpu.memory_space<vmem>>, vector<1x32xf32>
    %cst = arith.constant dense<0.000000e+00> : vector<32xf32>
    %7 = vector.multi_reduction <add>, %2, %cst [0] : vector<64x32xf32> to vector<32xf32>
    %8 = vector.shape_cast %7 : vector<32xf32> to vector<1x32xf32>
    %cst_11 = arith.constant dense<0.000000e+00> : vector<1x32xf32>
    %9 = tpu.matmul %8, %3, %cst_11 {dimension_numbers = #tpu.dot_dimension_numbers<[1], [0], [0], [1], [0, 0, 1, 1], [], []>} : vector<1x32xf32>, vector<32x32xf32>, vector<1x32xf32> -> vector<1x32xf32>
    %cst_12 = arith.constant dense<0.000000e+00> : vector<1x32xf32>
    %10 = tpu.matmul %9, %4, %cst_12 {dimension_numbers = #tpu.dot_dimension_numbers<[1], [0], [0], [1], [0, 0, 1, 1], [], []>} : vector<1x32xf32>, vector<32x32xf32>, vector<1x32xf32> -> vector<1x32xf32>
    %cst_13 = arith.constant 1.562500e-02 : f32
    %11 = vector.broadcast %cst_13 : f32 to vector<1x32xf32>
    %12 = arith.mulf %10, %11 : vector<1x32xf32>
    %13 = vector.broadcast %12 : vector<1x32xf32> to vector<64x32xf32>
    %14 = arith.subf %2, %13 : vector<64x32xf32>
    %15 = arith.mulf %14, %14 : vector<64x32xf32>
    %cst_14 = arith.constant dense<0.000000e+00> : vector<32xf32>
    %16 = vector.multi_reduction <add>, %15, %cst_14 [0] : vector<64x32xf32> to vector<32xf32>
    %17 = vector.shape_cast %16 : vector<32xf32> to vector<1x32xf32>
    %cst_15 = arith.constant dense<0.000000e+00> : vector<1x32xf32>
    %18 = tpu.matmul %17, %3, %cst_15 {dimension_numbers = #tpu.dot_dimension_numbers<[1], [0], [0], [1], [0, 0, 1, 1], [], []>} : vector<1x32xf32>, vector<32x32xf32>, vector<1x32xf32> -> vector<1x32xf32>
    %cst_16 = arith.constant dense<0.000000e+00> : vector<1x32xf32>
    %19 = tpu.matmul %18, %4, %cst_16 {dimension_numbers = #tpu.dot_dimension_numbers<[1], [0], [0], [1], [0, 0, 1, 1], [], []>} : vector<1x32xf32>, vector<32x32xf32>, vector<1x32xf32> -> vector<1x32xf32>
    %cst_17 = arith.constant 1.562500e-02 : f32
    %20 = vector.broadcast %cst_17 : f32 to vector<1x32xf32>
    %21 = arith.mulf %19, %20 : vector<1x32xf32>
    %cst_18 = arith.constant 9.99999997E-7 : f32
    %22 = vector.broadcast %cst_18 : f32 to vector<1x32xf32>
    %23 = arith.addf %21, %22 : vector<1x32xf32>
    %24 = math.rsqrt %23 : vector<1x32xf32>
    %25 = arith.mulf %24, %5 : vector<1x32xf32>
    %26 = vector.broadcast %25 : vector<1x32xf32> to vector<64x32xf32>
    %27 = arith.mulf %14, %26 : vector<64x32xf32>
    %28 = vector.broadcast %6 : vector<1x32xf32> to vector<64x32xf32>
    %29 = arith.addf %27, %28 : vector<64x32xf32>
    %cst_19 = arith.constant 0.000000e+00 : f32
    %30 = vector.broadcast %cst_19 : f32 to vector<64x32xf32>
    %31 = arith.subf %30, %29 : vector<64x32xf32>
    %32 = math.exp %31 : vector<64x32xf32>
    %cst_20 = arith.constant 1.000000e+00 : f32
    %33 = vector.broadcast %cst_20 : f32 to vector<64x32xf32>
    %34 = arith.addf %33, %32 : vector<64x32xf32>
    %35 = tpu.reciprocal %34 {approx = true} : vector<64x32xf32> -> vector<64x32xf32>
    %36 = arith.mulf %29, %35 : vector<64x32xf32>
    %37 = vector.shape_cast %36 : vector<64x32xf32> to vector<8x8x32xf32>
    %c0_21 = arith.constant 0 : index
    %c0_22 = arith.constant 0 : index
    %38 = vector.load %arg7[%c0_21, %c0_22] : memref<288x64xbf16, #tpu.memory_space<vmem>>, vector<288x64xbf16>
    %cst_23 = arith.constant 0.000000e+00 : f32
    %39 = vector.broadcast %cst_23 : f32 to vector<1x8x32xf32>
    %40 = vector.extract_strided_slice %37 {offsets = [0, 0, 0], sizes = [7, 8, 32], strides = [1, 1, 1]} : vector<8x8x32xf32> to vector<7x8x32xf32>
    %41 = tpu.concatenate %39, %40 in 0 : vector<1x8x32xf32>, vector<7x8x32xf32> -> vector<8x8x32xf32>
    %cst_24 = arith.constant 0.000000e+00 : f32
    %42 = vector.broadcast %cst_24 : f32 to vector<8x1x32xf32>
    %43 = vector.extract_strided_slice %41 {offsets = [0, 0, 0], sizes = [8, 7, 32], strides = [1, 1, 1]} : vector<8x8x32xf32> to vector<8x7x32xf32>
    %44 = tpu.concatenate %42, %43 in 1 : vector<8x1x32xf32>, vector<8x7x32xf32> -> vector<8x8x32xf32>
    %cst_25 = arith.constant 0.000000e+00 : f32
    %45 = vector.broadcast %cst_25 : f32 to vector<1x8x32xf32>
    %46 = vector.extract_strided_slice %37 {offsets = [0, 0, 0], sizes = [7, 8, 32], strides = [1, 1, 1]} : vector<8x8x32xf32> to vector<7x8x32xf32>
    %47 = tpu.concatenate %45, %46 in 0 : vector<1x8x32xf32>, vector<7x8x32xf32> -> vector<8x8x32xf32>
    %cst_26 = arith.constant 0.000000e+00 : f32
    %48 = vector.broadcast %cst_26 : f32 to vector<1x8x32xf32>
    %49 = vector.extract_strided_slice %37 {offsets = [0, 0, 0], sizes = [7, 8, 32], strides = [1, 1, 1]} : vector<8x8x32xf32> to vector<7x8x32xf32>
    %50 = tpu.concatenate %48, %49 in 0 : vector<1x8x32xf32>, vector<7x8x32xf32> -> vector<8x8x32xf32>
    %51 = vector.extract_strided_slice %50 {offsets = [0, 1, 0], sizes = [8, 7, 32], strides = [1, 1, 1]} : vector<8x8x32xf32> to vector<8x7x32xf32>
    %cst_27 = arith.constant 0.000000e+00 : f32
    %52 = vector.broadcast %cst_27 : f32 to vector<8x1x32xf32>
    %53 = tpu.concatenate %51, %52 in 1 : vector<8x7x32xf32>, vector<8x1x32xf32> -> vector<8x8x32xf32>
    %cst_28 = arith.constant 0.000000e+00 : f32
    %54 = vector.broadcast %cst_28 : f32 to vector<8x1x32xf32>
    %55 = vector.extract_strided_slice %37 {offsets = [0, 0, 0], sizes = [8, 7, 32], strides = [1, 1, 1]} : vector<8x8x32xf32> to vector<8x7x32xf32>
    %56 = tpu.concatenate %54, %55 in 1 : vector<8x1x32xf32>, vector<8x7x32xf32> -> vector<8x8x32xf32>
    %57 = vector.extract_strided_slice %37 {offsets = [0, 1, 0], sizes = [8, 7, 32], strides = [1, 1, 1]} : vector<8x8x32xf32> to vector<8x7x32xf32>
    %cst_29 = arith.constant 0.000000e+00 : f32
    %58 = vector.broadcast %cst_29 : f32 to vector<8x1x32xf32>
    %59 = tpu.concatenate %57, %58 in 1 : vector<8x7x32xf32>, vector<8x1x32xf32> -> vector<8x8x32xf32>
    %60 = vector.extract_strided_slice %37 {offsets = [1, 0, 0], sizes = [7, 8, 32], strides = [1, 1, 1]} : vector<8x8x32xf32> to vector<7x8x32xf32>
    %cst_30 = arith.constant 0.000000e+00 : f32
    %61 = vector.broadcast %cst_30 : f32 to vector<1x8x32xf32>
    %62 = tpu.concatenate %60, %61 in 0 : vector<7x8x32xf32>, vector<1x8x32xf32> -> vector<8x8x32xf32>
    %cst_31 = arith.constant 0.000000e+00 : f32
    %63 = vector.broadcast %cst_31 : f32 to vector<8x1x32xf32>
    %64 = vector.extract_strided_slice %62 {offsets = [0, 0, 0], sizes = [8, 7, 32], strides = [1, 1, 1]} : vector<8x8x32xf32> to vector<8x7x32xf32>
    %65 = tpu.concatenate %63, %64 in 1 : vector<8x1x32xf32>, vector<8x7x32xf32> -> vector<8x8x32xf32>
    %66 = vector.extract_strided_slice %37 {offsets = [1, 0, 0], sizes = [7, 8, 32], strides = [1, 1, 1]} : vector<8x8x32xf32> to vector<7x8x32xf32>
    %cst_32 = arith.constant 0.000000e+00 : f32
    %67 = vector.broadcast %cst_32 : f32 to vector<1x8x32xf32>
    %68 = tpu.concatenate %66, %67 in 0 : vector<7x8x32xf32>, vector<1x8x32xf32> -> vector<8x8x32xf32>
    %69 = vector.extract_strided_slice %37 {offsets = [1, 0, 0], sizes = [7, 8, 32], strides = [1, 1, 1]} : vector<8x8x32xf32> to vector<7x8x32xf32>
    %cst_33 = arith.constant 0.000000e+00 : f32
    %70 = vector.broadcast %cst_33 : f32 to vector<1x8x32xf32>
    %71 = tpu.concatenate %69, %70 in 0 : vector<7x8x32xf32>, vector<1x8x32xf32> -> vector<8x8x32xf32>
    %72 = vector.extract_strided_slice %71 {offsets = [0, 1, 0], sizes = [8, 7, 32], strides = [1, 1, 1]} : vector<8x8x32xf32> to vector<8x7x32xf32>
    %cst_34 = arith.constant 0.000000e+00 : f32
    %73 = vector.broadcast %cst_34 : f32 to vector<8x1x32xf32>
    %74 = tpu.concatenate %72, %73 in 1 : vector<8x7x32xf32>, vector<8x1x32xf32> -> vector<8x8x32xf32>
    %75 = tpu.concatenate %44, %47, %53, %56, %37, %59, %65, %68, %74 in 2 : vector<8x8x32xf32>, vector<8x8x32xf32>, vector<8x8x32xf32>, vector<8x8x32xf32>, vector<8x8x32xf32>, vector<8x8x32xf32>, vector<8x8x32xf32>, vector<8x8x32xf32>, vector<8x8x32xf32> -> vector<8x8x288xf32>
    %76 = vector.shape_cast %75 : vector<8x8x288xf32> to vector<64x288xf32>
    %77 = arith.truncf %76 : vector<64x288xf32> to vector<64x288xbf16>
    %cst_35 = arith.constant dense<0.000000e+00> : vector<64x64xf32>
    %78 = tpu.matmul %77, %38, %cst_35 {dimension_numbers = #tpu.dot_dimension_numbers<[1], [0], [0], [1], [0, 0, 1, 1], [], []>} : vector<64x288xbf16>, vector<288x64xbf16>, vector<64x64xf32> -> vector<64x64xf32>
    %c0_36 = arith.constant 0 : index
    %c0_37 = arith.constant 0 : index
    %79 = vector.load %arg8[%c0_36, %c0_37] : memref<1x64xf32, #tpu.memory_space<vmem>>, vector<1x64xf32>
    %80 = vector.broadcast %79 : vector<1x64xf32> to vector<64x64xf32>
    %81 = arith.addf %78, %80 : vector<64x64xf32>
    %c0_38 = arith.constant 0 : index
    %c0_39 = arith.constant 0 : index
    %c0_40 = arith.constant 0 : index
    %82 = vector.load %arg2[%c0_38, %c0_39, %c0_40] : memref<1x1x64xf32, #tpu.memory_space<vmem>>, vector<1x1x64xf32>
    %83 = vector.shape_cast %82 : vector<1x1x64xf32> to vector<1x64xf32>
    %cst_41 = arith.constant 0.000000e+00 : f32
    %84 = vector.broadcast %cst_41 : f32 to vector<1x64xf32>
    %85 = arith.subf %84, %83 : vector<1x64xf32>
    %86 = math.exp %85 : vector<1x64xf32>
    %cst_42 = arith.constant 1.000000e+00 : f32
    %87 = vector.broadcast %cst_42 : f32 to vector<1x64xf32>
    %88 = arith.addf %87, %86 : vector<1x64xf32>
    %89 = tpu.reciprocal %88 {approx = true} : vector<1x64xf32> -> vector<1x64xf32>
    %90 = arith.mulf %83, %89 : vector<1x64xf32>
    %91 = arith.truncf %90 : vector<1x64xf32> to vector<1x64xbf16>
    %c0_43 = arith.constant 0 : index
    %c0_44 = arith.constant 0 : index
    %92 = vector.load %arg9[%c0_43, %c0_44] : memref<64x64xbf16, #tpu.memory_space<vmem>>, vector<64x64xbf16>
    %cst_45 = arith.constant dense<0.000000e+00> : vector<1x64xf32>
    %93 = tpu.matmul %91, %92, %cst_45 {dimension_numbers = #tpu.dot_dimension_numbers<[1], [0], [0], [1], [0, 0, 1, 1], [], []>} : vector<1x64xbf16>, vector<64x64xbf16>, vector<1x64xf32> -> vector<1x64xf32>
    %94 = vector.broadcast %93 : vector<1x64xf32> to vector<64x64xf32>
    %95 = arith.addf %81, %94 : vector<64x64xf32>
    %c0_46 = arith.constant 0 : index
    %c0_47 = arith.constant 0 : index
    %96 = vector.load %arg10[%c0_46, %c0_47] : memref<64x32xf32, #tpu.memory_space<vmem>>, vector<64x32xf32>
    %c0_48 = arith.constant 0 : index
    %c0_49 = arith.constant 0 : index
    %97 = vector.load %arg11[%c0_48, %c0_49] : memref<32x64xf32, #tpu.memory_space<vmem>>, vector<32x64xf32>
    %c0_50 = arith.constant 0 : index
    %c0_51 = arith.constant 0 : index
    %98 = vector.load %arg12[%c0_50, %c0_51] : memref<1x64xf32, #tpu.memory_space<vmem>>, vector<1x64xf32>
    %c0_52 = arith.constant 0 : index
    %c0_53 = arith.constant 0 : index
    %99 = vector.load %arg13[%c0_52, %c0_53] : memref<1x64xf32, #tpu.memory_space<vmem>>, vector<1x64xf32>
    %cst_54 = arith.constant dense<0.000000e+00> : vector<64xf32>
    %100 = vector.multi_reduction <add>, %95, %cst_54 [0] : vector<64x64xf32> to vector<64xf32>
    %101 = vector.shape_cast %100 : vector<64xf32> to vector<1x64xf32>
    %cst_55 = arith.constant dense<0.000000e+00> : vector<1x32xf32>
    %102 = tpu.matmul %101, %96, %cst_55 {dimension_numbers = #tpu.dot_dimension_numbers<[1], [0], [0], [1], [0, 0, 1, 1], [], []>} : vector<1x64xf32>, vector<64x32xf32>, vector<1x32xf32> -> vector<1x32xf32>
    %cst_56 = arith.constant dense<0.000000e+00> : vector<1x64xf32>
    %103 = tpu.matmul %102, %97, %cst_56 {dimension_numbers = #tpu.dot_dimension_numbers<[1], [0], [0], [1], [0, 0, 1, 1], [], []>} : vector<1x32xf32>, vector<32x64xf32>, vector<1x64xf32> -> vector<1x64xf32>
    %cst_57 = arith.constant 7.812500e-03 : f32
    %104 = vector.broadcast %cst_57 : f32 to vector<1x64xf32>
    %105 = arith.mulf %103, %104 : vector<1x64xf32>
    %106 = vector.broadcast %105 : vector<1x64xf32> to vector<64x64xf32>
    %107 = arith.subf %95, %106 : vector<64x64xf32>
    %108 = arith.mulf %107, %107 : vector<64x64xf32>
    %cst_58 = arith.constant dense<0.000000e+00> : vector<64xf32>
    %109 = vector.multi_reduction <add>, %108, %cst_58 [0] : vector<64x64xf32> to vector<64xf32>
    %110 = vector.shape_cast %109 : vector<64xf32> to vector<1x64xf32>
    %cst_59 = arith.constant dense<0.000000e+00> : vector<1x32xf32>
    %111 = tpu.matmul %110, %96, %cst_59 {dimension_numbers = #tpu.dot_dimension_numbers<[1], [0], [0], [1], [0, 0, 1, 1], [], []>} : vector<1x64xf32>, vector<64x32xf32>, vector<1x32xf32> -> vector<1x32xf32>
    %cst_60 = arith.constant dense<0.000000e+00> : vector<1x64xf32>
    %112 = tpu.matmul %111, %97, %cst_60 {dimension_numbers = #tpu.dot_dimension_numbers<[1], [0], [0], [1], [0, 0, 1, 1], [], []>} : vector<1x32xf32>, vector<32x64xf32>, vector<1x64xf32> -> vector<1x64xf32>
    %cst_61 = arith.constant 7.812500e-03 : f32
    %113 = vector.broadcast %cst_61 : f32 to vector<1x64xf32>
    %114 = arith.mulf %112, %113 : vector<1x64xf32>
    %cst_62 = arith.constant 9.99999997E-7 : f32
    %115 = vector.broadcast %cst_62 : f32 to vector<1x64xf32>
    %116 = arith.addf %114, %115 : vector<1x64xf32>
    %117 = math.rsqrt %116 : vector<1x64xf32>
    %118 = arith.mulf %117, %98 : vector<1x64xf32>
    %119 = vector.broadcast %118 : vector<1x64xf32> to vector<64x64xf32>
    %120 = arith.mulf %107, %119 : vector<64x64xf32>
    %121 = vector.broadcast %99 : vector<1x64xf32> to vector<64x64xf32>
    %122 = arith.addf %120, %121 : vector<64x64xf32>
    %cst_63 = arith.constant 0.000000e+00 : f32
    %123 = vector.broadcast %cst_63 : f32 to vector<64x64xf32>
    %124 = arith.subf %123, %122 : vector<64x64xf32>
    %125 = math.exp %124 : vector<64x64xf32>
    %cst_64 = arith.constant 1.000000e+00 : f32
    %126 = vector.broadcast %cst_64 : f32 to vector<64x64xf32>
    %127 = arith.addf %126, %125 : vector<64x64xf32>
    %128 = tpu.reciprocal %127 {approx = true} : vector<64x64xf32> -> vector<64x64xf32>
    %129 = arith.mulf %122, %128 : vector<64x64xf32>
    %130 = vector.shape_cast %129 : vector<64x64xf32> to vector<8x8x64xf32>
    %c0_65 = arith.constant 0 : index
    %c0_66 = arith.constant 0 : index
    %131 = vector.load %arg14[%c0_65, %c0_66] : memref<576x64xbf16, #tpu.memory_space<vmem>>, vector<576x64xbf16>
    %cst_67 = arith.constant 0.000000e+00 : f32
    %132 = vector.broadcast %cst_67 : f32 to vector<1x8x64xf32>
    %133 = vector.extract_strided_slice %130 {offsets = [0, 0, 0], sizes = [7, 8, 64], strides = [1, 1, 1]} : vector<8x8x64xf32> to vector<7x8x64xf32>
    %134 = tpu.concatenate %132, %133 in 0 : vector<1x8x64xf32>, vector<7x8x64xf32> -> vector<8x8x64xf32>
    %cst_68 = arith.constant 0.000000e+00 : f32
    %135 = vector.broadcast %cst_68 : f32 to vector<8x1x64xf32>
    %136 = vector.extract_strided_slice %134 {offsets = [0, 0, 0], sizes = [8, 7, 64], strides = [1, 1, 1]} : vector<8x8x64xf32> to vector<8x7x64xf32>
    %137 = tpu.concatenate %135, %136 in 1 : vector<8x1x64xf32>, vector<8x7x64xf32> -> vector<8x8x64xf32>
    %cst_69 = arith.constant 0.000000e+00 : f32
    %138 = vector.broadcast %cst_69 : f32 to vector<1x8x64xf32>
    %139 = vector.extract_strided_slice %130 {offsets = [0, 0, 0], sizes = [7, 8, 64], strides = [1, 1, 1]} : vector<8x8x64xf32> to vector<7x8x64xf32>
    %140 = tpu.concatenate %138, %139 in 0 : vector<1x8x64xf32>, vector<7x8x64xf32> -> vector<8x8x64xf32>
    %cst_70 = arith.constant 0.000000e+00 : f32
    %141 = vector.broadcast %cst_70 : f32 to vector<1x8x64xf32>
    %142 = vector.extract_strided_slice %130 {offsets = [0, 0, 0], sizes = [7, 8, 64], strides = [1, 1, 1]} : vector<8x8x64xf32> to vector<7x8x64xf32>
    %143 = tpu.concatenate %141, %142 in 0 : vector<1x8x64xf32>, vector<7x8x64xf32> -> vector<8x8x64xf32>
    %144 = vector.extract_strided_slice %143 {offsets = [0, 1, 0], sizes = [8, 7, 64], strides = [1, 1, 1]} : vector<8x8x64xf32> to vector<8x7x64xf32>
    %cst_71 = arith.constant 0.000000e+00 : f32
    %145 = vector.broadcast %cst_71 : f32 to vector<8x1x64xf32>
    %146 = tpu.concatenate %144, %145 in 1 : vector<8x7x64xf32>, vector<8x1x64xf32> -> vector<8x8x64xf32>
    %cst_72 = arith.constant 0.000000e+00 : f32
    %147 = vector.broadcast %cst_72 : f32 to vector<8x1x64xf32>
    %148 = vector.extract_strided_slice %130 {offsets = [0, 0, 0], sizes = [8, 7, 64], strides = [1, 1, 1]} : vector<8x8x64xf32> to vector<8x7x64xf32>
    %149 = tpu.concatenate %147, %148 in 1 : vector<8x1x64xf32>, vector<8x7x64xf32> -> vector<8x8x64xf32>
    %150 = vector.extract_strided_slice %130 {offsets = [0, 1, 0], sizes = [8, 7, 64], strides = [1, 1, 1]} : vector<8x8x64xf32> to vector<8x7x64xf32>
    %cst_73 = arith.constant 0.000000e+00 : f32
    %151 = vector.broadcast %cst_73 : f32 to vector<8x1x64xf32>
    %152 = tpu.concatenate %150, %151 in 1 : vector<8x7x64xf32>, vector<8x1x64xf32> -> vector<8x8x64xf32>
    %153 = vector.extract_strided_slice %130 {offsets = [1, 0, 0], sizes = [7, 8, 64], strides = [1, 1, 1]} : vector<8x8x64xf32> to vector<7x8x64xf32>
    %cst_74 = arith.constant 0.000000e+00 : f32
    %154 = vector.broadcast %cst_74 : f32 to vector<1x8x64xf32>
    %155 = tpu.concatenate %153, %154 in 0 : vector<7x8x64xf32>, vector<1x8x64xf32> -> vector<8x8x64xf32>
    %cst_75 = arith.constant 0.000000e+00 : f32
    %156 = vector.broadcast %cst_75 : f32 to vector<8x1x64xf32>
    %157 = vector.extract_strided_slice %155 {offsets = [0, 0, 0], sizes = [8, 7, 64], strides = [1, 1, 1]} : vector<8x8x64xf32> to vector<8x7x64xf32>
    %158 = tpu.concatenate %156, %157 in 1 : vector<8x1x64xf32>, vector<8x7x64xf32> -> vector<8x8x64xf32>
    %159 = vector.extract_strided_slice %130 {offsets = [1, 0, 0], sizes = [7, 8, 64], strides = [1, 1, 1]} : vector<8x8x64xf32> to vector<7x8x64xf32>
    %cst_76 = arith.constant 0.000000e+00 : f32
    %160 = vector.broadcast %cst_76 : f32 to vector<1x8x64xf32>
    %161 = tpu.concatenate %159, %160 in 0 : vector<7x8x64xf32>, vector<1x8x64xf32> -> vector<8x8x64xf32>
    %162 = vector.extract_strided_slice %130 {offsets = [1, 0, 0], sizes = [7, 8, 64], strides = [1, 1, 1]} : vector<8x8x64xf32> to vector<7x8x64xf32>
    %cst_77 = arith.constant 0.000000e+00 : f32
    %163 = vector.broadcast %cst_77 : f32 to vector<1x8x64xf32>
    %164 = tpu.concatenate %162, %163 in 0 : vector<7x8x64xf32>, vector<1x8x64xf32> -> vector<8x8x64xf32>
    %165 = vector.extract_strided_slice %164 {offsets = [0, 1, 0], sizes = [8, 7, 64], strides = [1, 1, 1]} : vector<8x8x64xf32> to vector<8x7x64xf32>
    %cst_78 = arith.constant 0.000000e+00 : f32
    %166 = vector.broadcast %cst_78 : f32 to vector<8x1x64xf32>
    %167 = tpu.concatenate %165, %166 in 1 : vector<8x7x64xf32>, vector<8x1x64xf32> -> vector<8x8x64xf32>
    %168 = tpu.concatenate %137, %140, %146, %149, %130, %152, %158, %161, %167 in 2 : vector<8x8x64xf32>, vector<8x8x64xf32>, vector<8x8x64xf32>, vector<8x8x64xf32>, vector<8x8x64xf32>, vector<8x8x64xf32>, vector<8x8x64xf32>, vector<8x8x64xf32>, vector<8x8x64xf32> -> vector<8x8x576xf32>
    %169 = vector.shape_cast %168 : vector<8x8x576xf32> to vector<64x576xf32>
    %170 = arith.truncf %169 : vector<64x576xf32> to vector<64x576xbf16>
    %cst_79 = arith.constant dense<0.000000e+00> : vector<64x64xf32>
    %171 = tpu.matmul %170, %131, %cst_79 {dimension_numbers = #tpu.dot_dimension_numbers<[1], [0], [0], [1], [0, 0, 1, 1], [], []>} : vector<64x576xbf16>, vector<576x64xbf16>, vector<64x64xf32> -> vector<64x64xf32>
    %c0_80 = arith.constant 0 : index
    %c0_81 = arith.constant 0 : index
    %172 = vector.load %arg15[%c0_80, %c0_81] : memref<1x64xf32, #tpu.memory_space<vmem>>, vector<1x64xf32>
    %173 = vector.broadcast %172 : vector<1x64xf32> to vector<64x64xf32>
    %174 = arith.addf %171, %173 : vector<64x64xf32>
    %175 = arith.truncf %2 : vector<64x32xf32> to vector<64x32xbf16>
    %c0_82 = arith.constant 0 : index
    %c0_83 = arith.constant 0 : index
    %176 = vector.load %arg16[%c0_82, %c0_83] : memref<32x64xbf16, #tpu.memory_space<vmem>>, vector<32x64xbf16>
    %cst_84 = arith.constant dense<0.000000e+00> : vector<64x64xf32>
    %177 = tpu.matmul %175, %176, %cst_84 {dimension_numbers = #tpu.dot_dimension_numbers<[1], [0], [0], [1], [0, 0, 1, 1], [], []>} : vector<64x32xbf16>, vector<32x64xbf16>, vector<64x64xf32> -> vector<64x64xf32>
    %c0_85 = arith.constant 0 : index
    %c0_86 = arith.constant 0 : index
    %178 = vector.load %arg17[%c0_85, %c0_86] : memref<1x64xf32, #tpu.memory_space<vmem>>, vector<1x64xf32>
    %179 = vector.broadcast %178 : vector<1x64xf32> to vector<64x64xf32>
    %180 = arith.addf %177, %179 : vector<64x64xf32>
    %181 = arith.addf %180, %174 : vector<64x64xf32>
    %182 = vector.shape_cast %181 : vector<64x64xf32> to vector<1x8x8x64xf32>
    %c0_87 = arith.constant 0 : index
    %c0_88 = arith.constant 0 : index
    %c0_89 = arith.constant 0 : index
    %c0_90 = arith.constant 0 : index
    %183 = vector.load %arg18[%c0_87, %c0_88, %c0_89, %c0_90] : memref<1x8x8x64xf32, #tpu.memory_space<vmem>>, vector<1x8x8x64xf32>
    tpu.vector_store %arg18[%c0_87, %c0_88, %c0_89, %c0_90], %182 {strides = array<i32>} : memref<1x8x8x64xf32, #tpu.memory_space<vmem>>, vector<1x8x8x64xf32>,
    return
  }
  func.func @transform_0(%arg0: i32) -> (i32, i32, i32, i32) {
    %c0_i32 = arith.constant 0 : i32
    %c0_i32_0 = arith.constant 0 : i32
    %c0_i32_1 = arith.constant 0 : i32
    %c0_i32_2 = arith.constant 0 : i32
    return %arg0, %c0_i32, %c0_i32_0, %c0_i32_1 : i32, i32, i32, i32
  }
  func.func @transform_1(%arg0: i32) -> (i32, i32, i32) {
    %c0_i32 = arith.constant 0 : i32
    %c0_i32_0 = arith.constant 0 : i32
    %c0_i32_1 = arith.constant 0 : i32
    return %arg0, %c0_i32, %c0_i32_0 : i32, i32, i32
  }
  func.func @transform_2(%arg0: i32) -> (i32, i32) {
    %c0_i32 = arith.constant 0 : i32
    %c0_i32_0 = arith.constant 0 : i32
    %c0_i32_1 = arith.constant 0 : i32
    return %c0_i32, %c0_i32_0 : i32, i32
  }
  func.func @transform_3(%arg0: i32) -> (i32, i32) {
    %c0_i32 = arith.constant 0 : i32
    %c0_i32_0 = arith.constant 0 : i32
    %c0_i32_1 = arith.constant 0 : i32
    return %c0_i32, %c0_i32_0 : i32, i32
  }
  func.func @transform_4(%arg0: i32) -> (i32, i32) {
    %c0_i32 = arith.constant 0 : i32
    %c0_i32_0 = arith.constant 0 : i32
    %c0_i32_1 = arith.constant 0 : i32
    return %c0_i32, %c0_i32_0 : i32, i32
  }
  func.func @transform_5(%arg0: i32) -> (i32, i32) {
    %c0_i32 = arith.constant 0 : i32
    %c0_i32_0 = arith.constant 0 : i32
    %c0_i32_1 = arith.constant 0 : i32
    return %c0_i32, %c0_i32_0 : i32, i32
  }
  func.func @transform_6(%arg0: i32) -> (i32, i32) {
    %c0_i32 = arith.constant 0 : i32
    %c0_i32_0 = arith.constant 0 : i32
    %c0_i32_1 = arith.constant 0 : i32
    return %c0_i32, %c0_i32_0 : i32, i32
  }
  func.func @transform_7(%arg0: i32) -> (i32, i32) {
    %c0_i32 = arith.constant 0 : i32
    %c0_i32_0 = arith.constant 0 : i32
    %c0_i32_1 = arith.constant 0 : i32
    return %c0_i32, %c0_i32_0 : i32, i32
  }
  func.func @transform_8(%arg0: i32) -> (i32, i32) {
    %c0_i32 = arith.constant 0 : i32
    %c0_i32_0 = arith.constant 0 : i32
    %c0_i32_1 = arith.constant 0 : i32
    return %c0_i32, %c0_i32_0 : i32, i32
  }
  func.func @transform_9(%arg0: i32) -> (i32, i32) {
    %c0_i32 = arith.constant 0 : i32
    %c0_i32_0 = arith.constant 0 : i32
    %c0_i32_1 = arith.constant 0 : i32
    return %c0_i32, %c0_i32_0 : i32, i32
  }
  func.func @transform_10(%arg0: i32) -> (i32, i32) {
    %c0_i32 = arith.constant 0 : i32
    %c0_i32_0 = arith.constant 0 : i32
    %c0_i32_1 = arith.constant 0 : i32
    return %c0_i32, %c0_i32_0 : i32, i32
  }
  func.func @transform_11(%arg0: i32) -> (i32, i32) {
    %c0_i32 = arith.constant 0 : i32
    %c0_i32_0 = arith.constant 0 : i32
    %c0_i32_1 = arith.constant 0 : i32
    return %c0_i32, %c0_i32_0 : i32, i32
  }
  func.func @transform_12(%arg0: i32) -> (i32, i32) {
    %c0_i32 = arith.constant 0 : i32
    %c0_i32_0 = arith.constant 0 : i32
    %c0_i32_1 = arith.constant 0 : i32
    return %c0_i32, %c0_i32_0 : i32, i32
  }
  func.func @transform_13(%arg0: i32) -> (i32, i32) {
    %c0_i32 = arith.constant 0 : i32
    %c0_i32_0 = arith.constant 0 : i32
    %c0_i32_1 = arith.constant 0 : i32
    return %c0_i32, %c0_i32_0 : i32, i32
  }
  func.func @transform_14(%arg0: i32) -> (i32, i32) {
    %c0_i32 = arith.constant 0 : i32
    %c0_i32_0 = arith.constant 0 : i32
    %c0_i32_1 = arith.constant 0 : i32
    return %c0_i32, %c0_i32_0 : i32, i32
  }
  func.func @transform_15(%arg0: i32) -> (i32, i32) {
    %c0_i32 = arith.constant 0 : i32
    %c0_i32_0 = arith.constant 0 : i32
    %c0_i32_1 = arith.constant 0 : i32
    return %c0_i32, %c0_i32_0 : i32, i32
  }
  func.func @transform_16(%arg0: i32) -> (i32, i32) {
    %c0_i32 = arith.constant 0 : i32
    %c0_i32_0 = arith.constant 0 : i32
    %c0_i32_1 = arith.constant 0 : i32
    return %c0_i32, %c0_i32_0 : i32, i32
  }
  func.func @transform_17(%arg0: i32) -> (i32, i32, i32, i32) {
    %c0_i32 = arith.constant 0 : i32
    %c0_i32_0 = arith.constant 0 : i32
    %c0_i32_1 = arith.constant 0 : i32
    %c0_i32_2 = arith.constant 0 : i32
    return %arg0, %c0_i32, %c0_i32_0, %c0_i32_1 : i32, i32, i32, i32
  }
}

</mosaic_0001>

<bundles_post_ra>
// kernel: tpu_custom_call.1
= control target key start
LH: loop header
LB: loop body
LE: loop exit
PB: predicated region body
PF: predicated region fallthrough
CT: control target
= control target key end

     0   :  { %s6579_s0 = inlined_call_operand.hbm [shape: f32[2,8,8,32], index: 0, kind: input, shape index: {}]   ;;  %s6580_s1 = inlined_call_operand.hbm [shape: f32[2,1,64], index: 1, kind: input, shape index: {}]   ;;  %s6581_s2 = inlined_call_operand.hbm [shape: f32[32,32], index: 2, kind: input, shape index: {}]   ;;  %s6582_s3 = inlined_call_operand.hbm [shape: f32[32,32], index: 3, kind: input, shape index: {}]   ;;  %s6583_s4 = inlined_call_operand.hbm [shape: f32[1,32], index: 4, kind: input, shape index: {}]   ;;  %s6584_s5 = inlined_call_operand.hbm [shape: f32[1,32], index: 5, kind: input, shape index: {}]   ;;  %s6585_s6 = inlined_call_operand.hbm [shape: bf16[288,64], index: 6, kind: input, shape index: {}]   ;;  %s6586_s7 = inlined_call_operand.hbm [shape: f32[1,64], index: 7, kind: input, shape index: {}]   ;;  %s6587_s8 = inlined_call_operand.hbm [shape: bf16[64,64], index: 8, kind: input, shape index: {}]   ;;  %s6588_s9 = inlined_call_operand.hbm [shape: f32[64,32], index: 9, kind: input, shape index: {}]   ;;  %s6589_s10 = inlined_call_operand.hbm [shape: f32[32,64], index: 10, kind: input, shape index: {}]   ;;  %s6590_s11 = inlined_call_operand.hbm [shape: f32[1,64], index: 11, kind: input, shape index: {}]   ;;  %s6591_s12 = inlined_call_operand.hbm [shape: f32[1,64], index: 12, kind: input, shape index: {}]   ;;  %s6592_s13 = inlined_call_operand.hbm [shape: bf16[576,64], index: 13, kind: input, shape index: {}]   ;;  %s6593_s14 = inlined_call_operand.hbm [shape: f32[1,64], index: 14, kind: input, shape index: {}]   ;;  %s6594_s15 = inlined_call_operand.hbm [shape: bf16[32,64], index: 15, kind: input, shape index: {}]   ;;  %s6595_s16 = inlined_call_operand.hbm [shape: f32[1,64], index: 16, kind: input, shape index: {}]   ;;  %s6596_s17 = inlined_call_operand.hbm [shape: f32[2,8,8,64], index: 17, kind: output, shape index: {}]  }
   0x1   :  { %6616 = sst [smem:[#allocation47_spill]] %s6579_s0 }
   0x2   :  { %6617 = sst [smem:[#allocation48_spill]] %s6580_s1 }
   0x3   :  { %6618 = sst [smem:[#allocation49_spill]] %s6581_s2 }
   0x4   :  { %6619 = sst [smem:[#allocation50_spill]] %s6582_s3 }
   0x5   :  { %6620 = sst [smem:[#allocation51_spill]] %s6583_s4 }
   0x6   :  { %6621 = sst [smem:[#allocation52_spill]] %s6584_s5 }
   0x7   :  { %6622 = sst [smem:[#allocation53_spill]] %s6585_s6 }
   0x8   :  { %6623 = sst [smem:[#allocation54_spill]] %s6586_s7 }
   0x9   :  { %6624 = sst [smem:[#allocation55_spill]] %s6587_s8 }
   0xa   :  { %6625 = sst [smem:[#allocation56_spill]] %s6588_s9 }
   0xb   :  { %6626 = sst [smem:[#allocation57_spill]] %s6589_s10 }
   0xc   :  { %6627 = sst [smem:[#allocation58_spill]] %s6596_s17 }
   0xd   :  { %22 = vsyncpa [#allocation3], 0 }
   0xe   :  { %24 = vsyncpa [#allocation3 + $0x1], 0 }
   0xf   :  { %25 = vsyncpa [#allocation6], 0 }
  0x10   :  { %27 = vsyncpa [#allocation6 + $0x1], 0 }
  0x11   :  { %28 = vsyncpa [#allocation9], 0 }
  0x12   :  { %29 = vsyncpa [#allocation12], 0 }
  0x13   :  { %30 = vsyncpa [#allocation15], 0 }
  0x14   :  { %31 = vsyncpa [#allocation18], 0 }
  0x15   :  { %32 = vsyncpa [#allocation21], 0 }
  0x16   :  { %33 = vsyncpa [#allocation24], 0 }
  0x17   :  { %34 = vsyncpa [#allocation27], 0 }
  0x18   :  { %35 = vsyncpa [#allocation4], 0 }
  0x19   :  { %37 = vsyncpa [#allocation4 + $0x1], 0  ;;  %s5245_s24 = smov 0   ;;  %s5247_s25 = smov 0  }
  0x1a   :  { %s5249_s26 = smov 0   ;;  %s5251_s27 = smov 0  }
  0x1b LB: > { %6628 = sst [smem:[#allocation41_spill]] %s5111_s24  ;;  %s5125_s28 = smov [#allocation7]   ;;  %s5123_s27 = sphi %s5251_s27, %s6692_s27   ;;  %s5119_s26 = sphi %s5249_s26, %s6691_s26   ;;  %s5115_s25 = sphi %s5247_s25, %s6690_s25   ;;  %s5111_s24 = sphi %s5245_s24, %s6689_s24  }
  0x1c   : > { %6629 = sst [smem:[#allocation42_spill]] %s5115_s25  ;;  %s453_s29 = sshll.u32 %s5125_s28, 4  ;;  %s5271_s29 = int_to_ptr.vmem [resolvable:$true] %s453_s29 }
  0x1d   : > { %6630 = sst [smem:[#allocation43_spill]] %s5119_s26  ;;  %s5266_s0 = sadd.s32 4294967295, %s5123_s27  }
  0x1e   : > { %6631 = sst [smem:[#allocation44_spill]] %s5123_s27  ;;  %p3442_p0 = scmp.ge.s32.totalorder %s5123_s27, 1 }
  0x1f   : > { %6632 = sst [smem:[#allocation45_spill]] %s5266_s0  ;;  %p6610_p1 = scmp.eq.s32.totalorder %s5266_s0, 0 }
  0x20   : > { %p441_p2 = scmp.lt.s32.totalorder %s5123_s27, 3  ;;  %s5126_s18 = smov [#allocation8]  }
  0x21   : > { %s466_s19 = sshll.u32 %s5126_s18, 4  ;;  %s5127_s20 = smov [#allocation11]   ;;  %s5286_s19 = int_to_ptr.vmem [resolvable:$true] %s466_s19 }
  0x22   : > { %p5273_p3 = pnand %p3442_p0, %p441_p2  ;;  %s491_s21 = sshll.u32 %s5127_s20, 4  ;;  %s5288_s21 = int_to_ptr.vmem [resolvable:$true] %s491_s21 }
  0x23   : > { %s6636_s2 = sld [smem:[#allocation49_spill]] }
  0x24   : > { %s6633_s30 = scalar_select %p5273_p3, 1, 0 }
  0x25   : > { %p4073_p5 = pneg %p5273_p3 }
  0x26   : > { %6634 = sst [smem:[#allocation46_spill]] %s6633_s30 }
  0x27   : > { %p5282_p6 = pnand %p4073_p5, %p6610_p1 }
  0x29   : > { %s4541_s28 = scalar_lea.hbm %s6636_s2, 512  ;;  %p5298_p8 = pneg %p5282_p6 }
  0x2a   : > { %p4542_p7 = scmp.ne.s32.totalorder %s6636_s2, %s4541_s28  ;;  %p4548_p11 = scmp.lt.u32.totalorder %s4541_s28, %s6636_s2 }
  0x2c   : > { %p4544_p9 = pnand %p5298_p8, %p4542_p7 }
  0x2e   : > { %p4545_p10 = pneg %p4544_p9 }
  0x30   : > { %p4550_p12 = pnand %p4548_p11, %p4545_p10 }
  0x32   : > { %4553 = shalt.err (!%p4550_p12)
}
  0x33   : > { %s4554_s17 = scalar_lea.vmem %s5271_s29, 512  ;;  %p4562_p5 = scmp.lt.s32.totalorder %s5271_s29, %s5271_s29 }
  0x34   : > { %p4555_p13 = scmp.ne.s32.totalorder %s5271_s29, %s4554_s17  ;;  %p4563_p4 = scmp.lt.s32.totalorder %s4554_s17, %s4554_s17 }
  0x36   : > { %p4557_p0 = pnand %p4555_p13, %p5298_p8  ;;  %p4564_p7 = por %p4563_p4, %p4562_p5 }
  0x38   : > { %p4558_p2 = pneg %p4557_p0 }
  0x3a   : > { %p4565_p9 = pnand %p4564_p7, %p4558_p2 }
  0x3c   : > { %4568 = shalt.err (!%p4565_p9)
}
  0x3d   : > { %s6608_s30 = smov 128   ;;  %s6612_s0 = smov 8  }
  0x3e   : > { %4076 = dma.hbm_to_vmem [thread:$0]  (!%p5282_p6), %s6636_s2, 512, %s5271_s29, [#allocation6], %s6608_s30, %s6608_s30, %s6612_s0  }
  0x3f   : > { %s6638_s3 = sld [smem:[#allocation50_spill]] }
  0x45   : > { %s4569_s17 = scalar_lea.hbm %s6638_s3, 512 }
  0x46   : > { %p4570_p4 = scmp.ne.s32.totalorder %s6638_s3, %s4569_s17  ;;  %p4576_p12 = scmp.lt.u32.totalorder %s4569_s17, %s6638_s3 }
  0x48   : > { %p4572_p10 = pnand %p4570_p4, %p5298_p8 }
  0x4a   : > { %p4573_p11 = pneg %p4572_p10 }
  0x4c   : > { %p4578_p13 = pnand %p4576_p12, %p4573_p11 }
  0x4e   : > { %4581 = shalt.err (!%p4578_p13)
}
  0x4f   : > { %s4582_s29 = scalar_lea.vmem %s5286_s19, 512  ;;  %p4590_p7 = scmp.lt.s32.totalorder %s5286_s19, %s5286_s19 }
  0x50   : > { %p4583_p0 = scmp.ne.s32.totalorder %s5286_s19, %s4582_s29  ;;  %p4591_p9 = scmp.lt.s32.totalorder %s4582_s29, %s4582_s29 }
  0x52   : > { %p4585_p2 = pnand %p4583_p0, %p5298_p8  ;;  %p4592_p4 = por %p4591_p9, %p4590_p7 }
  0x54   : > { %p4586_p5 = pneg %p4585_p2 }
  0x56   : > { %p4593_p10 = pnand %p4592_p4, %p4586_p5 }
  0x58   : > { %4596 = shalt.err (!%p4593_p10)
}
  0x59   : > { %4079 = dma.hbm_to_vmem [thread:$0]  (!%p5282_p6), %s6638_s3, 512, %s5286_s19, [#allocation9], %s6608_s30, %s6608_s30, %s6612_s0  }
  0x5a   : > { %s6639_s5 = sld [smem:[#allocation52_spill]] }
  0x60   : > { %s4597_s22 = scalar_lea.hbm %s6639_s5, 16 }
  0x61   : > { %p4598_p11 = scmp.ne.s32.totalorder %s6639_s5, %s4597_s22  ;;  %p4604_p0 = scmp.lt.u32.totalorder %s4597_s22, %s6639_s5 }
  0x63   : > { %p4600_p12 = pnand %p4598_p11, %p5298_p8 }
  0x65   : > { %p4601_p13 = pneg %p4600_p12 }
  0x67   : > { %p4606_p2 = pnand %p4604_p0, %p4601_p13 }
  0x69   : > { %4609 = shalt.err (!%p4606_p2)
}
  0x6a   : > { %s4610_s19 = scalar_lea.vmem %s5288_s21, 16  ;;  %s4617_s29 = scalar_lea.vmem %s5288_s21, 32 }
  0x6b   : > { %p4611_p5 = scmp.ne.s32.totalorder %s5288_s21, %s4610_s19  ;;  %p4618_p4 = scmp.lt.s32.totalorder %s5288_s21, %s5288_s21 }
  0x6c   : > { %p4619_p10 = scmp.lt.s32.totalorder %s4617_s29, %s4610_s19 }
  0x6d   : > { %p4613_p7 = pnand %p4611_p5, %p5298_p8 }
  0x6e   : > { %p4620_p11 = por %p4619_p10, %p4618_p4 }
  0x6f   : > { %p4614_p9 = pneg %p4613_p7 }
  0x71   : > { %p4621_p12 = pnand %p4620_p11, %p4614_p9 }
  0x73   : > { %4624 = shalt.err (!%p4621_p12)
}
  0x74   : > { %4085 = dma.hbm_to_vmem [thread:$0]  (!%p5282_p6), %s6639_s5, 16, %s5288_s21, [#allocation12]  }
  0x75   : > { %s5130_s26 = smov [#allocation14]   ;;  %s5131_s22 = smov [#allocation17]  }
  0x76   : > { %s515_s27 = sshll.u32 %s5130_s26, 4  ;;  %s538_s23 = sshll.u32 %s5131_s22, 4  ;;  %s516_s27 = int_to_ptr.vmem [resolvable:$true] %s515_s27  ;;  %s539_s23 = int_to_ptr.vmem [resolvable:$true] %s538_s23 }
  0x77   : > { %s6640_s7 = sld [smem:[#allocation54_spill]] }
  0x7d   : > { %s4625_s17 = scalar_lea.hbm %s6640_s7, 16 }
  0x7e   : > { %p4626_p13 = scmp.ne.s32.totalorder %s6640_s7, %s4625_s17  ;;  %p4632_p5 = scmp.lt.u32.totalorder %s4625_s17, %s6640_s7 }
  0x80   : > { %p4628_p0 = pnand %p4626_p13, %p5298_p8 }
  0x82   : > { %p4629_p2 = pneg %p4628_p0 }
  0x84   : > { %p4634_p7 = pnand %p4632_p5, %p4629_p2 }
  0x86   : > { %4637 = shalt.err (!%p4634_p7)
}
  0x87   : > { %s4638_s21 = scalar_lea.vmem %s516_s27, 16  ;;  %s4645_s25 = scalar_lea.vmem %s516_s27, 32 }
  0x88   : > { %p4639_p9 = scmp.ne.s32.totalorder %s516_s27, %s4638_s21  ;;  %p4646_p11 = scmp.lt.s32.totalorder %s516_s27, %s516_s27 }
  0x89   : > { %p4647_p12 = scmp.lt.s32.totalorder %s4645_s25, %s4638_s21 }
  0x8a   : > { %p4641_p4 = pnand %p4639_p9, %p5298_p8 }
  0x8b   : > { %p4648_p1 = por %p4647_p12, %p4646_p11 }
  0x8c   : > { %p4642_p10 = pneg %p4641_p4 }
  0x8e   : > { %p4649_p3 = pnand %p4648_p1, %p4642_p10 }
  0x90   : > { %4652 = shalt.err (!%p4649_p3)
}
  0x91   : > { %4091 = dma.hbm_to_vmem [thread:$0]  (!%p5282_p6), %s6640_s7, 16, %s516_s27, [#allocation15]  }
  0x92   : > { %s6641_s9 = sld [smem:[#allocation56_spill]] }
  0x98   : > { %s4653_s20 = scalar_lea.hbm %s6641_s9, 1024 }
  0x99   : > { %p4654_p13 = scmp.ne.s32.totalorder %s6641_s9, %s4653_s20  ;;  %p4660_p3 = scmp.lt.u32.totalorder %s4653_s20, %s6641_s9 }
  0x9b   : > { %p4656_p0 = pnand %p4654_p13, %p5298_p8 }
  0x9d   : > { %p4657_p1 = pneg %p4656_p0 }
  0x9f   : > { %p4662_p2 = pnand %p4660_p3, %p4657_p1 }
  0xa1   : > { %4665 = shalt.err (!%p4662_p2)
}
  0xa2   : > { %s4666_s21 = scalar_lea.vmem %s539_s23, 1024  ;;  %p4674_p4 = scmp.lt.s32.totalorder %s539_s23, %s539_s23 }
  0xa3   : > { %p4667_p5 = scmp.ne.s32.totalorder %s539_s23, %s4666_s21  ;;  %p4675_p10 = scmp.lt.s32.totalorder %s4666_s21, %s4666_s21 }
  0xa5   : > { %p4669_p7 = pnand %p4667_p5, %p5298_p8  ;;  %p4676_p11 = por %p4675_p10, %p4674_p4 }
  0xa7   : > { %p4670_p9 = pneg %p4669_p7 }
  0xa9   : > { %p4677_p12 = pnand %p4676_p11, %p4670_p9 }
  0xab   : > { %4680 = shalt.err (!%p4677_p12)
}
  0xac   : > { %s6642_s27 = smov 128   ;;  %s5132_s22 = smov [#allocation20]  }
  0xad   : > { %4097 = dma.hbm_to_vmem [thread:$0]  (!%p5282_p6), %s6641_s9, 1024, %s539_s23, [#allocation18], %s6642_s27, %s6642_s27, %s6612_s0  }
  0xae   : > { %s565_s30 = sshll.u32 %s5132_s22, 4  ;;  %s4681_s17 = scalar_lea.hbm %s6590_s11, 16  ;;  %s566_s30 = int_to_ptr.vmem [resolvable:$true] %s565_s30 }
  0xaf   : > { %p4682_p13 = scmp.ne.s32.totalorder %s6590_s11, %s4681_s17  ;;  %p4688_p3 = scmp.lt.u32.totalorder %s4681_s17, %s6590_s11 }
  0xb1   : > { %p4684_p0 = pnand %p4682_p13, %p5298_p8 }
  0xb3   : > { %p4685_p1 = pneg %p4684_p0 }
  0xb5   : > { %p4690_p2 = pnand %p4688_p3, %p4685_p1 }
  0xb7   : > { %4693 = shalt.err (!%p4690_p2)
}
  0xb8   : > { %s4694_s23 = scalar_lea.vmem %s566_s30, 16  ;;  %s4701_s25 = scalar_lea.vmem %s566_s30, 32 }
  0xb9   : > { %p4695_p5 = scmp.ne.s32.totalorder %s566_s30, %s4694_s23  ;;  %p4702_p4 = scmp.lt.s32.totalorder %s566_s30, %s566_s30 }
  0xba   : > { %p4703_p10 = scmp.lt.s32.totalorder %s4701_s25, %s4694_s23 }
  0xbb   : > { %p4697_p7 = pnand %p4695_p5, %p5298_p8 }
  0xbc   : > { %p4704_p11 = por %p4703_p10, %p4702_p4 }
  0xbd   : > { %p4698_p9 = pneg %p4697_p7 }
  0xbf   : > { %p4705_p12 = pnand %p4704_p11, %p4698_p9 }
  0xc1   : > { %4708 = shalt.err (!%p4705_p12)
}
  0xc2   : > { %4103 = dma.hbm_to_vmem [thread:$0]  (!%p5282_p6), %s6590_s11, 16, %s566_s30, [#allocation21]  }
  0xc3   : > { %s5133_s28 = smov [#allocation23]   ;;  %s5134_s17 = smov [#allocation26]  }
  0xc4   : > { %s586_s20 = sshll.u32 %s5133_s28, 4  ;;  %s610_s19 = sshll.u32 %s5134_s17, 4  ;;  %s587_s20 = int_to_ptr.vmem [resolvable:$true] %s586_s20  ;;  %s5429_s19 = int_to_ptr.vmem [resolvable:$true] %s610_s19 }
  0xc5   : > { %s4709_s21 = scalar_lea.hbm %s6592_s13, 4608 }
  0xc6   : > { %p4710_p13 = scmp.ne.s32.totalorder %s6592_s13, %s4709_s21  ;;  %p4716_p3 = scmp.lt.u32.totalorder %s4709_s21, %s6592_s13 }
  0xc8   : > { %p4712_p0 = pnand %p4710_p13, %p5298_p8 }
  0xca   : > { %p4713_p1 = pneg %p4712_p0 }
  0xcc   : > { %p4718_p2 = pnand %p4716_p3, %p4713_p1 }
  0xce   : > { %4721 = shalt.err (!%p4718_p2)
}
  0xcf   : > { %s4722_s22 = scalar_lea.vmem %s587_s20, 4608  ;;  %p4730_p4 = scmp.lt.s32.totalorder %s587_s20, %s587_s20 }
  0xd0   : > { %p4723_p5 = scmp.ne.s32.totalorder %s587_s20, %s4722_s22  ;;  %p4731_p10 = scmp.lt.s32.totalorder %s4722_s22, %s4722_s22 }
  0xd2   : > { %p4725_p7 = pnand %p4723_p5, %p5298_p8  ;;  %p4732_p11 = por %p4731_p10, %p4730_p4 }
  0xd4   : > { %p4726_p9 = pneg %p4725_p7 }
  0xd6   : > { %p4733_p12 = pnand %p4732_p11, %p4726_p9 }
  0xd8   : > { %4736 = shalt.err (!%p4733_p12)
}
  0xd9   : > { %s5135_s28 = smov 64   ;;  %s5136_s17 = smov 4  }
  0xda   : > { %4109 = dma.hbm_to_vmem [thread:$0]  (!%p5282_p6), %s6592_s13, 4608, %s587_s20, [#allocation24], %s5135_s28, %s5135_s28, %s5136_s17  }
  0xdb   : > { %s4737_s25 = scalar_lea.hbm %s6594_s15, 256 }
  0xdc   : > { %p4738_p13 = scmp.ne.s32.totalorder %s6594_s15, %s4737_s25  ;;  %p4744_p3 = scmp.lt.u32.totalorder %s4737_s25, %s6594_s15 }
  0xde   : > { %p4740_p0 = pnand %p4738_p13, %p5298_p8 }
  0xe0   : > { %p4741_p1 = pneg %p4740_p0 }
  0xe2   : > { %p4746_p2 = pnand %p4744_p3, %p4741_p1 }
  0xe4   : > { %4749 = shalt.err (!%p4746_p2)
}
  0xe5   : > { %s4750_s20 = scalar_lea.vmem %s5429_s19, 256  ;;  %p4758_p4 = scmp.lt.s32.totalorder %s5429_s19, %s5429_s19 }
  0xe6   : > { %p4751_p5 = scmp.ne.s32.totalorder %s5429_s19, %s4750_s20  ;;  %p4759_p10 = scmp.lt.s32.totalorder %s4750_s20, %s4750_s20 }
  0xe8   : > { %p4753_p7 = pnand %p4751_p5, %p5298_p8  ;;  %p4760_p11 = por %p4759_p10, %p4758_p4 }
  0xea   : > { %p4754_p9 = pneg %p4753_p7 }
  0xec   : > { %p4761_p12 = pnand %p4760_p11, %p4754_p9 }
  0xee   : > { %4764 = shalt.err (!%p4761_p12)
}
  0xef   : > { %4115 = dma.hbm_to_vmem [thread:$0]  (!%p5282_p6), %s6594_s15, 256, %s5429_s19, [#allocation27], %s5135_s28, %s5135_s28, %s5136_s17  }
  0xf0   : > { %s5137_s24 = smov [#allocation10]   ;;  %s5138_s23 = smov [#allocation13]  }
  0xf1   : > { %s480_s21 = sshll.u32 %s5137_s24, 4  ;;  %s501_s25 = sshll.u32 %s5138_s23, 4  ;;  %s481_s21 = int_to_ptr.vmem [resolvable:$true] %s480_s21  ;;  %s5478_s25 = int_to_ptr.vmem [resolvable:$true] %s501_s25 }
  0xf2   : > { %s6643_s4 = sld [smem:[#allocation51_spill]] }
  0xf8   : > { %s4765_s22 = scalar_lea.hbm %s6643_s4, 16 }
  0xf9   : > { %p4766_p13 = scmp.ne.s32.totalorder %s6643_s4, %s4765_s22  ;;  %p4772_p3 = scmp.lt.u32.totalorder %s4765_s22, %s6643_s4 }
  0xfb   : > { %p4768_p0 = pnand %p4766_p13, %p5298_p8 }
  0xfd   : > { %p4769_p1 = pneg %p4768_p0 }
  0xff   : > { %p4774_p2 = pnand %p4772_p3, %p4769_p1 }
 0x101   : > { %4777 = shalt.err (!%p4774_p2)
}
 0x102   : > { %s4778_s29 = scalar_lea.vmem %s481_s21, 16  ;;  %s4785_s24 = scalar_lea.vmem %s481_s21, 32 }
 0x103   : > { %p4779_p5 = scmp.ne.s32.totalorder %s481_s21, %s4778_s29  ;;  %p4786_p4 = scmp.lt.s32.totalorder %s481_s21, %s481_s21 }
 0x104   : > { %p4787_p10 = scmp.lt.s32.totalorder %s4785_s24, %s4778_s29 }
 0x105   : > { %p4781_p7 = pnand %p4779_p5, %p5298_p8 }
 0x106   : > { %p4788_p11 = por %p4787_p10, %p4786_p4 }
 0x107   : > { %p4782_p9 = pneg %p4781_p7 }
 0x109   : > { %p4789_p12 = pnand %p4788_p11, %p4782_p9 }
 0x10b   : > { %4792 = shalt.err (!%p4789_p12)
}
 0x10c   : > { %4082 = dma.hbm_to_vmem [thread:$0]  (!%p5282_p6), %s6643_s4, 16, %s481_s21, [#allocation9]  }
 0x10d   : > { %s6644_s6 = sld [smem:[#allocation53_spill]] }
 0x113   : > { %s4793_s22 = scalar_lea.hbm %s6644_s6, 2304 }
 0x114   : > { %p4794_p13 = scmp.ne.s32.totalorder %s6644_s6, %s4793_s22  ;;  %p4800_p3 = scmp.lt.u32.totalorder %s4793_s22, %s6644_s6 }
 0x116   : > { %p4796_p0 = pnand %p4794_p13, %p5298_p8 }
 0x118   : > { %p4797_p1 = pneg %p4796_p0 }
 0x11a   : > { %p4802_p2 = pnand %p4800_p3, %p4797_p1 }
 0x11c   : > { %4805 = shalt.err (!%p4802_p2)
}
 0x11d   : > { %s4806_s21 = scalar_lea.vmem %s5478_s25, 2304  ;;  %p4814_p4 = scmp.lt.s32.totalorder %s5478_s25, %s5478_s25 }
 0x11e   : > { %p4807_p5 = scmp.ne.s32.totalorder %s5478_s25, %s4806_s21  ;;  %p4815_p10 = scmp.lt.s32.totalorder %s4806_s21, %s4806_s21 }
 0x120   : > { %p4809_p7 = pnand %p4807_p5, %p5298_p8  ;;  %p4816_p11 = por %p4815_p10, %p4814_p4 }
 0x122   : > { %p4810_p9 = pneg %p4809_p7 }
 0x124   : > { %p4817_p12 = pnand %p4816_p11, %p4810_p9 }
 0x126   : > { %4820 = shalt.err (!%p4817_p12)
}
 0x127   : > { %4088 = dma.hbm_to_vmem [thread:$0]  (!%p5282_p6), %s6644_s6, 2304, %s5478_s25, [#allocation12], %s5135_s28, %s5135_s28, %s5136_s17  }
 0x128   : > { %s5139_s23 = smov [#allocation16]   ;;  %s5140_s30 = smov [#allocation19]  }
 0x129   : > { %s525_s26 = sshll.u32 %s5139_s23, 4  ;;  %s551_s22 = sshll.u32 %s5140_s30, 4  ;;  %s526_s26 = int_to_ptr.vmem [resolvable:$true] %s525_s26  ;;  %s5524_s22 = int_to_ptr.vmem [resolvable:$true] %s551_s22 }
 0x12a   : > { %s6645_s8 = sld [smem:[#allocation55_spill]] }
 0x130   : > { %s4821_s19 = scalar_lea.hbm %s6645_s8, 512 }
 0x131   : > { %p4822_p13 = scmp.ne.s32.totalorder %s6645_s8, %s4821_s19  ;;  %p4828_p3 = scmp.lt.u32.totalorder %s4821_s19, %s6645_s8 }
 0x133   : > { %p4824_p0 = pnand %p4822_p13, %p5298_p8 }
 0x135   : > { %p4825_p1 = pneg %p4824_p0 }
 0x137   : > { %p4830_p2 = pnand %p4828_p3, %p4825_p1 }
 0x139   : > { %4833 = shalt.err (!%p4830_p2)
}
 0x13a   : > { %s4834_s2 = scalar_lea.vmem %s526_s26, 512  ;;  %p4842_p4 = scmp.lt.s32.totalorder %s526_s26, %s526_s26 }
 0x13b   : > { %p4835_p5 = scmp.ne.s32.totalorder %s526_s26, %s4834_s2  ;;  %p4843_p10 = scmp.lt.s32.totalorder %s4834_s2, %s4834_s2 }
 0x13d   : > { %p4837_p7 = pnand %p4835_p5, %p5298_p8  ;;  %p4844_p11 = por %p4843_p10, %p4842_p4 }
 0x13f   : > { %p4838_p9 = pneg %p4837_p7 }
 0x141   : > { %p4845_p12 = pnand %p4844_p11, %p4838_p9 }
 0x143   : > { %4848 = shalt.err (!%p4845_p12)
}
 0x144   : > { %4094 = dma.hbm_to_vmem [thread:$0]  (!%p5282_p6), %s6645_s8, 512, %s526_s26, [#allocation15], %s5135_s28, %s5135_s28, %s5136_s17  }
 0x145   : > { %s6646_s10 = sld [smem:[#allocation57_spill]] }
 0x14b   : > { %s4849_s19 = scalar_lea.hbm %s6646_s10, 512 }
 0x14c   : > { %p4850_p13 = scmp.ne.s32.totalorder %s6646_s10, %s4849_s19  ;;  %p4856_p3 = scmp.lt.u32.totalorder %s4849_s19, %s6646_s10 }
 0x14e   : > { %p4852_p0 = pnand %p4850_p13, %p5298_p8 }
 0x150   : > { %p4853_p1 = pneg %p4852_p0 }
 0x152   : > { %p4858_p2 = pnand %p4856_p3, %p4853_p1 }
 0x154   : > { %4861 = shalt.err (!%p4858_p2)
}
 0x155   : > { %s4862_s28 = scalar_lea.vmem %s5524_s22, 512  ;;  %p4870_p4 = scmp.lt.s32.totalorder %s5524_s22, %s5524_s22 }
 0x156   : > { %p4863_p5 = scmp.ne.s32.totalorder %s5524_s22, %s4862_s28  ;;  %p4871_p10 = scmp.lt.s32.totalorder %s4862_s28, %s4862_s28 }
 0x158   : > { %p4865_p7 = pnand %p4863_p5, %p5298_p8  ;;  %p4872_p11 = por %p4871_p10, %p4870_p4 }
 0x15a   : > { %p4866_p9 = pneg %p4865_p7 }
 0x15c   : > { %p4873_p12 = pnand %p4872_p11, %p4866_p9 }
 0x15e   : > { %4876 = shalt.err (!%p4873_p12)
}
 0x15f   : > { %s6647_s17 = smov 8   ;;  %s5141_s23 = smov [#allocation22]  }
 0x160   : > { %4100 = dma.hbm_to_vmem [thread:$0]  (!%p5282_p6), %s6646_s10, 512, %s5524_s22, [#allocation18], %s6642_s27, %s6642_s27, %s6647_s17  }
 0x161   : > { %s576_s30 = sshll.u32 %s5141_s23, 4  ;;  %s5142_s20 = smov [#allocation25]   ;;  %s577_s30 = int_to_ptr.vmem [resolvable:$true] %s576_s30 }
 0x162   : > { %s600_s0 = sshll.u32 %s5142_s20, 4  ;;  %s4877_s21 = scalar_lea.hbm %s6591_s12, 16  ;;  %s5573_s0 = int_to_ptr.vmem [resolvable:$true] %s600_s0 }
 0x163   : > { %p4878_p13 = scmp.ne.s32.totalorder %s6591_s12, %s4877_s21  ;;  %p4884_p3 = scmp.lt.u32.totalorder %s4877_s21, %s6591_s12 }
 0x165   : > { %p4880_p0 = pnand %p4878_p13, %p5298_p8 }
 0x167   : > { %p4881_p1 = pneg %p4880_p0 }
 0x169   : > { %p4886_p2 = pnand %p4884_p3, %p4881_p1 }
 0x16b   : > { %4889 = shalt.err (!%p4886_p2)
}
 0x16c   : > { %s4890_s26 = scalar_lea.vmem %s577_s30, 16  ;;  %s4897_s2 = scalar_lea.vmem %s577_s30, 32 }
 0x16d   : > { %p4891_p5 = scmp.ne.s32.totalorder %s577_s30, %s4890_s26  ;;  %p4898_p4 = scmp.lt.s32.totalorder %s577_s30, %s577_s30 }
 0x16e   : > { %p4899_p10 = scmp.lt.s32.totalorder %s4897_s2, %s4890_s26 }
 0x16f   : > { %p4893_p7 = pnand %p4891_p5, %p5298_p8 }
 0x170   : > { %p4900_p11 = por %p4899_p10, %p4898_p4 }
 0x171   : > { %p4894_p9 = pneg %p4893_p7 }
 0x173   : > { %p4901_p12 = pnand %p4900_p11, %p4894_p9 }
 0x175   : > { %4904 = shalt.err (!%p4901_p12)
}
 0x176   : > { %4106 = dma.hbm_to_vmem [thread:$0]  (!%p5282_p6), %s6591_s12, 16, %s577_s30, [#allocation21]  }
 0x177   : > { %s4905_s21 = scalar_lea.hbm %s6593_s14, 16 }
 0x178   : > { %p4906_p13 = scmp.ne.s32.totalorder %s6593_s14, %s4905_s21  ;;  %p4912_p3 = scmp.lt.u32.totalorder %s4905_s21, %s6593_s14 }
 0x17a   : > { %p4908_p0 = pnand %p4906_p13, %p5298_p8 }
 0x17c   : > { %p4909_p1 = pneg %p4908_p0 }
 0x17e   : > { %p4914_p2 = pnand %p4912_p3, %p4909_p1 }
 0x180   : > { %4917 = shalt.err (!%p4914_p2)
}
 0x181   : > { %s4918_s30 = scalar_lea.vmem %s5573_s0, 16  ;;  %s4925_s26 = scalar_lea.vmem %s5573_s0, 32 }
 0x182   : > { %p4919_p5 = scmp.ne.s32.totalorder %s5573_s0, %s4918_s30  ;;  %p4926_p4 = scmp.lt.s32.totalorder %s5573_s0, %s5573_s0 }
 0x183   : > { %p4927_p10 = scmp.lt.s32.totalorder %s4925_s26, %s4918_s30 }
 0x184   : > { %p4921_p7 = pnand %p4919_p5, %p5298_p8 }
 0x185   : > { %p4928_p11 = por %p4927_p10, %p4926_p4 }
 0x186   : > { %p4922_p9 = pneg %p4921_p7 }
 0x188   : > { %p4929_p12 = pnand %p4928_p11, %p4922_p9 }
 0x18a   : > { %4932 = shalt.err (!%p4929_p12)
}
 0x18b   : > { %4112 = dma.hbm_to_vmem [thread:$0]  (!%p5282_p6), %s6593_s14, 16, %s5573_s0, [#allocation24]  }
 0x18c   : > { %s5143_s20 = smov [#allocation28]   ;;  %s4933_s24 = scalar_lea.hbm %s6595_s16, 16 }
 0x18d   : > { %s624_s19 = sshll.u32 %s5143_s20, 4  ;;  %p4934_p13 = scmp.ne.s32.totalorder %s6595_s16, %s4933_s24  ;;  %s625_s19 = int_to_ptr.vmem [resolvable:$true] %s624_s19 }
 0x18e   : > { %p4940_p3 = scmp.lt.u32.totalorder %s4933_s24, %s6595_s16 }
 0x18f   : > { %p4936_p0 = pnand %p4934_p13, %p5298_p8 }
 0x191   : > { %p4937_p1 = pneg %p4936_p0 }
 0x193   : > { %p4942_p2 = pnand %p4940_p3, %p4937_p1 }
 0x195   : > { %4945 = shalt.err (!%p4942_p2)
}
 0x196   : > { %s4946_s0 = scalar_lea.vmem %s625_s19, 16  ;;  %s4953_s26 = scalar_lea.vmem %s625_s19, 32 }
 0x197   : > { %p4947_p5 = scmp.ne.s32.totalorder %s625_s19, %s4946_s0  ;;  %p4954_p4 = scmp.lt.s32.totalorder %s625_s19, %s625_s19 }
 0x198   : > { %p4955_p10 = scmp.lt.s32.totalorder %s4953_s26, %s4946_s0 }
 0x199   : > { %p4949_p7 = pnand %p4947_p5, %p5298_p8 }
 0x19a   : > { %p4956_p11 = por %p4955_p10, %p4954_p4 }
 0x19b   : > { %p4950_p9 = pneg %p4949_p7 }
 0x19d   : > { %p4957_p12 = pnand %p4956_p11, %p4950_p9 }
 0x19f   : > { %4960 = shalt.err (!%p4957_p12)
}
 0x1a0   : > { %s6648_s20 = sld [smem:[#allocation44_spill]]  ;;  %s6649_s29 = sld [smem:[#allocation43_spill]] }
 0x1a1   : > { %s6650_s21 = sld [smem:[#allocation42_spill]]  ;;  %s6651_s18 = sld [smem:[#allocation41_spill]] }
 0x1a2   : > { %s6652_s24 = sld [smem:[#allocation45_spill]] }
 0x1a3   : > { %4118 = dma.hbm_to_vmem [thread:$0]  (!%p5282_p6), %s6595_s16, 16, %s625_s19, [#allocation27]  }
 0x1a6   : > { %s3441_s25 = sadd.s32 4294967294, %s6648_s20   ;;  %s5637_s1 = sadd.s32 1, %s6648_s20  }
 0x1a7   : > { %s50_s28 = sadd.s32 1, %s6649_s29  ;;  %s47_s22 = ssub.s32 %s6648_s20, %s5637_s1 }
 0x1a8   : > { %p57_p8 = scmp.ne.s32.totalorder %s6649_s29, %s6650_s21  ;;  %p48_p13 = scmp.eq.s32.totalorder %s47_s22, 0 }
 0x1a9   : > { %p58_p0 = scmp.eq.s32.totalorder %s6648_s20, 0  ;;  %p63_p1 = scmp.ne.s32.totalorder %s6650_s21, %s6651_s18 }
 0x1aa   : > { %p428_p3 = scmp.eq.s32.totalorder %s6652_s24, 1  ;;  %p6653_p5 = scmp.eq.s32.totalorder %s6652_s24, 0 }
 0x1ab   : > { %s5649_s30 = scalar_select %p48_p13, %s6649_s29, %s50_s28  }
 0x1ac   : > { %p59_p2 = por %p58_p0, %p57_p8  ;;  %p5653_p7 = por %p6653_p5, %p63_p1 }
 0x1ad   : > { %p5657_p6 = por %p428_p3, %p57_p8  ;;  %p434_p9 = scmp.eq.s32.totalorder %s3441_s25, 1 }
 0x1ae   : > { %s6654_s19 = scalar_select %p5653_p7, 1, 0 }
 0x1af   : > { %s6655_s0 = scalar_select %p5657_p6, 1, 0 }
 0x1b0   : > { %p4145_p4 = scmp.lt.s32.totalorder %s6648_s20, 2  ;;  %s5663_s26 = sand.u32 1, %s6649_s29  }
 0x1b1   : > { %p5665_p10 = por %p434_p9, %p63_p1  ;;  %s3459_s23 = sshll.u32 %s5663_s26, 6 }
 0x1b2   : > { %s3572_s21 = sshll.u32 %s6648_s20, 10  ;;  %s6657_s28 = sld [smem:[#allocation47_spill]] }
 0x1b3   : > { %s6656_s2 = scalar_select %p5665_p10, 1, 0 }
 0x1b4   : > { %s639_s25 = scalar_lea.vmem [#allocation2], %s3459_s23  ;;  %p5676_p11 = pnand %p4145_p4, %p59_p2 }
 0x1b5   : > { %s646_s29 = sshll.u32 %s639_s25, 4  ;;  %s636_s5 = scalar_lea.sflag [#allocation3], %s5663_s26  ;;  %s5680_s29 = int_to_ptr.vmem [resolvable:$true] %s646_s29 }
 0x1b6   : > { %p4963_p8 = pneg %p5676_p11 }
 0x1b8   : > { %s5674_s22 = scalar_lea.hbm %s6657_s28, %s3572_s21  ;;  %s4966_s18 = scalar_lea.hbm %s6657_s28, 2048 }
 0x1b9   : > { %s4961_s6 = scalar_lea.hbm %s5674_s22, 1024  ;;  %p4967_p1 = scmp.lt.u32.totalorder %s5674_s22, %s6657_s28 }
 0x1ba   : > { %p4962_p12 = scmp.ne.s32.totalorder %s5674_s22, %s4961_s6  ;;  %p4968_p3 = scmp.lt.u32.totalorder %s4966_s18, %s4961_s6 }
 0x1bb   : > { %p4970_p5 = scmp.lt.u32.totalorder %s4961_s6, %s5674_s22 }
 0x1bc   : > { %p4964_p13 = pnand %p4963_p8, %p4962_p12  ;;  %p4969_p2 = por %p4968_p3, %p4967_p1 }
 0x1be   : > { %p4965_p0 = pneg %p4964_p13  ;;  %p4971_p9 = por %p4970_p5, %p4969_p2 }
 0x1c0   : > { %p4972_p4 = pnand %p4971_p9, %p4965_p0 }
 0x1c2   : > { %4975 = shalt.err (!%p4972_p4)
}
 0x1c3   : > { %s4976_s4 = scalar_lea.vmem %s5680_s29, 1024  ;;  %s5144_s23 = smov [#allocation2]  }
 0x1c4   : > { %p4977_p12 = scmp.ne.s32.totalorder %s5680_s29, %s4976_s4  ;;  %s4981_s21 = sshll.u32 %s5144_s23, 4  ;;  %s4982_s21 = int_to_ptr.vmem [resolvable:$false] %s4981_s21 }
 0x1c5   : > { %s4983_s24 = scalar_lea.vmem %s4982_s21, 2048  ;;  %p4984_p6 = scmp.lt.s32.totalorder %s5680_s29, %s4982_s21 }
 0x1c6   : > { %p4979_p13 = pnand %p4977_p12, %p4963_p8  ;;  %p4985_p1 = scmp.lt.s32.totalorder %s4983_s24, %s4976_s4 }
 0x1c8   : > { %p4980_p10 = pneg %p4979_p13  ;;  %p4986_p3 = por %p4985_p1, %p4984_p6 }
 0x1ca   : > { %p4987_p2 = pnand %p4986_p3, %p4980_p10 }
 0x1cc   : > { %4990 = shalt.err (!%p4987_p2)
}
 0x1cd   : > { %4122 = dma.hbm_to_vmem [thread:$0]  (!%p5676_p11), %s5674_s22, 1024, %s5680_s29, %s636_s5, %s6642_s27, %s6642_s27, %s6647_s17  }
 0x1ce   : > { %s3462_s6 = sshll.u32 %s6648_s20, 4  ;;  %s6659_s25 = sld [smem:[#allocation48_spill]] }
 0x1cf   : > { %s659_s24 = scalar_lea.vmem [#allocation5], %s5663_s26  ;;  %s6661_s8 = sand.u32 1, %s6648_s20  }
 0x1d0   : > { %s666_s7 = sshll.u32 %s659_s24, 4  ;;  %s657_s9 = scalar_lea.sflag [#allocation6], %s6661_s8  ;;  %s667_s7 = int_to_ptr.vmem [resolvable:$true] %s666_s7 }
 0x1d4   : > { %s6660_s23 = smov %s6659_s25  ;;  %s5718_s21 = scalar_lea.hbm %s6659_s25, %s3462_s6 }
 0x1d5   : > { %s4991_s10 = scalar_lea.hbm %s5718_s21, 16  ;;  %s4996_s17 = scalar_lea.hbm %s6660_s23, 32 }
 0x1d6   : > { %p4992_p6 = scmp.ne.s32.totalorder %s5718_s21, %s4991_s10  ;;  %p4997_p5 = scmp.lt.u32.totalorder %s5718_s21, %s6660_s23 }
 0x1d7   : > { %p4998_p9 = scmp.lt.u32.totalorder %s4996_s17, %s4991_s10  ;;  %p5000_p12 = scmp.lt.u32.totalorder %s4991_s10, %s5718_s21 }
 0x1d8   : > { %p4994_p10 = pnand %p4992_p6, %p4963_p8 }
 0x1d9   : > { %p4999_p4 = por %p4998_p9, %p4997_p5 }
 0x1da   : > { %p4995_p0 = pneg %p4994_p10 }
 0x1db   : > { %p5001_p13 = por %p5000_p12, %p4999_p4 }
 0x1dd   : > { %p5002_p1 = pnand %p5001_p13, %p4995_p0 }
 0x1df   : > { %5005 = shalt.err (!%p5002_p1)
}
 0x1e0   : > { %s5006_s8 = scalar_lea.vmem %s667_s7, 16  ;;  %s5145_s20 = smov [#allocation5]  }
 0x1e1   : > { %p5007_p3 = scmp.ne.s32.totalorder %s667_s7, %s5006_s8  ;;  %s5011_s26 = sshll.u32 %s5145_s20, 4  ;;  %s5012_s26 = int_to_ptr.vmem [resolvable:$false] %s5011_s26 }
 0x1e2   : > { %s5013_s6 = scalar_lea.vmem %s5012_s26, 32  ;;  %p5014_p10 = scmp.lt.s32.totalorder %s667_s7, %s5012_s26 }
 0x1e3   : > { %p5009_p2 = pnand %p5007_p3, %p4963_p8  ;;  %p5015_p7 = scmp.lt.s32.totalorder %s5013_s6, %s5006_s8 }
 0x1e5   : > { %p5010_p6 = pneg %p5009_p2  ;;  %p5016_p5 = por %p5015_p7, %p5014_p10 }
 0x1e7   : > { %p5017_p9 = pnand %p5016_p5, %p5010_p6 }
 0x1e9   : > { %5020 = shalt.err (!%p5017_p9)
}
 0x1ea   : > { %4125 = dma.hbm_to_vmem [thread:$0]  (!%p5676_p11), %s5718_s21, 16, %s667_s7, %s657_s9  }
 0x1eb   : > { %s6662_s10 = sld [smem:[#allocation46_spill]] }
 0x1f1   : > { %p6663_p0 = scmp.ne.s32.totalorder %s6662_s10, 0 }
 0x1f2   : > { %s6664_s18 = sld [smem:[#allocation42_spill]] (!%p6663_p0)  ;;  %p6665_p7 = scmp.ne.s32.totalorder (!%p6663_p0), %s6654_s19, 0 }
 0x1f3   : > { %675 = sbr.rel (%p6663_p0) target bundleno = 3267 (0xcc3), region = 88 }
 0x1f8   : > { %s5745_s4 = sand.u32 (!%p6663_p0), 1, %s6664_s18  }
 0x1f9   : > { %s3464_s25 = sshll.u32 (!%p6663_p0), %s5745_s4, 6  ;;  %s678_s24 = scalar_lea.sflag (!%p6663_p0), [#allocation3], %s5745_s4 }
 0x1fa   : > { %s5751_s5 = scalar_lea.vmem [#allocation2], %s3464_s25 }
 0x1fb   : > { %5066 = dma.done.wait (%p6665_p7), %s678_s24, 1024  }
 0x1fc   : > { %5068 = vsyncadd (%p6665_p7), %s678_s24, 4294966272  ;;  %s6666_s3 = sld [smem:[#allocation45_spill]]  ;;  %s689_s21 = scalar_lea.vmem [#allocation5], %s5745_s4 }
 0x202   : > { %s686_s7 = sand.u32 1, %s6666_s3  }
 0x203   : > { %s687_s9 = scalar_lea.sflag [#allocation6], %s686_s7 }
 0x204   : > { %5070 = dma.done.wait (%p6665_p7), %s687_s9, 16  }
 0x205   : > { %5072 = vsyncadd (%p6665_p7), %s687_s9, 4294967280  ;;  %p6667_p11 = scmp.eq.s32.totalorder %s6666_s3, 0 }
 0x207   : > { %5074 = dma.done.wait (%p6667_p11), [#allocation6], 512   ;;  %p6668_p8 = pmov %p6667_p11 }
 0x209   : > { %5076 = vsyncadd (%p6668_p8), [#allocation6], 4294966784  ;;  %p6669_p4 = pmov %p6668_p8 }
 0x20b   : > { %5078 = dma.done.wait (%p6669_p4), [#allocation9], 528   ;;  %p6670_p12 = pmov %p6669_p4 }
 0x20c   : > { %p6671_p13 = pmov %p6669_p4 }
 0x20d   : > { %5080 = vsyncadd (%p6670_p12), [#allocation9], 4294966768 }
 0x20e   : > { %5082 = dma.done.wait (%p6671_p13), [#allocation12], 2320   ;;  %p6672_p1 = pmov %p6669_p4 }
 0x210   : > { %5084 = vsyncadd (%p6672_p1), [#allocation12], 4294964976  ;;  %p6673_p3 = pmov %p6672_p1 }
 0x211   : > { %p6674_p2 = pmov %p6672_p1 }
 0x212   : > { %5086 = dma.done.wait (%p6673_p3), [#allocation15], 528  }
 0x213   : > { %5088 = vsyncadd (%p6674_p2), [#allocation15], 4294966768  ;;  %p6675_p6 = pmov %p6672_p1 }
 0x214   : > { %p6676_p10 = pmov %p6672_p1 }
 0x215   : > { %5090 = dma.done.wait (%p6675_p6), [#allocation18], 1536  }
 0x216   : > { %5092 = vsyncadd (%p6676_p10), [#allocation18], 4294965760  ;;  %p6677_p5 = pmov %p6672_p1 }
 0x217   : > { %p6678_p9 = pmov %p6672_p1 }
 0x218   : > { %5094 = dma.done.wait (%p6677_p5), [#allocation21], 32  }
 0x219   : > { %5096 = vsyncadd (%p6678_p9), [#allocation21], 4294967264  ;;  %p6679_p0 = pmov %p6672_p1 }
 0x21b   : > { %5098 = dma.done.wait (%p6679_p0), [#allocation24], 4624   ;;  %p6680_p7 = pmov %p6679_p0 }
 0x21c   : > { %p6681_p11 = pmov %p6679_p0 }
 0x21d   : > { %5100 = vsyncadd (%p6680_p7), [#allocation24], 4294962672 }
 0x21e   : > { %5102 = dma.done.wait (%p6681_p11), [#allocation27], 272   ;;  %p6682_p8 = pmov %p6679_p0 }
 0x21f   : > { %v5146_v0 = vmov 0.0|0.0   ;;  %vm5147_vm0 = vmmov 0   ;;  %v5148_v1 = vmov 0.0   ;;  %vm823_vm1 = vcmask 261120   ;;  %v813_v2 = vld [vmem:[#allocation7] sm:$0xff]  ;;  %v814_v3 = vld [vmem:[#allocation7 + $0x8] sm:$0xff] }
 0x220   : > { %5104 = vsyncadd (%p6682_p8), [#allocation27], 4294967024  ;;  %3923 = vmatprep.subr.bf16.mxu0 %v5146_v0  ;;  %3775 = vmatprep.mubr.msk.f32.mxu0 %vm5147_vm0, %v5148_v1  ;;  %v815_v4 = vld [vmem:[#allocation7 + $0x10] sm:$0xff]  ;;  %v3924_v5 = vpack.c.bf16 %v814_v3, %v813_v2  ;;  %v816_v6 = vld [vmem:[#allocation7 + $0x18] sm:$0xff]  ;;  %v992_v45 = vlaneseq  ;;  %vm1342_vm2 = vcmask 1046528   ;;  %s5149_s19 = smov 32  }
 0x221   : > { %3941 = vmatprep.subr.bf16.mxu1 %v5146_v0  ;;  %3808 = vmatprep.mubr.msk.f32.mxu1 %vm5147_vm0, %v5148_v1  ;;  %v5802_v7 = vld [vmem:[%s5751_s5] sm:$0xff]  ;;  %v5805_v8 = vld [vmem:[%s5751_s5 + $0x8] sm:$0xff]  ;;  %v5808_v9 = vld [vmem:[%s5751_s5 + $0x10] sm:$0xff]  ;;  %v3927_v14 = vpack.c.bf16 %v816_v6, %v815_v4  ;;  %vm1317_vm3 = vcmask 1040384   ;;  %s5150_s27 = smov 96   ;;  %s5151_s17 = smov 64  }
 0x222   : > { %v5811_v10 = vld [vmem:[%s5751_s5 + $0x18] sm:$0xff]  ;;  %v5814_v11 = vld [vmem:[%s5751_s5 + $0x20] sm:$0xff]  ;;  %v824_v12 = vsel %vm823_vm1, %v5802_v7, 0.0  ;;  %v825_v13 = vsel %vm823_vm1, %v5805_v8, 0.0  ;;  %3925 = vmatpush3.bf16.msra.mxu0 %v3924_v5  ;;  %v810_v15 = vld [vmem:[%s5751_s5 + $0x28] sm:$0xff]  ;;  %v827_v19 = vsel %vm823_vm1, %v5808_v9, 0.0 }
 0x223   : > { %v5822_v16 = vld [vmem:[%s5751_s5 + $0x30] sm:$0xff]  ;;  %v5825_v17 = vld [vmem:[%s5751_s5 + $0x38] sm:$0xff]  ;;  %v826_v18 = vadd.f32 %v825_v13, %v824_v12  ;;  %v829_v20 = vsel %vm823_vm1, %v5811_v10, 0.0  ;;  %3926 = vmatprep.subr.bf16.mxu0 %v5146_v0  ;;  %v831_v21 = vsel %vm823_vm1, %v5814_v11, 0.0  ;;  %v833_v22 = vsel %vm823_vm1, %v810_v15, 0.0  ;;  %v817_v24 = vld [vmem:[#allocation8] sm:$0xff] }
 0x224   : > { %v835_v23 = vsel %vm823_vm1, %v5822_v16, 0.0  ;;  %v818_v25 = vld [vmem:[#allocation8 + $0x8] sm:$0xff]  ;;  %v819_v26 = vld [vmem:[#allocation8 + $0x10] sm:$0xff]  ;;  %v837_v28 = vsel %vm823_vm1, %v5825_v17, 0.0  ;;  %v820_v30 = vld [vmem:[#allocation8 + $0x18] sm:$0xff]  ;;  %v993_v46 = vshrl.u32 %v992_v45, 7 }
 0x225   : > { %v828_v27 = vadd.f32 %v827_v19, %v826_v18  ;;  %v3930_v29 = vpack.c.bf16 %v818_v25, %v817_v24  ;;  %v3933_v33 = vpack.c.bf16 %v820_v30, %v819_v26  ;;  %v4402_v30 = vld [vmem:[#allocation13 + $0x88] sm:$0xff]   ;;  %vm1528_vm4 = vcmask 523264   ;;  %s803_s22 = scalar_lea.vmem [#allocation29], %s3464_s25  ;;  %s3573_s29 = sshll.u32 %s6666_s3, 10 }
 0x226   : > { %3928 = vmatpush3.bf16.msra.mxu0 %v3927_v14  ;;  %v5850_v47 = vsub.s32 0, %v993_v46  ;;  %vm1537_vm5 = vcmask 785408   ;;  %s3206_s8 = sshll.u32 %s803_s22, 4  ;;  %s6683_s6 = sld [smem:[#allocation58_spill]]  ;;  %s6532_s8 = int_to_ptr.vmem [resolvable:$true] %s3206_s8 }
 0x227   : > { %v830_v31 = vadd.f32 %v829_v20, %v828_v27  ;;  %3943 = vmatpush3.bf16.msra.mxu1 %v3930_v29  ;;  %3929 = vmatprep.subr.bf16.mxu0 %v5146_v0  ;;  %s3193_s18 = scalar_lea.sflag [#allocation4], %s5745_s4  ;;  %s5021_s25 = scalar_lea.vmem %s6532_s8, 1024 }
 0x228   : > { %3944 = vmatprep.subr.bf16.mxu1 %v5146_v0  ;;  %p5022_p4 = scmp.ne.s32.totalorder %s6532_s8, %s5021_s25  ;;  %p6684_p12 = scmp.ne.s32.totalorder %s6655_s0, 0 }
 0x229   : > { %v832_v32 = vadd.f32 %v831_v21, %v830_v31  ;;  %v4403_v31 = vld [vmem:[#allocation13 + $0x40] sm:$0xff]   ;;  %s5152_s24 = smov [#allocation29]  }
 0x22a   : > { %p5023_p13 = pnand %p5022_p4, %p6684_p12 }
 0x22b   : > { %v834_v34 = vadd.f32 %v833_v22, %v832_v32  ;;  %3946 = vmatpush3.bf16.msra.mxu1 %v3933_v33  ;;  %v4404_v32 = vld [vmem:[#allocation13] sm:$0xff]  }
 0x22c   : > { %s6530_s10 = scalar_lea.hbm %s6683_s6, %s3573_s29  ;;  %p5024_p1 = pneg %p5023_p13 }
 0x22d   : > { %v836_v35 = vadd.f32 %v835_v23, %v834_v34  ;;  %v4406_v34 = vld [vmem:[#allocation13 + $0x8] sm:$0xff]  }
 0x22f   : > { %v838_v36 = vadd.f32 %v837_v28, %v836_v35 }
 0x231   : > { %v839_v37 = vrot.slane %v838_v36, 4 }
 0x233   : > { %v840_v38 = vadd.f32 %v839_v37, %v838_v36 }
 0x235   : > { %v841_v39 = vrot.slane %v840_v38, 2 }
 0x237   : > { %v842_v40 = vadd.f32 %v841_v39, %v840_v38  ;;  %v821_v39 = vld [vmem:[#allocation10] sm:$0x1] }
 0x239   : > { %v843_v41 = vrot.slane %v842_v40, 1 }
 0x23b   : > { %v844_v42 = vadd.f32 %v843_v41, %v842_v40 }
 0x23d   : > { %3776 = vmatmul.mubr.msk.f32.vlgmr.msra.gmra.mrb[0].mxu0 %vm823_vm1, %v844_v42 }
 0x23e   : > { %3931 = vmatpush3.bf16.msra.mxu0 %v3930_v29  ;;  %3786 = vmatprep.mubr.msk.f32.mxu0 %vm5147_vm0, %v5148_v1  ;;  %v4401_v29 = vld [vmem:[#allocation13 + $0x80] sm:$0xff]  }
 0x23f   : > { %3932 = vmatprep.subr.bf16.mxu0 %v5146_v0  ;;  %3811 = vmatprep.subr.bf16.mxu1 %v4401_v29 }
 0x242   : > { %3934 = vmatpush3.bf16.msra.mxu0 %v3933_v33  ;;  %v4405_v33 = vld [vmem:[#allocation13 + $0x48] sm:$0xff]  }
 0x243   : > { %3935 = vmatprep.subr.bf16.mxu0 %v5146_v0 }
 0x310   : > { %v914_v43 = vpop.f32.mrb[0].mxu0 }
 0x311   : > { %v3777_v44 = vpop.f32.mrb[1].mxu0  ;;  %3787 = vmatmul.mubr.msk.f32.vlgmr.msra.gmra.mrb[2].mxu0 %vm823_vm1, %v914_v43  ;;  %v3485_v43 = vld [vmem:[#allocation11] ss:$0 sm:$0xff] }
 0x312   : > { %3937 = vmatpush3.bf16.msra.mxu0 %v3924_v5  ;;  %3797 = vmatprep.mubr.msk.f32.mxu0 %vm5147_vm0, %v5148_v1 }
 0x313   : > { %3938 = vmatprep.subr.bf16.mxu0 %v5146_v0 }
 0x316   : > { %3940 = vmatpush3.bf16.msra.mxu0 %v3927_v14 }
 0x317   : > { %3594 = vmatprep.subr.bf16.mxu0 %v4403_v31  ;;  %v4407_v31 = vld [vmem:[#allocation13 + $0x50] sm:$0xff]  }
 0x3e4   : > { %v987_v48 = vpop.f32.mrb[2].mxu0 }
 0x3e5   : > { %v991_v49 = vmul.f32 0.015625, %v987_v48  ;;  %v3788_v50 = vpop.f32.mrb[3].mxu0 }
 0x3e7   : > { %v995_v51 = vrot.slane %v991_v49, %v5850_v47 }
 0x3e9   : > { %v5854_v52 = vsub.f32 %v5802_v7, %v995_v51  ;;  %v5857_v53 = vsub.f32 %v5805_v8, %v995_v51  ;;  %v5860_v54 = vsub.f32 %v5808_v9, %v995_v51  ;;  %v5863_v55 = vsub.f32 %v5811_v10, %v995_v51 }
 0x3ea   : > { %v5866_v56 = vsub.f32 %v5814_v11, %v995_v51  ;;  %v5874_v60 = vsub.f32 %v810_v15, %v995_v51  ;;  %v1002_v3 = vsub.f32 %v5822_v16, %v995_v51  ;;  %v1003_v7 = vsub.f32 %v5825_v17, %v995_v51 }
 0x3eb   : > { %v1004_v57 = vmul.f32 %v5854_v52, %v5854_v52  ;;  %v1005_v58 = vmul.f32 %v5857_v53, %v5857_v53  ;;  %v1006_v59 = vmul.f32 %v5860_v54, %v5860_v54  ;;  %v1007_v61 = vmul.f32 %v5863_v55, %v5863_v55 }
 0x3ec   : > { %v1008_v4 = vmul.f32 %v5866_v56, %v5866_v56  ;;  %v1009_v8 = vmul.f32 %v5874_v60, %v5874_v60  ;;  %v1010_v11 = vmul.f32 %v1002_v3, %v1002_v3  ;;  %v1011_v14 = vmul.f32 %v1003_v7, %v1003_v7 }
 0x3ed   : > { %v1012_v62 = vsel %vm823_vm1, %v1004_v57, 0.0  ;;  %v1013_v63 = vsel %vm823_vm1, %v1005_v58, 0.0  ;;  %v1015_v5 = vsel %vm823_vm1, %v1006_v59, 0.0  ;;  %v1017_v9 = vsel %vm823_vm1, %v1007_v61, 0.0 }
 0x3ee   : > { %v1014_v2 = vadd.f32 %v1013_v63, %v1012_v62  ;;  %v1019_v12 = vsel %vm823_vm1, %v1008_v4, 0.0  ;;  %v1021_v15 = vsel %vm823_vm1, %v1009_v8, 0.0  ;;  %v1023_v18 = vsel %vm823_vm1, %v1010_v11, 0.0 }
 0x3ef   : > { %v1025_v20 = vsel %vm823_vm1, %v1011_v14, 0.0 }
 0x3f0   : > { %v1016_v6 = vadd.f32 %v1015_v5, %v1014_v2 }
 0x3f2   : > { %v1018_v10 = vadd.f32 %v1017_v9, %v1016_v6 }
 0x3f4   : > { %v1020_v13 = vadd.f32 %v1019_v12, %v1018_v10 }
 0x3f6   : > { %v1022_v16 = vadd.f32 %v1021_v15, %v1020_v13 }
 0x3f8   : > { %v1024_v19 = vadd.f32 %v1023_v18, %v1022_v16 }
 0x3fa   : > { %v1026_v17 = vadd.f32 %v1025_v20, %v1024_v19 }
 0x3fc   : > { %v1027_v21 = vrot.slane %v1026_v17, 4 }
 0x3fe   : > { %v1028_v22 = vadd.f32 %v1027_v21, %v1026_v17 }
 0x400   : > { %v1029_v23 = vrot.slane %v1028_v22, 2 }
 0x402   : > { %v1030_v24 = vadd.f32 %v1029_v23, %v1028_v22 }
 0x404   : > { %v1031_v25 = vrot.slane %v1030_v24, 1 }
 0x406   : > { %v1032_v26 = vadd.f32 %v1031_v25, %v1030_v24 }
 0x408   : > { %3798 = vmatmul.mubr.msk.f32.vlgmr.msra.gmra.mrb[4].mxu0 %vm823_vm1, %v1032_v26 }
 0x409   : > { %3595 = vmatpush3.bf16.msra.mxu0 %v4404_v32  ;;  %v4408_v32 = vld [vmem:[#allocation13 + $0x10] sm:$0xff]  }
 0x40a   : > { %3596 = vmatprep.subr.bf16.mxu0 %v4405_v33  ;;  %v4409_v33 = vld [vmem:[#allocation13 + $0x58] sm:$0xff]  }
 0x40d   : > { %3597 = vmatpush3.bf16.msra.mxu0 %v4406_v34  ;;  %v4410_v34 = vld [vmem:[#allocation13 + $0x18] sm:$0xff]  }
 0x40e   : > { %3598 = vmatprep.subr.bf16.mxu0 %v4407_v31 }
 0x411   : > { %3599 = vmatpush3.bf16.msra.mxu0 %v4408_v32  ;;  %v4421_v32 = vld [vmem:[#allocation16 + $0x10] sm:$0xff]  }
 0x412   : > { %3600 = vmatprep.subr.bf16.mxu0 %v4409_v33 }
 0x415   : > { %3601 = vmatpush3.bf16.msra.mxu0 %v4410_v34 }
 0x4db   : > { %v1102_v27 = vpop.f32.mrb[4].mxu0 }
 0x4dc   : > { %v3799_v28 = vpop.f32.mrb[5].mxu0  ;;  %3809 = vmatmul.mubr.msk.f32.vlgmr.msra.gmra.mrb[0].mxu1 %vm823_vm1, %v1102_v27 }
 0x4dd   : > { %3812 = vmatpush3.bf16.msra.mxu1 %v4401_v29 }
 0x4de   : > { %3813 = vmatprep.subr.bf16.mxu1 %v4402_v30 }
 0x4e1   : > { %3814 = vmatpush3.bf16.msra.mxu1 %v4402_v30 }
 0x4e2   : > { %3823 = vmatprep.subr.bf16.mxu1 %v5148_v1 }
 0x5af   : > { %v1175_v35 = vpop.f32.mrb[0].mxu1 }
 0x5b0   : > { %v1179_v36 = vmul.f32 0.015625, %v1175_v35  ;;  %v3810_v37 = vpop.f32.mrb[1].mxu1 }
 0x5b2   : > { %v1180_v38 = vadd.f32 1e-06, %v1179_v36 }
 0x5b4   : > { %4461 = vrsqrt.f32 %v1180_v38 }
 0x5be   : > { %v4462_v40 = vpop.eup %4461 }
 0x5bf   : > { %v1182_v41 = vmul.f32 %v4462_v40, %v821_v39 }
 0x5c1   : > { %v1186_v42 = vrot.slane %v1182_v41, %v5850_v47 }
 0x5c3   : > { %v1188_v44 = vmul.f32 %v1186_v42, %v5857_v53  ;;  %v1189_v45 = vmul.f32 %v1186_v42, %v5860_v54  ;;  %v1187_v46 = vmul.f32 %v1186_v42, %v5854_v52  ;;  %v1190_v48 = vmul.f32 %v1186_v42, %v5863_v55 }
 0x5c4   : > { %v1191_v49 = vmul.f32 %v1186_v42, %v5866_v56  ;;  %v1192_v50 = vmul.f32 %v1186_v42, %v5874_v60  ;;  %v1193_v51 = vmul.f32 %v1186_v42, %v1002_v3  ;;  %v1194_v57 = vmul.f32 %v1186_v42, %v1003_v7 }
 0x5c5   : > { %v5902_v58 = vadd.f32 %v3485_v43, %v1188_v44  ;;  %v5904_v59 = vadd.f32 %v3485_v43, %v1189_v45  ;;  %v5906_v61 = vadd.f32 %v3485_v43, %v1187_v46  ;;  %v5908_v62 = vadd.f32 %v3485_v43, %v1190_v48  ;;  %v4412_v44 = vld [vmem:[#allocation13 + $0x20] sm:$0xff]  }
 0x5c6   : > { %v5910_v53 = vadd.f32 %v3485_v43, %v1191_v49  ;;  %v5912_v54 = vadd.f32 %v3485_v43, %v1192_v50  ;;  %v5914_v52 = vadd.f32 %v3485_v43, %v1193_v51  ;;  %v5916_v55 = vadd.f32 %v3485_v43, %v1194_v57  ;;  %v4411_v43 = vld [vmem:[#allocation13 + $0x60] sm:$0xff]  }
 0x5c7   : > { %v1210_v56 = vsub.f32 0.0, %v5902_v58  ;;  %v1211_v60 = vsub.f32 0.0, %v5904_v59  ;;  %v1209_v63 = vsub.f32 0.0, %v5906_v61  ;;  %v1212_v2 = vsub.f32 0.0, %v5908_v62  ;;  %3602 = vmatprep.subr.bf16.mxu0 %v4411_v43 }
 0x5c8   : > { %v1213_v3 = vsub.f32 0.0, %v5910_v53  ;;  %v1214_v4 = vsub.f32 0.0, %v5912_v54  ;;  %v1215_v5 = vsub.f32 0.0, %v5914_v52  ;;  %v1216_v10 = vsub.f32 0.0, %v5916_v55  ;;  %3603 = vmatpush3.bf16.msra.mxu0 %v4412_v44 }
 0x5c9   : > { %v1219_v6 = vmul.f32 1.442695, %v1210_v56  ;;  %v1221_v7 = vmul.f32 1.442695, %v1211_v60  ;;  %v1217_v8 = vmul.f32 1.442695, %v1209_v63 }
 0x5ca   : > { %v1223_v9 = vmul.f32 1.442695, %v1212_v2  ;;  %v1225_v11 = vmul.f32 1.442695, %v1213_v3  ;;  %v1227_v12 = vmul.f32 1.442695, %v1214_v4 }
 0x5cb   : > { %4463 = vpow2.f32 %v1219_v6  ;;  %v1229_v13 = vmul.f32 1.442695, %v1215_v5  ;;  %v1231_v14 = vmul.f32 1.442695, %v1216_v10  ;;  %v4413_v60 = vld [vmem:[#allocation13 + $0x68] sm:$0xff]  }
 0x5cc   : > { %4465 = vpow2.f32 %v1221_v7  ;;  %v4414_v5 = vld [vmem:[#allocation13 + $0x28] sm:$0xff]   ;;  %3604 = vmatprep.subr.bf16.mxu0 %v4413_v60 }
 0x5cd   : > { %4467 = vpow2.f32 %v1217_v8  ;;  %3605 = vmatpush3.bf16.msra.mxu0 %v4414_v5 }
 0x5ce   : > { %4469 = vpow2.f32 %v1223_v9 }
 0x5cf   : > { %4471 = vpow2.f32 %v1225_v11  ;;  %v4415_v11 = vld [vmem:[#allocation16] sm:$0xff]  }
 0x5d0   : > { %4473 = vpow2.f32 %v1227_v12 }
 0x5d1   : > { %4475 = vpow2.f32 %v1229_v13 }
 0x5d2   : > { %4477 = vpow2.f32 %v1231_v14  ;;  %v1326_v14 = vrot.slane %v5148_v1, 1 }
 0x5d5   : > { %v4464_v15 = vpop.eup %4463 }
 0x5d6   : > { %v4466_v16 = vpop.eup %4465  ;;  %v1234_v18 = vadd.f32 1.0, %v4464_v15 }
 0x5d7   : > { %v4468_v19 = vpop.eup %4467  ;;  %v1235_v20 = vadd.f32 1.0, %v4466_v16 }
 0x5d8   : > { %v4470_v17 = vpop.eup %4469  ;;  %4479 = vrcp.f32 %v1234_v18  ;;  %v1233_v21 = vadd.f32 1.0, %v4468_v19  ;;  %v4416_v19 = vld [vmem:[#allocation13 + $0x70] sm:$0xff]  }
 0x5d9   : > { %v4472_v22 = vpop.eup %4471  ;;  %4481 = vrcp.f32 %v1235_v20  ;;  %v1236_v23 = vadd.f32 1.0, %v4470_v17  ;;  %v4417_v20 = vld [vmem:[#allocation13 + $0x30] sm:$0xff]   ;;  %3606 = vmatprep.subr.bf16.mxu0 %v4416_v19 }
 0x5da   : > { %v4474_v24 = vpop.eup %4473  ;;  %4483 = vrcp.f32 %v1233_v21  ;;  %v1237_v25 = vadd.f32 1.0, %v4472_v22  ;;  %3607 = vmatpush3.bf16.msra.mxu0 %v4417_v20 }
 0x5db   : > { %v4476_v26 = vpop.eup %4475  ;;  %4485 = vrcp.f32 %v1236_v23  ;;  %v1238_v27 = vadd.f32 1.0, %v4474_v24  ;;  %v4418_v23 = vld [vmem:[#allocation16 + $0x8] sm:$0xff]   ;;  %v6009_v24 = vsel %vm1342_vm2, %v1326_v14, 0.0 }
 0x5dc   : > { %v4478_v28 = vpop.eup %4477  ;;  %4487 = vrcp.f32 %v1237_v25  ;;  %v1239_v29 = vadd.f32 1.0, %v4476_v26 }
 0x5dd   : > { %4489 = vrcp.f32 %v1238_v27  ;;  %v1240_v30 = vadd.f32 1.0, %v4478_v28  ;;  %v4419_v27 = vld [vmem:[#allocation13 + $0x78] sm:$0xff]  }
 0x5de   : > { %4491 = vrcp.f32 %v1239_v29  ;;  %v4420_v28 = vld [vmem:[#allocation13 + $0x38] sm:$0xff]   ;;  %3608 = vmatprep.subr.bf16.mxu0 %v4419_v27 }
 0x5df   : > { %4493 = vrcp.f32 %v1240_v30  ;;  %v6019_v29 = vld [vmem:[%s689_s21] sm:$0x1]  ;;  %3609 = vmatpush3.bf16.msra.mxu0 %v4420_v28 }
 0x5e0   : > { %v1840_v34 = vsub.f32 0.0, %v6019_v29  ;;  %3965 = vmatprep.subr.bf16.mxu0 %v5146_v0 }
 0x5e2   : > { %v4480_v35 = vpop.eup %4479 }
 0x5e3   : > { %v4482_v36 = vpop.eup %4481  ;;  %v5927_v37 = vmul.f32 %v4480_v35, %v5902_v58 }
 0x5e4   : > { %v4484_v38 = vpop.eup %4483  ;;  %v5930_v39 = vmul.f32 %v4482_v36, %v5904_v59 }
 0x5e5   : > { %v4486_v40 = vpop.eup %4485  ;;  %v5933_v41 = vmul.f32 %v4484_v38, %v5906_v61  ;;  %v1328_v42 = vrot.slane %v5927_v37, 1  ;;  %v1303_v4 = vrot.slane %v5927_v37, 7 }
 0x5e6   : > { %v4488_v45 = vpop.eup %4487  ;;  %v4231_v46 = vpack.i.bf16 %v5930_v39, %v5927_v37  ;;  %v1329_v48 = vrot.slane %v5930_v39, 1  ;;  %v5940_v49 = vmul.f32 %v4486_v40, %v5908_v62  ;;  %v1304_v10 = vrot.slane %v5930_v39, 7  ;;  %v4422_v40 = vld [vmem:[#allocation16 + $0x18] sm:$0xff]  }
 0x5e7   : > { %v4490_v50 = vpop.eup %4489  ;;  %v4221_v51 = vpack.i.bf16 %v5933_v41, %v5148_v1  ;;  %v5945_v57 = vsel %vm1342_vm2, %v1328_v42, 0.0  ;;  %v5948_v58 = vmul.f32 %v4488_v45, %v5910_v53  ;;  %v5999_v17 = vsel %vm1317_vm3, 0.0, %v1303_v4 }
 0x5e8   : > { %v4492_v59 = vpop.eup %4491  ;;  %4232 = vrot.lane.b32.xlu1 %v4231_v46, %s5149_s19  ;;  %v5952_v61 = vsel %vm1342_vm2, %v1329_v48, 0.0  ;;  %v1330_v62 = vrot.slane %v5940_v49, 1  ;;  %v5956_v56 = vmul.f32 %v4490_v50, %v5912_v54  ;;  %v6002_v21 = vsel %vm1317_vm3, 0.0, %v1304_v10 }
 0x5e9   : > { %v4494_v63 = vpop.eup %4493  ;;  %4222 = vrot.lane.b32.xlu0 %v4221_v51, %s5149_s19  ;;  %v1572_v53 = vpack.c.bf16 %v5952_v61, %v5945_v57  ;;  %v1331_v2 = vrot.slane %v5948_v58, 1  ;;  %v5963_v3 = vmul.f32 %v4492_v59, %v5914_v52  ;;  %v4241_v54 = vpack.i.bf16 %v5948_v58, %v5940_v49 }
 0x5ea   : > { %v5969_v6 = vsel %vm1342_vm2, %v1330_v62, 0.0  ;;  %v1332_v7 = vrot.slane %v5956_v56, 1  ;;  %v5973_v8 = vmul.f32 %v4494_v63, %v5916_v55  ;;  %v1327_v22 = vrot.slane %v5933_v41, 1 }
 0x5eb   : > { %3815 = vmatprep.mubr.msk.bf16.mxu1 %vm823_vm1, %v1572_v53  ;;  %v5977_v52 = vsel %vm1342_vm2, %v1331_v2, 0.0  ;;  %v1333_v9 = vrot.slane %v5963_v3, 1  ;;  %v4251_v18 = vpack.i.bf16 %v5963_v3, %v5956_v56  ;;  %v4261_v26 = vpack.i.bf16 %v6002_v21, %v5999_v17 }
 0x5ec   : > { %4242 = vrot.lane.b32.xlu1 %v4241_v54, %s5149_s19  ;;  %v1575_v12 = vpack.c.bf16 %v5977_v52, %v5969_v6  ;;  %v5985_v13 = vsel %vm1342_vm2, %v1332_v7, 0.0  ;;  %v1355_v15 = vrot.slane %v5973_v8, 1  ;;  %v1344_v30 = vsel %vm1342_vm2, %v1327_v22, 0.0 }
 0x5ed   : > { %4227 = vrot.lane.b32.xlu0 %v4231_v46, %s5150_s27  ;;  %v5989_v55 = vsel %vm1342_vm2, %v1333_v9, 0.0  ;;  %v1302_v31 = vrot.slane %v5933_v41, 7  ;;  %v4266_v35 = vpack.i.bf16 %v1344_v30, %v6009_v24  ;;  %v4256_v36 = vpack.i.bf16 %v5945_v57, %v1344_v30 }
 0x5ee   : > { %3816 = vmatmul.mubr.msk.bf16.vlgmr.msra.gmra.mrb[4].mxu1 %vm823_vm1, %v1575_v12  ;;  %v1578_v16 = vpack.c.bf16 %v5989_v55, %v5985_v13  ;;  %v6012_v25 = vsel %vm1342_vm2, %v1355_v15, 0.0  ;;  %v1841_v42 = vmul.f32 1.442695, %v1840_v34  ;;  %v1305_v43 = vrot.slane %v5940_v49, 7 }
 0x5ef   : > { %3824 = vmatpush3.bf16.msra.mxu1 %v4415_v11  ;;  %v1581_v33 = vpack.c.bf16 %v6009_v24, %v6012_v25  ;;  %v6033_v38 = vsel %vm1317_vm3, 0.0, %v1302_v31  ;;  %v1306_v44 = vrot.slane %v5948_v58, 7  ;;  %v4276_v46 = vpack.i.bf16 %v5969_v6, %v5952_v61 }
 0x5f0   : > { %3819 = vmatprep.mubr.msk.bf16.mxu1 %vm823_vm1, %v1578_v16  ;;  %4252 = vrot.lane.b32.xlu1 %v4251_v18, %s5149_s19  ;;  %4495 = vpow2.f32 %v1841_v42  ;;  %v4271_v45 = vpack.i.bf16 %v5999_v17, %v6033_v38  ;;  %v6049_v48 = vsel %vm1317_vm3, 0.0, %v1305_v43  ;;  %v4286_v51 = vpack.i.bf16 %v5952_v61, %v5945_v57 }
 0x5f1   : > { %4237 = vrot.lane.b32.xlu0 %v4241_v54, %s5150_s27  ;;  %3825 = vmatprep.subr.bf16.mxu1 %v5148_v1  ;;  %v6052_v50 = vsel %vm1317_vm3, 0.0, %v1306_v44  ;;  %v1307_v62 = vrot.slane %v5956_v56, 7  ;;  %v1308_v60 = vrot.slane %v5963_v3, 7  ;;  %v4291_v63 = vpack.i.bf16 %v6049_v48, %v6002_v21 }
 0x5f2   : > { %v4281_v59 = vpack.i.bf16 %v6052_v50, %v6049_v48  ;;  %v4296_v2 = vpack.i.bf16 %v5985_v13, %v5977_v52  ;;  %v4306_v5 = vpack.i.bf16 %v5977_v52, %v5969_v6  ;;  %v1301_v7 = vrot.slane %v5148_v1, 7 }
 0x5f3   : > { %3826 = vmatpush3.bf16.msra.mxu1 %v4418_v23  ;;  %v6070_v57 = vsel %vm1317_vm3, 0.0, %v1307_v62  ;;  %v6073_v61 = vsel %vm1317_vm3, 0.0, %v1308_v60  ;;  %v1352_v9 = vrot.slane %v5973_v8, 7  ;;  %v4316_v11 = vpack.i.bf16 %v6012_v25, %v5989_v55 }
 0x5f4   : > { %4262 = vrot.lane.b32.xlu1 %v4261_v26, %s5151_s17  ;;  %3827 = vmatprep.subr.bf16.mxu1 %v5148_v1  ;;  %v4301_v54 = vpack.i.bf16 %v6073_v61, %v6070_v57  ;;  %v4311_v10 = vpack.i.bf16 %v6070_v57, %v6052_v50  ;;  %v6090_v6 = vsel %vm1317_vm3, 0.0, %v1301_v7  ;;  %v4331_v12 = vpack.i.bf16 %v5989_v55, %v5985_v13 }
 0x5f5   : > { %4247 = vrot.lane.b32.xlu0 %v4251_v18, %s5150_s27  ;;  %v1354_v52 = vsel %vm1317_vm3, 0.0, %v1352_v9  ;;  %v4326_v19 = vpack.i.bf16 %v5148_v1, %v5973_v8 }
 0x5f6   : > { %3820 = vmatmul.mubr.msk.bf16.gmra.mrb[8].mxu1 %vm823_vm1, %v1581_v33  ;;  %v4321_v14 = vpack.i.bf16 %v6090_v6, %v1354_v52  ;;  %v4336_v18 = vpack.i.bf16 %v1354_v52, %v6073_v61 }
 0x5f7   : > { %3828 = vmatpush3.bf16.msra.mxu1 %v4421_v32  ;;  %3831 = vmatprep.mubr.msk.bf16.mxu1 %vm5147_vm0, %v5148_v1 }
 0x5f8   : > { %4267 = vrot.lane.b32.xlu1 %v4266_v35, %s5151_s17  ;;  %3829 = vmatprep.subr.bf16.mxu1 %v5148_v1 }
 0x5f9   : > { %4257 = vrot.lane.b32.xlu0 %v4256_v36, %s5149_s19 }
 0x5fa   : > { %v4496_v53 = vpop.eup %4495 }
 0x5fb   : > { %3830 = vmatpush3.bf16.msra.mxu1 %v4422_v40  ;;  %v1843_v4 = vadd.f32 1.0, %v4496_v53 }
 0x5fc   : > { %4272 = vrot.lane.b32.xlu1 %v4271_v45, %s5150_s27  ;;  %3947 = vmatprep.subr.bf16.mxu1 %v5146_v0 }
 0x5fd   : > { %4277 = vrot.lane.b32.xlu0 %v4276_v46, %s5149_s19  ;;  %4497 = vrcp.f32 %v1843_v4 }
 0x600   : > { %4287 = vrot.lane.b32.xlu1 %v4286_v51, %s5151_s17 }
 0x601   : > { %4282 = vrot.lane.b32.xlu0 %v4281_v59, %s5151_s17 }
 0x604   : > { %4292 = vrot.lane.b32.xlu1 %v4291_v63, %s5150_s27 }
 0x605   : > { %4297 = vrot.lane.b32.xlu0 %v4296_v2, %s5149_s19 }
 0x607   : > { %v4498_v15 = vpop.eup %4497 }
 0x608   : > { %4307 = vrot.lane.b32.xlu1 %v4306_v5, %s5151_s17  ;;  %v1845_v16 = vmul.f32 %v4498_v15, %v6019_v29 }
 0x609   : > { %4302 = vrot.lane.b32.xlu0 %v4301_v54, %s5151_s17 }
 0x60a   : > { %v1846_v20 = vpack.c.bf16 %v1845_v16, %v1845_v16 }
 0x60c   : > { %4312 = vrot.lane.b32.xlu1 %v4311_v10, %s5150_s27  ;;  %3832 = vmatmul.mubr.msk.bf16.vlgmr.msra.gmra.mrb[12].mxu1 %vm1528_vm4, %v1846_v20 }
 0x60d   : > { %4317 = vrot.lane.b32.xlu0 %v4316_v11, %s5149_s19  ;;  %3851 = vmatprep.mubr.msk.f32.mxu1 %vm5147_vm0, %v5148_v1 }
 0x610   : > { %4332 = vrot.lane.b32.xlu1 %v4331_v12, %s5151_s17 }
 0x611   : > { %4322 = vrot.lane.b32.xlu0 %v4321_v14, %s5151_s17 }
 0x614   : > { %4337 = vrot.lane.b32.xlu1 %v4336_v18, %s5150_s27 }
 0x615   : > { %4327 = vrot.lane.b32.xlu0 %v4326_v19, %s5150_s27 }
 0x65a   : > { %v4233_v13 = vpop.permute.xlu1 %4232 }
 0x65b   : > { %v4223_v55 = vpop.permute.xlu0 %4222  ;;  %v4235_v52 = vunpack.i.h.bf16 %v4233_v13  ;;  %v4234_v12 = vunpack.i.l.bf16 %v4233_v13 }
 0x65c   : > { %v4224_v29 = vunpack.i.l.bf16 %v4223_v55  ;;  %v4225_v30 = vunpack.i.h.bf16 %v4223_v55 }
 0x65d   : > { %v1523_v13 = vsel %vm823_vm1, %v6002_v21, %v4235_v52 }
 0x65e   : > { %v6108_v22 = vpop.permute.xlu1 %4242  ;;  %v1520_v34 = vsel %vm823_vm1, %v6090_v6, %v4224_v29  ;;  %v1521_v42 = vsel %vm823_vm1, %v6033_v38, %v4225_v30 }
 0x65f   : > { %v4228_v23 = vpop.permute.xlu0 %4227 }
 0x660   : > { %v4230_v43 = vunpack.i.h.bf16 %v4228_v23  ;;  %v4229_v46 = vunpack.i.l.bf16 %v4228_v23 }
 0x662   : > { %v6110_v25 = vpop.permute.xlu1 %4252 }
 0x663   : > { %v4238_v26 = vpop.permute.xlu0 %4237 }
 0x664   : > { %v4240_v23 = vunpack.i.h.bf16 %v4238_v26 }
 0x666   : > { %v4263_v27 = vpop.permute.xlu1 %4262 }
 0x667   : > { %v6112_v28 = vpop.permute.xlu0 %4247  ;;  %v4265_v44 = vunpack.i.h.bf16 %v4263_v27  ;;  %v4264_v45 = vunpack.i.l.bf16 %v4263_v27  ;;  %v4239_v27 = vunpack.i.l.bf16 %v4238_v26 }
 0x66a   : > { %v4268_v31 = vpop.permute.xlu1 %4267 }
 0x66b   : > { %v4269_v32 = vunpack.i.l.bf16 %v4268_v31  ;;  %v4258_v33 = vpop.permute.xlu0 %4257  ;;  %v4270_v35 = vunpack.i.h.bf16 %v4268_v31  ;;  %v1522_v31 = vsel %vm823_vm1, %v5999_v17, %v4234_v12 }
 0x66c   : > { %v4260_v36 = vunpack.i.h.bf16 %v4258_v33  ;;  %v4259_v40 = vunpack.i.l.bf16 %v4258_v33 }
 0x66d   : > { %v1529_v51 = vsel %vm1528_vm4, %v1520_v34, %v4269_v32  ;;  %v1530_v5 = vsel %vm1528_vm4, %v1521_v42, %v4270_v35 }
 0x66e   : > { %v1547_v59 = vsel %vm823_vm1, %v5927_v37, %v4260_v36  ;;  %v1546_v62 = vsel %vm823_vm1, %v5933_v41, %v4259_v40  ;;  %v4273_v60 = vpop.permute.xlu1 %4272 }
 0x66f   : > { %v4278_v63 = vpop.permute.xlu0 %4277  ;;  %v4275_v53 = vunpack.i.h.bf16 %v4273_v60  ;;  %v4274_v2 = vunpack.i.l.bf16 %v4273_v60  ;;  %v1554_v4 = vsel %vm1528_vm4, %v1546_v62, %v4264_v45  ;;  %v1555_v38 = vsel %vm1528_vm4, %v1547_v59, %v4265_v44 }
 0x670   : > { %v4280_v54 = vunpack.i.h.bf16 %v4278_v63  ;;  %v1562_v7 = vsel %vm1537_vm5, %v1554_v4, %v4229_v46  ;;  %v1563_v9 = vsel %vm1537_vm5, %v1555_v38, %v4230_v43  ;;  %v4279_v10 = vunpack.i.l.bf16 %v4278_v63 }
 0x671   : > { %v1538_v37 = vsel %vm1537_vm5, %v1529_v51, %v4274_v2  ;;  %v1539_v41 = vsel %vm1537_vm5, %v1530_v5, %v4275_v53  ;;  %v1571_v11 = vpack.c.bf16 %v1563_v9, %v1562_v7  ;;  %v4245_v46 = vunpack.i.h.bf16 %v6108_v22 }
 0x672   : > { %v1570_v14 = vpack.c.bf16 %v1539_v41, %v1538_v37  ;;  %v4288_v15 = vpop.permute.xlu1 %4287  ;;  %v1549_v29 = vsel %vm823_vm1, %v5940_v49, %v4280_v54  ;;  %v1548_v30 = vsel %vm823_vm1, %v5930_v39, %v4279_v10  ;;  %v4244_v51 = vunpack.i.l.bf16 %v6108_v22 }
 0x673   : > { %v4283_v16 = vpop.permute.xlu0 %4282  ;;  %1741 = vmatprep.mubr.bf16.mxu0 %v1571_v11  ;;  %v4290_v20 = vunpack.i.h.bf16 %v4288_v15  ;;  %v4289_v55 = vunpack.i.l.bf16 %v4288_v15  ;;  %v4250_v38 = vunpack.i.h.bf16 %v6112_v28  ;;  %v4249_v5 = vunpack.i.l.bf16 %v6112_v28 }
 0x674   : > { %v4285_v18 = vunpack.i.h.bf16 %v4283_v16  ;;  %v4284_v19 = vunpack.i.l.bf16 %v4283_v16  ;;  %1742 = vmatmul.mubr.bf16.vlgmr.msra.gmra.mrb[8].mxu0 %v1570_v14  ;;  %v1525_v22 = vsel %vm823_vm1, %v6052_v50, %v4245_v46  ;;  %v1524_v9 = vsel %vm823_vm1, %v6049_v48, %v4244_v51 }
 0x675   : > { %v1532_v39 = vsel %vm1528_vm4, %v1523_v13, %v4290_v20  ;;  %v1531_v42 = vsel %vm1528_vm4, %v1522_v31, %v4289_v55  ;;  %v4255_v16 = vunpack.i.h.bf16 %v6110_v25 }
 0x676   : > { %v1556_v32 = vsel %vm1528_vm4, %v1548_v30, %v4284_v19  ;;  %v1557_v33 = vsel %vm1528_vm4, %v1549_v29, %v4285_v18  ;;  %v4293_v34 = vpop.permute.xlu1 %4292  ;;  %v4254_v18 = vunpack.i.l.bf16 %v6110_v25 }
 0x677   : > { %v4298_v35 = vpop.permute.xlu0 %4297  ;;  %v4295_v36 = vunpack.i.h.bf16 %v4293_v34  ;;  %v4294_v26 = vunpack.i.l.bf16 %v4293_v34  ;;  %v1564_v40 = vsel %vm1537_vm5, %v1556_v32, %v4239_v27  ;;  %v1565_v49 = vsel %vm1537_vm5, %v1557_v33, %v4240_v23 }
 0x678   : > { %v1574_v21 = vpack.c.bf16 %v1565_v49, %v1564_v40  ;;  %v4300_v43 = vunpack.i.h.bf16 %v4298_v35  ;;  %v4299_v44 = vunpack.i.l.bf16 %v4298_v35  ;;  %v1527_v32 = vsel %vm823_vm1, %v6073_v61, %v4255_v16 }
 0x679   : > { %v1540_v17 = vsel %vm1537_vm5, %v1531_v42, %v4294_v26  ;;  %v1541_v45 = vsel %vm1537_vm5, %v1532_v39, %v4295_v36  ;;  %v1526_v33 = vsel %vm823_vm1, %v6070_v57, %v4254_v18 }
 0x67a   : > { %1749 = vmatprep.mubr.bf16.mxu0 %v1574_v21  ;;  %v4308_v59 = vpop.permute.xlu1 %4307  ;;  %v1573_v62 = vpack.c.bf16 %v1541_v45, %v1540_v17  ;;  %v1551_v54 = vsel %vm823_vm1, %v5956_v56, %v4300_v43  ;;  %v1550_v7 = vsel %vm823_vm1, %v5948_v58, %v4299_v44 }
 0x67b   : > { %v4303_v60 = vpop.permute.xlu0 %4302  ;;  %v4310_v2 = vunpack.i.h.bf16 %v4308_v59  ;;  %v4309_v4 = vunpack.i.l.bf16 %v4308_v59 }
 0x67c   : > { %v4305_v63 = vunpack.i.h.bf16 %v4303_v60  ;;  %v4304_v53 = vunpack.i.l.bf16 %v4303_v60  ;;  %1750 = vmatmul.mubr.bf16.gmra.mrb[12].mxu0 %v1573_v62 }
 0x67d   : > { %v1534_v58 = vsel %vm1528_vm4, %v1525_v22, %v4310_v2  ;;  %v1533_v14 = vsel %vm1528_vm4, %v1524_v9, %v4309_v4  ;;  %v1935_v22 = vld [vmem:[#allocation17 + $0x8] sm:$0xff]  ;;  %v1936_v9 = vld [vmem:[#allocation17 + $0x10] sm:$0xff] }
 0x67e   : > { %v1558_v10 = vsel %vm1528_vm4, %v1550_v7, %v4304_v53  ;;  %v1559_v37 = vsel %vm1528_vm4, %v1551_v54, %v4305_v63  ;;  %v4313_v41 = vpop.permute.xlu1 %4312  ;;  %v1934_v7 = vld [vmem:[#allocation17] sm:$0xff] }
 0x67f   : > { %v4318_v11 = vpop.permute.xlu0 %4317  ;;  %v4315_v52 = vunpack.i.h.bf16 %v4313_v41  ;;  %v4314_v28 = vunpack.i.l.bf16 %v4313_v41  ;;  %v1566_v12 = vsel %vm1537_vm5, %v1558_v10, %v4249_v5  ;;  %v1567_v56 = vsel %vm1537_vm5, %v1559_v37, %v4250_v38  ;;  %v1937_v37 = vld [vmem:[#allocation17 + $0x18] sm:$0xff] }
 0x680   : > { %v1577_v50 = vpack.c.bf16 %v1567_v56, %v1566_v12  ;;  %v4320_v55 = vunpack.i.h.bf16 %v4318_v11  ;;  %v4319_v23 = vunpack.i.l.bf16 %v4318_v11  ;;  %v3948_v10 = vpack.c.bf16 %v1935_v22, %v1934_v7  ;;  %v1938_v11 = vld [vmem:[#allocation17 + $0x20] sm:$0xff]  ;;  %v1940_v12 = vld [vmem:[#allocation17 + $0x30] sm:$0xff]  ;;  %v1941_v56 = vld [vmem:[#allocation17 + $0x38] sm:$0xff] }
 0x681   : > { %v1542_v15 = vsel %vm1537_vm5, %v1533_v14, %v4314_v28  ;;  %v1543_v48 = vsel %vm1537_vm5, %v1534_v58, %v4315_v52  ;;  %v3951_v41 = vpack.c.bf16 %v1937_v37, %v1936_v9  ;;  %v1939_v52 = vld [vmem:[#allocation17 + $0x28] sm:$0xff]  ;;  %v3957_v58 = vpack.c.bf16 %v1941_v56, %v1940_v12 }
 0x682   : > { %1757 = vmatprep.mubr.bf16.mxu0 %v1577_v50  ;;  %v4333_v19 = vpop.permute.xlu1 %4332  ;;  %v1576_v20 = vpack.c.bf16 %v1543_v48, %v1542_v15  ;;  %v1553_v25 = vsel %vm823_vm1, %v5973_v8, %v4320_v55  ;;  %v1552_v35 = vsel %vm823_vm1, %v5963_v3, %v4319_v23  ;;  %3949 = vmatpush3.bf16.msra.mxu1 %v3948_v10  ;;  %v3486_v50 = vld [vmem:[#allocation14] ss:$0 sm:$0xff] }
 0x683   : > { %v4323_v27 = vpop.permute.xlu0 %4322  ;;  %v4335_v29 = vunpack.i.h.bf16 %v4333_v19  ;;  %v4334_v30 = vunpack.i.l.bf16 %v4333_v19  ;;  %3967 = vmatpush3.bf16.msra.mxu0 %v3948_v10  ;;  %3950 = vmatprep.subr.bf16.mxu1 %v5146_v0  ;;  %v3954_v28 = vpack.c.bf16 %v1939_v52, %v1938_v11 }
 0x684   : > { %1758 = vmatmul.mubr.bf16.gmra.mrb[16].mxu0 %v1576_v20  ;;  %v4325_v13 = vunpack.i.h.bf16 %v4323_v27  ;;  %v4324_v31 = vunpack.i.l.bf16 %v4323_v27  ;;  %3968 = vmatprep.subr.bf16.mxu0 %v5146_v0 }
 0x685   : > { %v1536_v49 = vsel %vm1528_vm4, %v1527_v32, %v4335_v29  ;;  %v1535_v39 = vsel %vm1528_vm4, %v1526_v33, %v4334_v30 }
 0x686   : > { %v4338_v34 = vpop.permute.xlu1 %4337  ;;  %v1560_v61 = vsel %vm1528_vm4, %v1552_v35, %v4324_v31  ;;  %v1561_v57 = vsel %vm1528_vm4, %v1553_v25, %v4325_v13  ;;  %3952 = vmatpush3.bf16.msra.mxu1 %v3951_v41 }
 0x687   : > { %v4328_v36 = vpop.permute.xlu0 %4327  ;;  %v4340_v26 = vunpack.i.h.bf16 %v4338_v34  ;;  %v4339_v40 = vunpack.i.l.bf16 %v4338_v34  ;;  %3970 = vmatpush3.bf16.msra.mxu0 %v3951_v41  ;;  %3953 = vmatprep.subr.bf16.mxu1 %v5146_v0 }
 0x688   : > { %v4330_v42 = vunpack.i.h.bf16 %v4328_v36  ;;  %v4329_v21 = vunpack.i.l.bf16 %v4328_v36  ;;  %3971 = vmatprep.subr.bf16.mxu0 %v5146_v0 }
 0x689   : > { %v1544_v43 = vsel %vm1537_vm5, %v1535_v39, %v4339_v40  ;;  %v1545_v8 = vsel %vm1537_vm5, %v1536_v49, %v4340_v26 }
 0x68a   : > { %v1568_v44 = vsel %vm1537_vm5, %v1560_v61, %v4329_v21  ;;  %v1569_v3 = vsel %vm1537_vm5, %v1561_v57, %v4330_v42  ;;  %v1579_v17 = vpack.c.bf16 %v1545_v8, %v1544_v43  ;;  %3955 = vmatpush3.bf16.msra.mxu1 %v3954_v28 }
 0x68b   : > { %v1580_v45 = vpack.c.bf16 %v1569_v3, %v1568_v44  ;;  %3973 = vmatpush3.bf16.msra.mxu0 %v3954_v28  ;;  %3956 = vmatprep.subr.bf16.mxu1 %v5146_v0 }
 0x68c   : > { %3974 = vmatprep.subr.bf16.mxu0 %v5146_v0 }
 0x68d   : > { %1765 = vmatprep.mubr.bf16.mxu0 %v1580_v45 }
 0x68e   : > { %1766 = vmatmul.mubr.bf16.gmra.mrb[20].mxu0 %v1579_v17  ;;  %3958 = vmatpush3.bf16.msra.mxu1 %v3957_v58 }
 0x68f   : > { %3881 = vmatprep.mubr.msk.f32.mxu0 %vm5147_vm0, %v5148_v1  ;;  %3976 = vmatpush3.bf16.msra.mxu0 %v3957_v58 }
 0x690   : > { %3959 = vmatprep.subr.bf16.mxu1 %v5146_v0 }
 0x6c1   : > { %v3817_v46 = vpop.f32.mrb[4].mxu1 }
 0x6c2   : > { %v1808_v51 = vpop.f32.mrb[5].mxu1 }
 0x6c3   : > { %v3818_v59 = vpop.f32.mrb[6].mxu1 }
 0x6c4   : > { %v1811_v62 = vpop.f32.mrb[7].mxu1 }
 0x6c9   : > { %v6186_v60 = vpop.f32.mrb[8].mxu1 }
 0x6ca   : > { %v6188_v63 = vpop.f32.mrb[9].mxu1 }
 0x6cb   : > { %v6190_v53 = vpop.f32.mrb[10].mxu1 }
 0x6cc   : > { %v6192_v2 = vpop.f32.mrb[11].mxu1 }
 0x6df   : > { %v1916_v4 = vpop.f32.mrb[12].mxu1 }
 0x6e0   : > { %v3833_v38 = vpop.f32.mrb[13].mxu1  ;;  %v1925_v55 = vrot.slane %v1916_v4, %v5850_v47 }
 0x6e1   : > { %v1919_v5 = vpop.f32.mrb[14].mxu1 }
 0x6e2   : > { %v3834_v54 = vpop.f32.mrb[15].mxu1 }
 0x747   : > { %v3610_v14 = vpop.f32.mrb[8].mxu0 }
 0x748   : > { %v3611_v15 = vpop.f32.mrb[9].mxu0 }
 0x749   : > { %v3612_v48 = vadd.f32 %v3611_v15, %v3610_v14  ;;  %v3613_v16 = vpop.f32.mrb[10].mxu0 }
 0x74a   : > { %v3614_v18 = vpop.f32.mrb[11].mxu0 }
 0x74b   : > { %v1744_v19 = vadd.f32 %v3612_v48, %v3486_v50  ;;  %v3615_v20 = vadd.f32 %v3614_v18, %v3613_v16 }
 0x74d   : > { %v1809_v23 = vadd.f32 %v1808_v51, %v1744_v19  ;;  %v1747_v27 = vadd.f32 %v3615_v20, %v3486_v50 }
 0x74f   : > { %v1812_v29 = vadd.f32 %v1811_v62, %v1747_v27  ;;  %v3616_v30 = vpop.f32.mrb[12].mxu0  ;;  %v6202_v13 = vadd.f32 %v1925_v55, %v1809_v23 }
 0x750   : > { %v3617_v31 = vpop.f32.mrb[13].mxu0 }
 0x751   : > { %v3618_v32 = vadd.f32 %v3617_v31, %v3616_v30  ;;  %v6204_v33 = vadd.f32 %v1925_v55, %v1812_v29  ;;  %v3619_v34 = vpop.f32.mrb[14].mxu0  ;;  %v1948_v45 = vsel %vm1528_vm4, %v6202_v13, 0.0 }
 0x752   : > { %v3620_v25 = vpop.f32.mrb[15].mxu0 }
 0x753   : > { %v1752_v35 = vadd.f32 %v3618_v32, %v3486_v50  ;;  %v3621_v36 = vadd.f32 %v3620_v25, %v3619_v34  ;;  %v1949_v44 = vsel %vm1528_vm4, %v6204_v33, 0.0  ;;  %v1942_v32 = vld [vmem:[#allocation19] sm:$0xff]  ;;  %v1943_v34 = vld [vmem:[#allocation19 + $0x8] sm:$0xff] }
 0x754   : > { %v1950_v62 = vadd.f32 %v1949_v44, %v1948_v45 }
 0x755   : > { %v1817_v26 = vadd.f32 %v3817_v46, %v1752_v35  ;;  %v1755_v40 = vadd.f32 %v3621_v36, %v3486_v50  ;;  %v1944_v35 = vld [vmem:[#allocation19 + $0x10] sm:$0xff]  ;;  %v1945_v36 = vld [vmem:[#allocation19 + $0x18] sm:$0xff] }
 0x757   : > { %v6206_v49 = vadd.f32 %v1925_v55, %v1817_v26  ;;  %v1820_v39 = vadd.f32 %v3818_v59, %v1755_v40  ;;  %v3622_v42 = vpop.f32.mrb[16].mxu0 }
 0x758   : > { %v3623_v21 = vpop.f32.mrb[17].mxu0 }
 0x759   : > { %v6208_v61 = vadd.f32 %v1925_v55, %v1820_v39  ;;  %v3624_v57 = vadd.f32 %v3623_v21, %v3622_v42  ;;  %v3625_v43 = vpop.f32.mrb[18].mxu0  ;;  %v1951_v46 = vsel %vm1528_vm4, %v6206_v49, 0.0 }
 0x75a   : > { %v3626_v8 = vpop.f32.mrb[19].mxu0  ;;  %v1952_v5 = vadd.f32 %v1951_v46, %v1950_v62 }
 0x75b   : > { %v1760_v3 = vadd.f32 %v3624_v57, %v3486_v50  ;;  %v3627_v17 = vadd.f32 %v3626_v8, %v3625_v43  ;;  %v1953_v54 = vsel %vm1528_vm4, %v6208_v61, 0.0 }
 0x75c   : > { %v1954_v11 = vadd.f32 %v1953_v54, %v1952_v5 }
 0x75d   : > { %v1825_v51 = vadd.f32 %v6188_v63, %v1760_v3  ;;  %v1763_v59 = vadd.f32 %v3627_v17, %v3486_v50 }
 0x75f   : > { %v1930_v4 = vadd.f32 %v1925_v55, %v1825_v51  ;;  %v1828_v38 = vadd.f32 %v6192_v2, %v1763_v59 }
 0x761   : > { %v1931_v7 = vadd.f32 %v1925_v55, %v1828_v38  ;;  %v3628_v22 = vpop.f32.mrb[20].mxu0  ;;  %v1955_v10 = vsel %vm1528_vm4, %v1930_v4, 0.0 }
 0x762   : > { %v3629_v9 = vpop.f32.mrb[21].mxu0  ;;  %v1956_v12 = vadd.f32 %v1955_v10, %v1954_v11 }
 0x763   : > { %v3630_v37 = vadd.f32 %v3629_v9, %v3628_v22  ;;  %v3631_v41 = vpop.f32.mrb[22].mxu0  ;;  %v1957_v56 = vsel %vm1528_vm4, %v1931_v7, 0.0 }
 0x764   : > { %v3632_v52 = vpop.f32.mrb[23].mxu0  ;;  %v1958_v48 = vadd.f32 %v1957_v56, %v1956_v12 }
 0x765   : > { %v1768_v28 = vadd.f32 %v3630_v37, %v3486_v50  ;;  %v3633_v63 = vadd.f32 %v3632_v52, %v3631_v41 }
 0x767   : > { %v1833_v2 = vadd.f32 %v6186_v60, %v1768_v28  ;;  %v1771_v58 = vadd.f32 %v3633_v63, %v3486_v50  ;;  %v3960_v60 = vpack.c.bf16 %v1943_v34, %v1942_v32  ;;  %v4436_v32 = vld [vmem:[#allocation23 + $0xc8] sm:$0xff]  }
 0x768   : > { %v4438_v34 = vld [vmem:[#allocation23 + $0x88] sm:$0xff]  }
 0x769   : > { %v1932_v14 = vadd.f32 %v1925_v55, %v1833_v2  ;;  %v1836_v15 = vadd.f32 %v6190_v53, %v1771_v58  ;;  %v3963_v53 = vpack.c.bf16 %v1945_v36, %v1944_v35  ;;  %v4431_v35 = vld [vmem:[#allocation23 + $0x60] sm:$0xff]  }
 0x76a   : > { %v4433_v36 = vld [vmem:[#allocation23 + $0x20] sm:$0xff]  }
 0x76b   : > { %v1959_v16 = vsel %vm1528_vm4, %v1932_v14, 0.0  ;;  %v1933_v18 = vadd.f32 %v1925_v55, %v1836_v15 }
 0x76c   : > { %v1960_v19 = vadd.f32 %v1959_v16, %v1958_v48 }
 0x76d   : > { %v1961_v20 = vsel %vm1528_vm4, %v1933_v18, 0.0 }
 0x76e   : > { %v1962_v23 = vadd.f32 %v1961_v20, %v1960_v19  ;;  %v4423_v19 = vld [vmem:[#allocation23 + $0x40] sm:$0xff]  }
 0x76f   : > { %v4424_v20 = vld [vmem:[#allocation23] sm:$0xff]  }
 0x770   : > { %v1963_v27 = vrot.slane %v1962_v23, 4 }
 0x772   : > { %v1964_v29 = vadd.f32 %v1963_v27, %v1962_v23  ;;  %v4425_v23 = vld [vmem:[#allocation23 + $0x48] sm:$0xff]  }
 0x773   : > { %v4426_v27 = vld [vmem:[#allocation23 + $0x8] sm:$0xff]  }
 0x774   : > { %v1965_v30 = vrot.slane %v1964_v29, 2 }
 0x776   : > { %v1966_v31 = vadd.f32 %v1965_v30, %v1964_v29  ;;  %v4432_v29 = vld [vmem:[#allocation23 + $0xc0] sm:$0xff]  }
 0x777   : > { %v4434_v30 = vld [vmem:[#allocation23 + $0x80] sm:$0xff]   ;;  %3713 = vmatprep.subr.bf16.mxu0 %v4432_v29 }
 0x778   : > { %v1967_v25 = vrot.slane %v1966_v31, 1 }
 0x77a   : > { %v1968_v50 = vadd.f32 %v1967_v25, %v1966_v31  ;;  %v4427_v31 = vld [vmem:[#allocation23 + $0x50] sm:$0xff]  }
 0x77b   : > { %v4428_v25 = vld [vmem:[#allocation23 + $0x10] sm:$0xff]  }
 0x77c   : > { %3852 = vmatmul.mubr.msk.f32.vlgmr.msra.gmra.mrb[2].mxu1 %vm1528_vm4, %v1968_v50  ;;  %v4430_v50 = vld [vmem:[#allocation23 + $0x18] sm:$0xff]  }
 0x77d   : > { %3961 = vmatpush3.bf16.msra.mxu1 %v3960_v60  ;;  %3862 = vmatprep.mubr.msk.f32.mxu1 %vm5147_vm0, %v5148_v1 }
 0x77e   : > { %3962 = vmatprep.subr.bf16.mxu1 %v5146_v0 }
 0x781   : > { %3964 = vmatpush3.bf16.msra.mxu1 %v3963_v53 }
 0x782   : > { %3977 = vmatprep.subr.bf16.mxu1 %v5146_v0 }
 0x84f   : > { %v2038_v55 = vpop.f32.mrb[2].mxu1 }
 0x850   : > { %v3853_v26 = vpop.f32.mrb[3].mxu1  ;;  %3863 = vmatmul.mubr.msk.f32.vlgmr.msra.gmra.mrb[16].mxu1 %vm823_vm1, %v2038_v55  ;;  %v4437_v55 = vld [vmem:[#allocation23 + $0x28] sm:$0xff]  }
 0x851   : > { %3979 = vmatpush3.bf16.msra.mxu1 %v3960_v60  ;;  %3892 = vmatprep.mubr.msk.f32.mxu1 %vm5147_vm0, %v5148_v1  ;;  %v4429_v60 = vld [vmem:[#allocation23 + $0x58] sm:$0xff]  }
 0x852   : > { %3980 = vmatprep.subr.bf16.mxu1 %v5146_v0 }
 0x855   : > { %3982 = vmatpush3.bf16.msra.mxu1 %v3963_v53  ;;  %v4435_v53 = vld [vmem:[#allocation23 + $0x68] sm:$0xff]  }
 0x856   : > { %3673 = vmatprep.subr.bf16.mxu1 %v4423_v19 }
 0x923   : > { %v2111_v40 = vpop.f32.mrb[16].mxu1 }
 0x924   : > { %v2115_v39 = vmul.f32 0.0078125, %v2111_v40  ;;  %v3864_v42 = vpop.f32.mrb[17].mxu1 }
 0x926   : > { %v2119_v21 = vrot.slane %v2115_v39, %v5850_v47 }
 0x928   : > { %v6237_v57 = vsub.f32 %v6202_v13, %v2119_v21  ;;  %v6240_v43 = vsub.f32 %v6204_v33, %v2119_v21  ;;  %v6243_v8 = vsub.f32 %v6206_v49, %v2119_v21  ;;  %v6246_v44 = vsub.f32 %v6208_v61, %v2119_v21 }
 0x929   : > { %v6252_v17 = vsub.f32 %v1930_v4, %v2119_v21  ;;  %v6256_v45 = vsub.f32 %v1931_v7, %v2119_v21  ;;  %v6262_v51 = vsub.f32 %v1932_v14, %v2119_v21  ;;  %v6267_v38 = vsub.f32 %v1933_v18, %v2119_v21  ;;  %v1946_v21 = vld [vmem:[#allocation20] sm:$0x1] }
 0x92a   : > { %v2128_v0 = vmul.f32 %v6237_v57, %v6237_v57  ;;  %v2129_v3 = vmul.f32 %v6240_v43, %v6240_v43  ;;  %v2130_v13 = vmul.f32 %v6243_v8, %v6243_v8  ;;  %v2131_v33 = vmul.f32 %v6246_v44, %v6246_v44 }
 0x92b   : > { %v2132_v59 = vmul.f32 %v6252_v17, %v6252_v17  ;;  %v2133_v5 = vmul.f32 %v6256_v45, %v6256_v45  ;;  %v2134_v22 = vmul.f32 %v6262_v51, %v6262_v51  ;;  %v2135_v37 = vmul.f32 %v6267_v38, %v6267_v38 }
 0x92c   : > { %v2136_v49 = vsel %vm1528_vm4, %v2128_v0, 0.0  ;;  %v2137_v61 = vsel %vm1528_vm4, %v2129_v3, 0.0  ;;  %v2139_v62 = vsel %vm1528_vm4, %v2130_v13, 0.0  ;;  %v2141_v54 = vsel %vm1528_vm4, %v2131_v33, 0.0  ;;  %v3518_v33 = vld [vmem:[#allocation22] ss:$0 sm:$0xff] }
 0x92d   : > { %v2138_v46 = vadd.f32 %v2137_v61, %v2136_v49  ;;  %v2143_v9 = vsel %vm1528_vm4, %v2132_v59, 0.0  ;;  %v2145_v41 = vsel %vm1528_vm4, %v2133_v5, 0.0  ;;  %v2147_v52 = vsel %vm1528_vm4, %v2134_v22, 0.0 }
 0x92e   : > { %v2149_v63 = vsel %vm1528_vm4, %v2135_v37, 0.0 }
 0x92f   : > { %v2140_v4 = vadd.f32 %v2139_v62, %v2138_v46 }
 0x931   : > { %v2142_v7 = vadd.f32 %v2141_v54, %v2140_v4 }
 0x933   : > { %v2144_v10 = vadd.f32 %v2143_v9, %v2142_v7 }
 0x935   : > { %v2146_v11 = vadd.f32 %v2145_v41, %v2144_v10 }
 0x937   : > { %v2148_v28 = vadd.f32 %v2147_v52, %v2146_v11 }
 0x939   : > { %v2150_v12 = vadd.f32 %v2149_v63, %v2148_v28 }
 0x93b   : > { %v2151_v56 = vrot.slane %v2150_v12, 4 }
 0x93d   : > { %v2152_v2 = vadd.f32 %v2151_v56, %v2150_v12 }
 0x93f   : > { %v2153_v58 = vrot.slane %v2152_v2, 2 }
 0x941   : > { %v2154_v14 = vadd.f32 %v2153_v58, %v2152_v2 }
 0x943   : > { %v2155_v15 = vrot.slane %v2154_v14, 1 }
 0x945   : > { %v2156_v48 = vadd.f32 %v2155_v15, %v2154_v14 }
 0x947   : > { %3882 = vmatmul.mubr.msk.f32.vlgmr.msra.gmra.mrb[6].mxu0 %vm1528_vm4, %v2156_v48 }
 0x948   : > { %3714 = vmatpush3.bf16.msra.mxu0 %v4434_v30 }
 0x949   : > { %3715 = vmatprep.subr.bf16.mxu0 %v4436_v32 }
 0x94c   : > { %3716 = vmatpush3.bf16.msra.mxu0 %v4438_v34 }
 0xa1a   : > { %v2226_v16 = vpop.f32.mrb[6].mxu0 }
 0xa1b   : > { %v3883_v18 = vpop.f32.mrb[7].mxu0  ;;  %3893 = vmatmul.mubr.msk.f32.vlgmr.msra.gmra.mrb[18].mxu1 %vm823_vm1, %v2226_v16 }
 0xa1c   : > { %3674 = vmatpush3.bf16.msra.mxu1 %v4424_v20 }
 0xa1d   : > { %3675 = vmatprep.subr.bf16.mxu1 %v4425_v23 }
 0xa20   : > { %3676 = vmatpush3.bf16.msra.mxu1 %v4426_v27 }
 0xa21   : > { %3677 = vmatprep.subr.bf16.mxu1 %v4427_v31 }
 0xa24   : > { %3678 = vmatpush3.bf16.msra.mxu1 %v4428_v25 }
 0xa25   : > { %3679 = vmatprep.subr.bf16.mxu1 %v4429_v60 }
 0xa28   : > { %3680 = vmatpush3.bf16.msra.mxu1 %v4430_v50 }
 0xa29   : > { %3681 = vmatprep.subr.bf16.mxu1 %v4431_v35  ;;  %v4439_v35 = vld [vmem:[#allocation23 + $0x70] sm:$0xff]  }
 0xa2c   : > { %3682 = vmatpush3.bf16.msra.mxu1 %v4433_v36  ;;  %v4440_v36 = vld [vmem:[#allocation23 + $0xd0] sm:$0xff]  }
 0xa2d   : > { %3683 = vmatprep.subr.bf16.mxu1 %v4435_v53  ;;  %v4441_v53 = vld [vmem:[#allocation23 + $0x30] sm:$0xff]   ;;  %3717 = vmatprep.subr.bf16.mxu0 %v4440_v36 }
 0xa30   : > { %3684 = vmatpush3.bf16.msra.mxu1 %v4437_v55  ;;  %v4442_v55 = vld [vmem:[#allocation23 + $0x90] sm:$0xff]  }
 0xa31   : > { %3685 = vmatprep.subr.bf16.mxu1 %v4439_v35  ;;  %3718 = vmatpush3.bf16.msra.mxu0 %v4442_v55 }
 0xa34   : > { %3686 = vmatpush3.bf16.msra.mxu1 %v4441_v53 }
 0xaee   : > { %v2299_v26 = vpop.f32.mrb[18].mxu1 }
 0xaef   : > { %v2303_v40 = vmul.f32 0.0078125, %v2299_v26  ;;  %v3894_v39 = vpop.f32.mrb[19].mxu1  ;;  %v4443_v26 = vld [vmem:[#allocation23 + $0x78] sm:$0xff]  }
 0xaf0   : > { %v4445_v39 = vld [vmem:[#allocation23 + $0x38] sm:$0xff]   ;;  %3687 = vmatprep.subr.bf16.mxu1 %v4443_v26 }
 0xaf1   : > { %v2304_v42 = vadd.f32 1e-06, %v2303_v40  ;;  %v4444_v40 = vld [vmem:[#allocation23 + $0xd8] sm:$0xff]   ;;  %3688 = vmatpush3.bf16.msra.mxu1 %v4445_v39 }
 0xaf2   : > { %3719 = vmatprep.subr.bf16.mxu0 %v4444_v40 }
 0xaf3   : > { %4499 = vrsqrt.f32 %v2304_v42  ;;  %v4446_v42 = vld [vmem:[#allocation23 + $0x98] sm:$0xff]  }
 0xaf4   : > { %3720 = vmatpush3.bf16.msra.mxu0 %v4446_v42 }
 0xafd   : > { %v4500_v0 = vpop.eup %4499 }
 0xafe   : > { %v2306_v3 = vmul.f32 %v4500_v0, %v1946_v21 }
 0xb00   : > { %v2310_v13 = vrot.slane %v2306_v3, %v5850_v47 }
 0xb02   : > { %v2311_v49 = vmul.f32 %v2310_v13, %v6237_v57  ;;  %v2312_v61 = vmul.f32 %v2310_v13, %v6240_v43  ;;  %v2313_v46 = vmul.f32 %v2310_v13, %v6243_v8  ;;  %v2314_v59 = vmul.f32 %v2310_v13, %v6246_v44 }
 0xb03   : > { %v2315_v62 = vmul.f32 %v2310_v13, %v6252_v17  ;;  %v2316_v4 = vmul.f32 %v2310_v13, %v6256_v45  ;;  %v2317_v5 = vmul.f32 %v2310_v13, %v6262_v51  ;;  %v2318_v54 = vmul.f32 %v2310_v13, %v6267_v38  ;;  %v4447_v13 = vld [vmem:[#allocation23 + $0xe0] sm:$0xff]  }
 0xb04   : > { %v6291_v7 = vadd.f32 %v3518_v33, %v2311_v49  ;;  %v6293_v47 = vadd.f32 %v3518_v33, %v2312_v61  ;;  %v6295_v22 = vadd.f32 %v3518_v33, %v2313_v46  ;;  %v6297_v57 = vadd.f32 %v3518_v33, %v2314_v59  ;;  %v4449_v46 = vld [vmem:[#allocation23 + $0xa0] sm:$0xff]   ;;  %3721 = vmatprep.subr.bf16.mxu0 %v4447_v13 }
 0xb05   : > { %v6299_v43 = vadd.f32 %v3518_v33, %v2315_v62  ;;  %v6301_v8 = vadd.f32 %v3518_v33, %v2316_v4  ;;  %v6303_v44 = vadd.f32 %v3518_v33, %v2317_v5  ;;  %v6305_v17 = vadd.f32 %v3518_v33, %v2318_v54  ;;  %v6318_v33 = vld [vmem:[#allocation23 + $0x100] sm:$0xff]   ;;  %3722 = vmatpush3.bf16.msra.mxu0 %v4449_v46 }
 0xb06   : > { %v2333_v45 = vsub.f32 0.0, %v6291_v7  ;;  %v2334_v51 = vsub.f32 0.0, %v6293_v47  ;;  %v2335_v38 = vsub.f32 0.0, %v6295_v22  ;;  %v2336_v9 = vsub.f32 0.0, %v6297_v57  ;;  %3895 = vmatprep.subr.bf16.mxu1 %v6318_v33 }
 0xb07   : > { %v2337_v10 = vsub.f32 0.0, %v6299_v43  ;;  %v2338_v37 = vsub.f32 0.0, %v6301_v8  ;;  %v2339_v41 = vsub.f32 0.0, %v6303_v44  ;;  %v2340_v12 = vsub.f32 0.0, %v6305_v17 }
 0xb08   : > { %v2341_v11 = vmul.f32 1.442695, %v2333_v45  ;;  %v2343_v52 = vmul.f32 1.442695, %v2334_v51  ;;  %v2345_v28 = vmul.f32 1.442695, %v2335_v38 }
 0xb09   : > { %v2347_v63 = vmul.f32 1.442695, %v2336_v9  ;;  %v2349_v56 = vmul.f32 1.442695, %v2337_v10  ;;  %v2351_v2 = vmul.f32 1.442695, %v2338_v37 }
 0xb0a   : > { %4501 = vpow2.f32 %v2341_v11  ;;  %v2353_v58 = vmul.f32 1.442695, %v2339_v41  ;;  %v2355_v14 = vmul.f32 1.442695, %v2340_v12  ;;  %v4450_v38 = vld [vmem:[#allocation23 + $0xe8] sm:$0xff]  }
 0xb0b   : > { %4503 = vpow2.f32 %v2343_v52  ;;  %v4451_v41 = vld [vmem:[#allocation23 + $0xa8] sm:$0xff]   ;;  %3723 = vmatprep.subr.bf16.mxu0 %v4450_v38 }
 0xb0c   : > { %4505 = vpow2.f32 %v2345_v28  ;;  %3724 = vmatpush3.bf16.msra.mxu0 %v4451_v41 }
 0xb0d   : > { %4507 = vpow2.f32 %v2347_v63 }
 0xb0e   : > { %4509 = vpow2.f32 %v2349_v56 }
 0xb0f   : > { %4511 = vpow2.f32 %v2351_v2 }
 0xb10   : > { %4513 = vpow2.f32 %v2353_v58  ;;  %v4452_v58 = vld [vmem:[#allocation23 + $0xf0] sm:$0xff]  }
 0xb11   : > { %4515 = vpow2.f32 %v2355_v14  ;;  %v4454_v14 = vld [vmem:[#allocation23 + $0xb0] sm:$0xff]   ;;  %3725 = vmatprep.subr.bf16.mxu0 %v4452_v58 }
 0xb12   : > { %3726 = vmatpush3.bf16.msra.mxu0 %v4454_v14 }
 0xb14   : > { %v4502_v15 = vpop.eup %4501 }
 0xb15   : > { %v4504_v48 = vpop.eup %4503  ;;  %v2357_v16 = vadd.f32 1.0, %v4502_v15 }
 0xb16   : > { %v4506_v18 = vpop.eup %4505  ;;  %v2358_v19 = vadd.f32 1.0, %v4504_v48 }
 0xb17   : > { %v4508_v20 = vpop.eup %4507  ;;  %4517 = vrcp.f32 %v2357_v16  ;;  %v2359_v23 = vadd.f32 1.0, %v4506_v18 }
 0xb18   : > { %v4510_v27 = vpop.eup %4509  ;;  %4519 = vrcp.f32 %v2358_v19  ;;  %v2360_v29 = vadd.f32 1.0, %v4508_v20 }
 0xb19   : > { %v4512_v30 = vpop.eup %4511  ;;  %4521 = vrcp.f32 %v2359_v23  ;;  %v2361_v31 = vadd.f32 1.0, %v4510_v27 }
 0xb1a   : > { %v4514_v32 = vpop.eup %4513  ;;  %4523 = vrcp.f32 %v2360_v29  ;;  %v2362_v34 = vadd.f32 1.0, %v4512_v30 }
 0xb1b   : > { %v4516_v25 = vpop.eup %4515  ;;  %4525 = vrcp.f32 %v2361_v31  ;;  %v2363_v60 = vadd.f32 1.0, %v4514_v32  ;;  %v4455_v32 = vld [vmem:[#allocation23 + $0xf8] sm:$0xff]  }
 0xb1c   : > { %4527 = vrcp.f32 %v2362_v34  ;;  %v2364_v50 = vadd.f32 1.0, %v4516_v25  ;;  %v4456_v34 = vld [vmem:[#allocation23 + $0xb8] sm:$0xff]   ;;  %3727 = vmatprep.subr.bf16.mxu0 %v4455_v32 }
 0xb1d   : > { %4529 = vrcp.f32 %v2363_v60  ;;  %3728 = vmatpush3.bf16.msra.mxu0 %v4456_v34 }
 0xb1e   : > { %4531 = vrcp.f32 %v2364_v50 }
 0xb21   : > { %v4518_v21 = vpop.eup %4517 }
 0xb22   : > { %v4520_v0 = vpop.eup %4519  ;;  %v6316_v3 = vmul.f32 %v4518_v21, %v6291_v7 }
 0xb23   : > { %v4522_v49 = vpop.eup %4521  ;;  %v6321_v61 = vmul.f32 %v4520_v0, %v6293_v47 }
 0xb24   : > { %v4524_v59 = vpop.eup %4523  ;;  %v4346_v62 = vpack.i.bf16 %v6316_v3, %v5148_v1  ;;  %v2460_v4 = vrot.slane %v6316_v3, 7  ;;  %v6327_v5 = vmul.f32 %v4522_v49, %v6295_v22  ;;  %v2481_v23 = vrot.slane %v6316_v3, 1 }
 0xb25   : > { %v4526_v54 = vpop.eup %4525  ;;  %v2461_v7 = vrot.slane %v6321_v61, 7  ;;  %v6332_v47 = vmul.f32 %v4524_v59, %v6297_v57  ;;  %v2482_v31 = vrot.slane %v6321_v61, 1 }
 0xb26   : > { %v4528_v45 = vpop.eup %4527  ;;  %4347 = vrot.lane.b32.xlu1 %v4346_v62, %s5151_s17  ;;  %v6336_v51 = vsel %vm1317_vm3, 0.0, %v2460_v4  ;;  %v2462_v1 = vrot.slane %v6327_v5, 7  ;;  %v6340_v22 = vmul.f32 %v4526_v54, %v6299_v43  ;;  %v4356_v43 = vpack.i.bf16 %v6327_v5, %v6321_v61 }
 0xb27   : > { %v4530_v9 = vpop.eup %4529  ;;  %v6343_v10 = vsel %vm1317_vm3, 0.0, %v2461_v7  ;;  %v2463_v37 = vrot.slane %v6332_v47, 7  ;;  %v6347_v57 = vmul.f32 %v4528_v45, %v6301_v8  ;;  %v2484_v20 = vrot.slane %v6332_v47, 1 }
 0xb28   : > { %v4532_v11 = vpop.eup %4531  ;;  %v4341_v52 = vpack.i.bf16 %v6343_v10, %v6336_v51  ;;  %v6354_v28 = vsel %vm1317_vm3, 0.0, %v2462_v1  ;;  %v2464_v63 = vrot.slane %v6340_v22, 7  ;;  %v6362_v56 = vmul.f32 %v4530_v9, %v6303_v44 }
 0xb29   : > { %v6358_v12 = vsel %vm1317_vm3, 0.0, %v2463_v37  ;;  %v2465_v8 = vrot.slane %v6347_v57, 7  ;;  %v6365_v2 = vmul.f32 %v4532_v11, %v6305_v17  ;;  %v4366_v48 = vpack.i.bf16 %v6340_v22, %v6332_v47 }
 0xb2a   : > { %4342 = vrot.lane.b32.xlu0 %v4341_v52, %s5151_s17  ;;  %4357 = vrot.lane.b32.xlu1 %v4356_v43, %s5151_s17  ;;  %v4351_v15 = vpack.i.bf16 %v6358_v12, %v6354_v28  ;;  %v6374_v16 = vsel %vm1317_vm3, 0.0, %v2464_v63  ;;  %v2483_v44 = vrot.slane %v6327_v5, 1  ;;  %v2466_v18 = vrot.slane %v6362_v56, 7 }
 0xb2b   : > { %v6378_v17 = vsel %vm1317_vm3, 0.0, %v2465_v8  ;;  %v2503_v19 = vrot.slane %v6365_v2, 7  ;;  %v4371_v29 = vpack.i.bf16 %v6362_v56, %v6347_v57  ;;  %v6401_v50 = vsel %vm1342_vm2, %v2484_v20, 0.0 }
 0xb2c   : > { %v4361_v27 = vpack.i.bf16 %v6378_v17, %v6374_v16  ;;  %v6391_v30 = vsel %vm1342_vm2, %v2483_v44, 0.0  ;;  %v6395_v25 = vsel %vm1317_vm3, 0.0, %v2466_v18  ;;  %v2487_v35 = vrot.slane %v6362_v56, 1 }
 0xb2d   : > { %v6398_v60 = vsel %vm1317_vm3, 0.0, %v2503_v19  ;;  %v4386_v53 = vpack.i.bf16 %v6401_v50, %v6391_v30  ;;  %v2495_v55 = vsel %vm1342_vm2, %v2481_v23, 0.0  ;;  %v6412_v26 = vsel %vm1342_vm2, %v2482_v31, 0.0  ;;  %v4453_v19 = vld [vmem:[#allocation23 + $0x108] sm:$0xff]   ;;  %v4457_v31 = vld [vmem:[#allocation23 + $0x110] sm:$0xff]  }
 0xb2e   : > { %4352 = vrot.lane.b32.xlu0 %v4351_v15, %s5151_s17  ;;  %4367 = vrot.lane.b32.xlu1 %v4366_v48, %s5151_s17  ;;  %v4376_v36 = vpack.i.bf16 %v6398_v60, %v6395_v25  ;;  %v6415_v40 = vsel %vm1342_vm2, %v2487_v35, 0.0  ;;  %v2485_v39 = vrot.slane %v6340_v22, 1  ;;  %v2486_v42 = vrot.slane %v6347_v57, 1 }
 0xb2f   : > { %v4381_v21 = vpack.i.bf16 %v6412_v26, %v2495_v55  ;;  %v4396_v0 = vpack.i.bf16 %v6415_v40, %v6365_v2  ;;  %v2506_v59 = vrot.slane %v6365_v2, 1 }
 0xb30   : > { %v6425_v13 = vsel %vm1342_vm2, %v2485_v39, 0.0  ;;  %v6428_v49 = vsel %vm1342_vm2, %v2486_v42, 0.0 }
 0xb31   : > { %v4391_v46 = vpack.i.bf16 %v6428_v49, %v6425_v13  ;;  %v6437_v62 = vsel %vm1342_vm2, %v2506_v59, 0.0 }
 0xb32   : > { %4362 = vrot.lane.b32.xlu0 %v4361_v27, %s5151_s17  ;;  %4372 = vrot.lane.b32.xlu1 %v4371_v29, %s5151_s17 }
 0xb36   : > { %4377 = vrot.lane.b32.xlu0 %v4376_v36, %s5151_s17  ;;  %4387 = vrot.lane.b32.xlu1 %v4386_v53, %s5151_s17  ;;  %v4458_v53 = vld [vmem:[#allocation23 + $0x118] sm:$0xff]  }
 0xb3a   : > { %4382 = vrot.lane.b32.xlu0 %v4381_v21, %s5151_s17  ;;  %4397 = vrot.lane.b32.xlu1 %v4396_v0, %s5151_s17 }
 0xb3e   : > { %4392 = vrot.lane.b32.xlu0 %v4391_v46, %s5151_s17 }
 0xb42   : > { %2587 = vrot.lane.b32.xlu0 %v6437_v62, %s5151_s17 }
 0xb98   : > { %v4348_v4 = vpop.permute.xlu1 %4347 }
 0xb99   : > { %v4350_v54 = vunpack.i.h.bf16 %v4348_v4  ;;  %v4349_v7 = vunpack.i.l.bf16 %v4348_v4  ;;  %v4459_v4 = vld [vmem:[#allocation26] sm:$0xff]  }
 0xb9b   : > { %v6443_v11 = vsel %vm1528_vm4, %v6090_v6, %v4349_v7  ;;  %v2601_v52 = vsel %vm1528_vm4, %v6336_v51, %v4350_v54 }
 0xb9c   : > { %v4343_v45 = vpop.permute.xlu0 %4342  ;;  %v4358_v1 = vpop.permute.xlu1 %4357  ;;  %v2625_v6 = vpack.c.bf16 %v2601_v52, %v6443_v11 }
 0xb9d   : > { %v4345_v38 = vunpack.i.h.bf16 %v4343_v45  ;;  %v4344_v9 = vunpack.i.l.bf16 %v4343_v45  ;;  %v4360_v37 = vunpack.i.h.bf16 %v4358_v1  ;;  %v4359_v41 = vunpack.i.l.bf16 %v4358_v1 }
 0xb9f   : > { %v2608_v43 = vsel %vm1528_vm4, %v6009_v24, %v4344_v9  ;;  %v2609_v63 = vsel %vm1528_vm4, %v2495_v55, %v4345_v38  ;;  %v2602_v8 = vsel %vm1528_vm4, %v6343_v10, %v4359_v41  ;;  %v2603_v58 = vsel %vm1528_vm4, %v6354_v28, %v4360_v37 }
 0xba0   : > { %v4353_v14 = vpop.permute.xlu0 %4352  ;;  %v2626_v15 = vpack.c.bf16 %v2609_v63, %v2608_v43  ;;  %v2628_v48 = vpack.c.bf16 %v2603_v58, %v2602_v8  ;;  %v4368_v51 = vpop.permute.xlu1 %4367 }
 0xba1   : > { %v4355_v44 = vunpack.i.h.bf16 %v4353_v14  ;;  %v4354_v18 = vunpack.i.l.bf16 %v4353_v14  ;;  %v4370_v55 = vunpack.i.h.bf16 %v4368_v51 }
 0xba2   : > { %2909 = vmatprep.mubr.bf16.mxu1 %v2626_v15  ;;  %2974 = vmatprep.mubr.bf16.mxu0 %v2628_v48 }
 0xba3   : > { %2910 = vmatmul.mubr.bf16.vlgmr.msra.gmra.mrb[20].mxu1 %v2625_v6  ;;  %v2610_v20 = vsel %vm1528_vm4, %v6412_v26, %v4354_v18  ;;  %v2611_v10 = vsel %vm1528_vm4, %v6391_v30, %v4355_v44  ;;  %v2605_v45 = vsel %vm1528_vm4, %v6374_v16, %v4370_v55 }
 0xba4   : > { %3896 = vmatpush3.bf16.msra.mxu1 %v6318_v33  ;;  %v4363_v28 = vpop.permute.xlu0 %4362  ;;  %v2630_v23 = vpack.c.bf16 %v2611_v10, %v2610_v20  ;;  %v4373_v35 = vpop.permute.xlu1 %4372  ;;  %v4369_v33 = vunpack.i.l.bf16 %v4368_v51  ;;  %v2633_v10 = vpack.c.bf16 %v6425_v13, %v6401_v50 }
 0xba5   : > { %v4365_v27 = vunpack.i.h.bf16 %v4363_v28  ;;  %v4364_v29 = vunpack.i.l.bf16 %v4363_v28  ;;  %3897 = vmatprep.subr.bf16.mxu1 %v4453_v19  ;;  %v4375_v63 = vunpack.i.h.bf16 %v4373_v35  ;;  %v4374_v16 = vunpack.i.l.bf16 %v4373_v35  ;;  %v4540_v35 = vld [vmem:[%s5751_s5 + $0x38] sm:$0xff] }
 0xba6   : > { %2917 = vmatprep.mubr.bf16.mxu1 %v2630_v23  ;;  %v2604_v7 = vsel %vm1528_vm4, %v6358_v12, %v4369_v33 }
 0xba7   : > { %v2612_v32 = vsel %vm1528_vm4, %v6401_v50, %v4364_v29  ;;  %v2613_v34 = vsel %vm1528_vm4, %v6425_v13, %v4365_v27  ;;  %v2632_v12 = vpack.c.bf16 %v2605_v45, %v2604_v7  ;;  %v2606_v14 = vsel %vm1528_vm4, %v6378_v17, %v4374_v16  ;;  %v4534_v13 = vld [vmem:[%s5751_s5 + $0x8] sm:$0xff]  ;;  %v4536_v27 = vld [vmem:[%s5751_s5 + $0x18] sm:$0xff] }
 0xba8   : > { %v4378_v36 = vpop.permute.xlu0 %4377  ;;  %3898 = vmatpush3.bf16.msra.mxu1 %v4453_v19  ;;  %v2634_v39 = vpack.c.bf16 %v2613_v34, %v2612_v32  ;;  %v4388_v54 = vpop.permute.xlu1 %4387  ;;  %v2607_v15 = vsel %vm1528_vm4, %v6395_v25, %v4375_v63  ;;  %v4539_v34 = vld [vmem:[%s5751_s5 + $0x30] sm:$0xff] }
 0xba9   : > { %3899 = vmatprep.subr.bf16.mxu1 %v4457_v31  ;;  %v4380_v42 = vunpack.i.h.bf16 %v4378_v36  ;;  %v4379_v21 = vunpack.i.l.bf16 %v4378_v36  ;;  %v4390_v52 = vunpack.i.h.bf16 %v4388_v54  ;;  %v4389_v43 = vunpack.i.l.bf16 %v4388_v54  ;;  %v3519_v54 = vld [vmem:[#allocation25] ss:$0 sm:$0xff] }
 0xbaa   : > { %v2636_v19 = vpack.c.bf16 %v2607_v15, %v2606_v14  ;;  %v3075_v36 = vpack.c.bf16 %v4540_v35, %v4539_v34 }
 0xbab   : > { %2918 = vmatmul.mubr.bf16.gmra.mrb[24].mxu1 %v2628_v48  ;;  %v2614_v9 = vsel %vm1528_vm4, %v6428_v49, %v4379_v21  ;;  %v2615_v37 = vsel %vm1528_vm4, %v6415_v40, %v4380_v42 }
 0xbac   : > { %v4383_v0 = vpop.permute.xlu0 %4382  ;;  %2925 = vmatprep.mubr.bf16.mxu1 %v2634_v39  ;;  %3900 = vmatpush3.bf16.msra.mxu1 %v4457_v31  ;;  %v2638_v8 = vpack.c.bf16 %v2615_v37, %v2614_v9  ;;  %v4398_v48 = vpop.permute.xlu1 %4397  ;;  %v4537_v31 = vld [vmem:[%s5751_s5 + $0x20] sm:$0xff] }
 0xbad   : > { %v4385_v46 = vunpack.i.h.bf16 %v4383_v0  ;;  %v4384_v59 = vunpack.i.l.bf16 %v4383_v0  ;;  %3901 = vmatprep.subr.bf16.mxu1 %v4458_v53  ;;  %v4399_v51 = vunpack.i.l.bf16 %v4398_v48  ;;  %v4400_v23 = vunpack.i.h.bf16 %v4398_v48 }
 0xbaf   : > { %v2617_v1 = vsel %vm1528_vm4, %v6321_v61, %v4385_v46  ;;  %v2616_v38 = vsel %vm1528_vm4, %v6316_v3, %v4384_v59  ;;  %v2618_v3 = vsel %vm1528_vm4, %v6327_v5, %v4389_v43  ;;  %v2619_v61 = vsel %vm1528_vm4, %v6332_v47, %v4390_v52 }
 0xbb0   : > { %v2627_v41 = vpack.c.bf16 %v2617_v1, %v2616_v38  ;;  %3902 = vmatpush3.bf16.msra.mxu1 %v4458_v53  ;;  %v4393_v58 = vpop.permute.xlu0 %4392  ;;  %v2631_v6 = vpack.c.bf16 %v2619_v61, %v2618_v3  ;;  %v2629_v5 = vpack.c.bf16 %v6391_v30, %v6412_v26  ;;  %v2624_v25 = vsel %vm1528_vm4, %v6398_v60, %v4399_v51  ;;  %v4460_v26 = vld [vmem:[#allocation26 + $0x8] sm:$0xff]  }
 0xbb1   : > { %3911 = vmatprep.subr.bf16.mxu1 %v4459_v4  ;;  %v4395_v44 = vunpack.i.h.bf16 %v4393_v58  ;;  %v4394_v18 = vunpack.i.l.bf16 %v4393_v58  ;;  %v2640_v30 = vpack.c.bf16 %v6443_v11, %v2624_v25  ;;  %v2622_v60 = vsel %vm1528_vm4, %v6362_v56, %v4400_v23  ;;  %v4538_v56 = vld [vmem:[%s5751_s5 + $0x28] sm:$0xff] }
 0xbb2   : > { %2975 = vmatmul.mubr.bf16.vlgmr.msra.gmra.mrb[24].mxu0 %v2627_v41  ;;  %v2641_v11 = vpack.c.bf16 %v6009_v24, %v6437_v62  ;;  %v3074_v32 = vpack.c.bf16 %v4538_v56, %v4537_v31 }
 0xbb3   : > { %2926 = vmatmul.mubr.bf16.gmra.mrb[28].mxu1 %v2632_v12  ;;  %2982 = vmatprep.mubr.bf16.mxu0 %v2632_v12  ;;  %v2620_v47 = vsel %vm1528_vm4, %v6340_v22, %v4394_v18  ;;  %v2621_v17 = vsel %vm1528_vm4, %v6347_v57, %v4395_v44  ;;  %v2637_v22 = vpack.c.bf16 %v6415_v40, %v6428_v49  ;;  %v4533_v40 = vld [vmem:[%s5751_s5] sm:$0xff] }
 0xbb4   : > { %2933 = vmatprep.mubr.bf16.mxu1 %v2638_v8  ;;  %v2635_v20 = vpack.c.bf16 %v2621_v17, %v2620_v47  ;;  %v2588_v28 = vpop.permute.xlu0 %2587  ;;  %v3072_v49 = vpack.c.bf16 %v4534_v13, %v4533_v40 }
 0xbb5   : > { %v2623_v57 = vsel %vm1528_vm4, %v6365_v2, %v2588_v28  ;;  %v4535_v2 = vld [vmem:[%s5751_s5 + $0x10] sm:$0xff]  ;;  %s5025_s5 = sshll.u32 %s5152_s24, 4  ;;  %s5026_s5 = int_to_ptr.vmem [resolvable:$false] %s5025_s5 }
 0xbb6   : > { %v2639_v50 = vpack.c.bf16 %v2623_v57, %v2622_v60  ;;  %v3073_v29 = vpack.c.bf16 %v4536_v27, %v4535_v2  ;;  %s5027_s3 = scalar_lea.vmem %s5026_s5, 2048  ;;  %p5028_p3 = scmp.lt.s32.totalorder %s6532_s8, %s5026_s5 }
 0xbb7   : > { %p5029_p2 = scmp.lt.s32.totalorder %s5027_s3, %s5021_s25 }
 0xbb9   : > { %p5030_p6 = por %p5029_p2, %p5028_p3 }
 0xbba   : > { %2983 = vmatmul.mubr.bf16.gmra.mrb[28].mxu0 %v2631_v6 }
 0xbbb   : > { %2934 = vmatmul.mubr.bf16.gmra.mrb[32].mxu1 %v2636_v19  ;;  %2990 = vmatprep.mubr.bf16.mxu0 %v2636_v19  ;;  %p5031_p10 = pnand %p5030_p6, %p5024_p1 }
 0xbbc   : > { %3903 = vmatprep.mubr.msk.bf16.mxu1 %vm1528_vm4, %v2629_v5 }
 0xbc2   : > { %2991 = vmatmul.mubr.bf16.gmra.mrb[32].mxu0 %v2635_v20 }
 0xbc3   : > { %2998 = vmatprep.mubr.bf16.mxu0 %v2640_v30  ;;  %3904 = vmatmul.mubr.msk.bf16.vlgmr.msra.gmra.mrb[36].mxu1 %vm1528_vm4, %v2633_v10 }
 0xbc4   : > { %3912 = vmatpush3.bf16.msra.mxu1 %v4459_v4  ;;  %3907 = vmatprep.mubr.msk.bf16.mxu1 %vm1528_vm4, %v2637_v22 }
 0xbc5   : > { %3913 = vmatprep.subr.bf16.mxu1 %v4460_v26 }
 0xbc8   : > { %3914 = vmatpush3.bf16.msra.mxu1 %v4460_v26 }
 0xbca   : > { %2999 = vmatmul.mubr.bf16.gmra.mrb[36].mxu0 %v2639_v50 }
 0xbcb   : > { %3908 = vmatmul.mubr.msk.bf16.gmra.mrb[40].mxu1 %vm1528_vm4, %v2641_v11 }
 0xbcc   : > { %3915 = vmatprep.mubr.msk.bf16.mxu1 %vm823_vm1, %v3072_v49 }
 0xbd3   : > { %3916 = vmatmul.mubr.msk.bf16.vlgmr.msra.gmra.mrb[36].mxu1 %vm823_vm1, %v3073_v29 }
 0xbd4   : > { %3919 = vmatprep.mubr.msk.bf16.mxu1 %vm823_vm1, %v3074_v32 }
 0xbdb   : > { %3920 = vmatmul.mubr.msk.bf16.gmra.mrb[40].mxu1 %vm823_vm1, %v3075_v36 }
 0xc76   : > { %v3689_v24 = vpop.f32.mrb[20].mxu1 }
 0xc77   : > { %v3690_v62 = vpop.f32.mrb[21].mxu1 }
 0xc78   : > { %v3691_v53 = vadd.f32 %v3690_v62, %v3689_v24  ;;  %v3692_v55 = vpop.f32.mrb[22].mxu1  ;;  %v3560_v62 = vld [vmem:[#allocation28] ss:$0 sm:$0xff] }
 0xc79   : > { %v3693_v33 = vpop.f32.mrb[23].mxu1 }
 0xc7a   : > { %v3694_v39 = vadd.f32 %v3693_v33, %v3692_v55  ;;  %v2912_v38 = vadd.f32 %v3691_v53, %v3519_v54 }
 0xc7c   : > { %v2915_v63 = vadd.f32 %v3694_v39, %v3519_v54 }
 0xc7e   : > { %v3695_v42 = vpop.f32.mrb[24].mxu1 }
 0xc7f   : > { %v3696_v21 = vpop.f32.mrb[25].mxu1 }
 0xc80   : > { %v3697_v0 = vadd.f32 %v3696_v21, %v3695_v42  ;;  %v3698_v46 = vpop.f32.mrb[26].mxu1 }
 0xc81   : > { %v3699_v59 = vpop.f32.mrb[27].mxu1 }
 0xc82   : > { %v3700_v4 = vadd.f32 %v3699_v59, %v3698_v46  ;;  %v2920_v6 = vadd.f32 %v3697_v0, %v3519_v54 }
 0xc84   : > { %v2923_v17 = vadd.f32 %v3700_v4, %v3519_v54 }
 0xc85   : > { %v3729_v7 = vpop.f32.mrb[24].mxu0 }
 0xc86   : > { %v3701_v45 = vpop.f32.mrb[28].mxu1  ;;  %v3730_v1 = vpop.f32.mrb[25].mxu0 }
 0xc87   : > { %v3731_v9 = vadd.f32 %v3730_v1, %v3729_v7  ;;  %v3702_v37 = vpop.f32.mrb[29].mxu1  ;;  %v3732_v41 = vpop.f32.mrb[26].mxu0 }
 0xc88   : > { %v3703_v52 = vadd.f32 %v3702_v37, %v3701_v45  ;;  %v3704_v43 = vpop.f32.mrb[30].mxu1  ;;  %v3733_v12 = vpop.f32.mrb[27].mxu0 }
 0xc89   : > { %v3734_v16 = vadd.f32 %v3733_v12, %v3732_v41  ;;  %v3705_v8 = vpop.f32.mrb[31].mxu1  ;;  %v2977_v3 = vadd.f32 %v3731_v9, %v2912_v38 }
 0xc8a   : > { %v3706_v61 = vadd.f32 %v3705_v8, %v3704_v43  ;;  %v2928_v23 = vadd.f32 %v3703_v52, %v3519_v54 }
 0xc8b   : > { %v2980_v58 = vadd.f32 %v3734_v16, %v2915_v63 }
 0xc8c   : > { %v2931_v40 = vadd.f32 %v3706_v61, %v3519_v54 }
 0xc8d   : > { %v3735_v14 = vpop.f32.mrb[28].mxu0  ;;  %v3989_v0 = vadd.f32 %v3560_v62, %v2980_v58 }
 0xc8e   : > { %v3707_v15 = vpop.f32.mrb[32].mxu1  ;;  %v3736_v48 = vpop.f32.mrb[29].mxu0 }
 0xc8f   : > { %v3737_v44 = vadd.f32 %v3736_v48, %v3735_v14  ;;  %v3708_v18 = vpop.f32.mrb[33].mxu1  ;;  %v3738_v19 = vpop.f32.mrb[30].mxu0 }
 0xc90   : > { %v3709_v51 = vadd.f32 %v3708_v18, %v3707_v15  ;;  %v3710_v5 = vpop.f32.mrb[34].mxu1  ;;  %v3739_v47 = vpop.f32.mrb[31].mxu0 }
 0xc91   : > { %v3740_v25 = vadd.f32 %v3739_v47, %v3738_v19  ;;  %v3711_v20 = vpop.f32.mrb[35].mxu1  ;;  %v2985_v10 = vadd.f32 %v3737_v44, %v2920_v6 }
 0xc92   : > { %v3712_v30 = vadd.f32 %v3711_v20, %v3710_v5  ;;  %v2936_v29 = vadd.f32 %v3709_v51, %v3519_v54 }
 0xc93   : > { %v2988_v26 = vadd.f32 %v3740_v25, %v2923_v17 }
 0xc94   : > { %v2939_v34 = vadd.f32 %v3712_v30, %v3519_v54 }
 0xc95   : > { %v3741_v28 = vpop.f32.mrb[32].mxu0  ;;  %v3987_v39 = vadd.f32 %v3560_v62, %v2988_v26 }
 0xc96   : > { %v3742_v22 = vpop.f32.mrb[33].mxu0 }
 0xc97   : > { %v3743_v57 = vadd.f32 %v3742_v22, %v3741_v28  ;;  %v3744_v60 = vpop.f32.mrb[34].mxu0 }
 0xc98   : > { %v3745_v50 = vpop.f32.mrb[35].mxu0 }
 0xc99   : > { %v2993_v13 = vadd.f32 %v3743_v57, %v2928_v23  ;;  %v3746_v49 = vadd.f32 %v3745_v50, %v3744_v60 }
 0xc9b   : > { %v2996_v11 = vadd.f32 %v3746_v49, %v2931_v40  ;;  %v3993_v38 = vadd.f32 %v3560_v62, %v2993_v13 }
 0xc9d   : > { %v3747_v2 = vpop.f32.mrb[36].mxu0  ;;  %v3997_v12 = vadd.f32 %v3560_v62, %v2996_v11 }
 0xc9e   : > { %v3748_v27 = vpop.f32.mrb[37].mxu0 }
 0xc9f   : > { %v3749_v31 = vadd.f32 %v3748_v27, %v3747_v2  ;;  %v3750_v56 = vpop.f32.mrb[38].mxu0 }
 0xca0   : > { %v3751_v32 = vpop.f32.mrb[39].mxu0 }
 0xca1   : > { %v3001_v35 = vadd.f32 %v3749_v31, %v2936_v29  ;;  %v3752_v36 = vadd.f32 %v3751_v32, %v3750_v56 }
 0xca3   : > { %v3004_v24 = vadd.f32 %v3752_v36, %v2939_v34  ;;  %v3991_v54 = vadd.f32 %v3560_v62, %v3001_v35 }
 0xca5   : > { %v3995_v41 = vadd.f32 %v3560_v62, %v3004_v24 }
 0xca6   : > { %v3917_v53 = vpop.f32.mrb[36].mxu1 }
 0xca7   : > { %v3983_v55 = vadd.f32 %v3917_v53, %v2985_v10  ;;  %v3145_v33 = vpop.f32.mrb[37].mxu1 }
 0xca8   : > { %v3985_v42 = vadd.f32 %v3145_v33, %v2977_v3  ;;  %v3918_v21 = vpop.f32.mrb[38].mxu1 }
 0xca9   : > { %v3984_v46 = vadd.f32 %v3983_v55, %v3560_v62  ;;  %v3988_v59 = vadd.f32 %v3987_v39, %v3918_v21  ;;  %v3148_v4 = vpop.f32.mrb[39].mxu1 }
 0xcaa   : > { %v3986_v7 = vadd.f32 %v3985_v42, %v3560_v62  ;;  %v3990_v45 = vadd.f32 %v3989_v0, %v3148_v4 }
 0xcab   : > { %3186 = vst.msk [vmem:[%s803_s22 + $0x10] sm:$0xff] %vm1528_vm4, %v3984_v46  ;;  %3187 = vst.msk [vmem:[%s803_s22 + $0x18] sm:$0xff] %vm1528_vm4, %v3988_v59 }
 0xcac   : > { %3184 = vst.msk [vmem:[%s803_s22] sm:$0xff] %vm1528_vm4, %v3986_v7  ;;  %3185 = vst.msk [vmem:[%s803_s22 + $0x8] sm:$0xff] %vm1528_vm4, %v3990_v45 }
 0xcae   : > { %v3921_v1 = vpop.f32.mrb[40].mxu1 }
 0xcaf   : > { %v3992_v9 = vadd.f32 %v3991_v54, %v3921_v1  ;;  %v3161_v37 = vpop.f32.mrb[41].mxu1 }
 0xcb0   : > { %v3994_v52 = vadd.f32 %v3993_v38, %v3161_v37  ;;  %v3922_v43 = vpop.f32.mrb[42].mxu1 }
 0xcb1   : > { %3190 = vst.msk [vmem:[%s803_s22 + $0x30] sm:$0xff] %vm1528_vm4, %v3992_v9  ;;  %v3996_v63 = vadd.f32 %v3995_v41, %v3922_v43  ;;  %v3164_v16 = vpop.f32.mrb[43].mxu1 }
 0xcb2   : > { %3188 = vst.msk [vmem:[%s803_s22 + $0x20] sm:$0xff] %vm1528_vm4, %v3994_v52  ;;  %v3998_v8 = vadd.f32 %v3997_v12, %v3164_v16 }
 0xcb3   : > { %3191 = vst.msk [vmem:[%s803_s22 + $0x38] sm:$0xff] %vm1528_vm4, %v3996_v63 }
 0xcb4   : > { %3189 = vst.msk [vmem:[%s803_s22 + $0x28] sm:$0xff] %vm1528_vm4, %v3998_v8 }
 0xcb5   : > { %5034 = shalt.err (!%p5031_p10)
}
 0xcb6   : > { %s5035_s7 = scalar_lea.hbm %s6530_s10, 1024  ;;  %s5039_s19 = scalar_lea.hbm %s6683_s6, 2048 }
 0xcb7   : > { %p5036_p5 = scmp.ne.s32.totalorder %s6530_s10, %s5035_s7  ;;  %p5040_p7 = scmp.lt.u32.totalorder %s6530_s10, %s6683_s6 }
 0xcb8   : > { %p5041_p11 = scmp.lt.u32.totalorder %s5039_s19, %s5035_s7  ;;  %p5043_p4 = scmp.lt.u32.totalorder %s5035_s7, %s6530_s10 }
 0xcb9   : > { %p5037_p9 = pnand %p5036_p5, %p6684_p12 }
 0xcba   : > { %p5042_p8 = por %p5041_p11, %p5040_p7 }
 0xcbb   : > { %p5038_p0 = pneg %p5037_p9 }
 0xcbc   : > { %p5044_p13 = por %p5043_p4, %p5042_p8 }
 0xcbe   : > { %p5045_p1 = pnand %p5044_p13, %p5038_p0 }
 0xcc0   : > { %5048 = shalt.err (!%p5045_p1)
}
 0xcc1   : > { %s5153_s22 = smov 128   ;;  %s5154_s29 = smov 8  }
 0xcc2   : > { %4071 = dma.vmem_to_hbm [thread:$0]  (%p6684_p12), %s6532_s8, 1024, %s6530_s10, %s3193_s18, %s5153_s22, %s5153_s22, %s5154_s29  }
 0xcc3 PF: > { %s6685_s20 = sld [smem:[#allocation41_spill]]  ;;  %s6686_s26 = sld [smem:[#allocation44_spill]] }
 0xcc4   : > { %p6687_p3 = scmp.ne.s32.totalorder %s6656_s2, 0 }
 0xcc9   : > { %s3221_s25 = sand.u32 1, %s6685_s20   ;;  %p6688_p2 = scmp.ge.s32.totalorder %s6686_s26, 2 }
 0xcca   : > { %s3222_s24 = scalar_lea.sflag [#allocation4], %s3221_s25 }
 0xccb   : > { %p4127_p6 = pnand %p6688_p2, %p6687_p3 }
 0xccd   : > { %5106 = dma.done.wait (!%p4127_p6), %s3222_s24, 1024  }
 0xcce   : > { %5108 = vsyncadd (!%p4127_p6), %s3222_s24, 4294966272  ;;  %s6689_s24 = sld [smem:[#allocation42_spill]]  ;;  %s6690_s25 = sld [smem:[#allocation43_spill]] }
 0xccf   : > { %p40_p10 = scmp.ge.s32.totalorder %s5637_s1, 4   ;;  %s6691_s26 = smov %s5649_s30 }
 0xcd0   : > { %s6692_s27 = smov %s5637_s1 }
 0xcd1   :  { %42 = sbr.rel (!%p40_p10) target bundleno = 27 (0x1b), region = 206 }
 0xcd8   :  { %3227 = vsyncpa [#allocation3], 1 }
 0xcd9   :  { %3229 = vsyncpa [#allocation3 + $0x1], 1 }
 0xcda   :  { %3230 = vsyncpa [#allocation6], 1 }
 0xcdb   :  { %3232 = vsyncpa [#allocation6 + $0x1], 1 }
 0xcdc   :  { %3233 = vsyncpa [#allocation9], 1 }
 0xcdd   :  { %3234 = vsyncpa [#allocation12], 1 }
 0xcde   :  { %3235 = vsyncpa [#allocation15], 1 }
 0xcdf   :  { %3236 = vsyncpa [#allocation18], 1 }
 0xce0   :  { %3237 = vsyncpa [#allocation21], 1 }
 0xce1   :  { %3238 = vsyncpa [#allocation24], 1 }
 0xce2   :  { %3239 = vsyncpa [#allocation27], 1 }
 0xce3   :  { %3240 = vsyncpa [#allocation4], 1 }
 0xce4   :  { %3242 = vsyncpa [#allocation4 + $0x1], 1 }

</bundles_post_ra>
